<compile_context>
chip_gen: v7x
topology: tpu7x:2x2x1
jax: 0.10.0
libtpu: 0.0.40
codegen_flags: <defaults>
</compile_context>

<pallas_src>
import jax
import jax.numpy as jnp
import numpy as np
from jax.experimental import pallas as pl
from jax.experimental.pallas import tpu as pltpu


def _round_up(x, m):
    return ((x + m - 1) // m) * m


# ----------------------------------------------------------------------------
# In-kernel helpers
# ----------------------------------------------------------------------------
def _accum_conv_taps(xp_ref, w_ref, K, P, coff, Ho, Wo):
    """Sum of K*K shifted (Ho,Wo,Cin)@(Cin,Cout) MXU matmuls over a padded VMEM
    scratch whose interior starts at (row=P, col=coff).  bf16 operands, f32 acc."""
    acc = None
    for kh in range(K):
        for kw in range(K):
            c0 = coff - P + kw
            patch = xp_ref[kh:kh + Ho, c0:c0 + Wo, :].astype(jnp.bfloat16)
            d = jnp.dot(patch, w_ref[kh, kw], preferred_element_type=jnp.float32)
            acc = d if acc is None else acc + d
    return acc


def _make_block_kernel(K: int, P: int, coff: int):
    """Fused: conv1 + ReLU -> (1x1 skip) -> conv2 + residual + ReLU -> concat-1x1."""
    def kernel(x_ref, enc_ref, w1_ref, b1_ref, wsk_ref, bsk_ref,
               w2_ref, b2_ref, wcx_ref, wce_ref, bc_ref,
               o_ref, xp_ref, hp_ref):
        H, W = x_ref.shape[1], x_ref.shape[2]
        x = x_ref[0]                                           # (H, W, Cin) bf16

        # ---- conv1 (KxK, pad P) + ReLU; h stays in VMEM -----------------------
        if P > 0:
            xp_ref[...] = jnp.zeros(xp_ref.shape, jnp.float32)
        xp_ref[P:P + H, coff:coff + W, :] = x.astype(jnp.float32)
        h = jnp.maximum(_accum_conv_taps(xp_ref, w1_ref, K, P, coff, H, W)
                        + b1_ref[0], 0.0)                      # (H, W, Mid) f32

        # ---- skip path: 1x1 conv (identity weights when Cin == Cout) ----------
        skip = jnp.dot(x, wsk_ref[...],
                       preferred_element_type=jnp.float32) + bsk_ref[0]

        # ---- conv2 (KxK, pad P) + residual + ReLU ------------------------------
        if P > 0:
            hp_ref[...] = jnp.zeros(hp_ref.shape, jnp.float32)
        hp_ref[P:P + H, coff:coff + W, :] = h
        y = jnp.maximum(_accum_conv_taps(hp_ref, w2_ref, K, P, coff, H, W)
                        + b2_ref[0] + skip, 0.0)               # (H, W, Cout) f32

        # ---- concat([y, enc], channel) + 1x1 conv as split-weight sum ----------
        out = (jnp.dot(y.astype(jnp.bfloat16), wcx_ref[...],
                       preferred_element_type=jnp.float32)
               + jnp.dot(enc_ref[0], wce_ref[...],
                         preferred_element_type=jnp.float32)
               + bc_ref[0])
        o_ref[...] = out[None].astype(o_ref.dtype)
    return kernel


def _make_out_kernel(K: int, P: int, coff: int):
    """Plain KxK conv + bias (decoder_output head)."""
    def kernel(x_ref, w_ref, b_ref, o_ref, xp_ref):
        H, W = x_ref.shape[1], x_ref.shape[2]
        Ho, Wo = o_ref.shape[1], o_ref.shape[2]
        if P > 0:
            xp_ref[...] = jnp.zeros(xp_ref.shape, jnp.float32)
        xp_ref[P:P + H, coff:coff + W, :] = x_ref[0].astype(jnp.float32)
        acc = _accum_conv_taps(xp_ref, w_ref, K, P, coff, Ho, Wo)
        o_ref[...] = (acc + b_ref[0])[None].astype(o_ref.dtype)
    return kernel


# ----------------------------------------------------------------------------
# pallas_call wrappers
# ----------------------------------------------------------------------------
def fused_decoder_block(x, enc, blk, cc, K, P):
    """x: (N,H,W,Cin) bf16, enc: (N,H,W,Cout) bf16 -> (N,H,W,Cout) bf16."""
    N, H, W, Cin = x.shape
    Cout = enc.shape[-1]
    Mid = blk["conv1"]["w"].shape[-1]
    assert 2 * P == K - 1, "residual block requires size-preserving conv (stride=1)"

    coff = _round_up(P, 8)            # sublane-aligned interior column offset
    Hp, Wp = H + 2 * P, coff + W + P

    # Split the concat-conv weight: first Cout input rows hit x, rest hit enc.
    wcat = cc["w"][0, 0]              # (2*Cout, Cout) bf16
    wcx, wce = wcat[:Cout], wcat[Cout:]
    bc = cc["b"].reshape(1, Cout)

    if blk["skip"] is None:           # identity skip == 1x1 conv with I weight (exact)
        wsk = jnp.eye(Cin, dtype=jnp.bfloat16)
        bsk = jnp.zeros((1, Cout), jnp.float32)
    else:
        wsk = blk["skip"]["w"][0, 0]
        bsk = blk["skip"]["b"].reshape(1, Cout)

    b1 = blk["conv1"]["b"].reshape(1, Mid)
    b2 = blk["conv2"]["b"].reshape(1, Cout)

    kernel = _make_block_kernel(K, P, coff)
    full2 = lambda n: (0, 0)
    full4 = lambda n: (0, 0, 0, 0)
    batch = lambda n: (n, 0, 0, 0)

    return pl.pallas_call(
        kernel,
        out_shape=jax.ShapeDtypeStruct((N, H, W, Cout), jnp.bfloat16),
        grid=(N,),
        in_specs=[
            pl.BlockSpec((1, H, W, Cin), batch),
            pl.BlockSpec((1, H, W, Cout), batch),
            pl.BlockSpec((K, K, Cin, Mid), full4),
            pl.BlockSpec((1, Mid), full2),
            pl.BlockSpec((Cin, Cout), full2),
            pl.BlockSpec((1, Cout), full2),
            pl.BlockSpec((K, K, Mid, Cout), full4),
            pl.BlockSpec((1, Cout), full2),
            pl.BlockSpec((Cout, Cout), full2),
            pl.BlockSpec((Cout, Cout), full2),
            pl.BlockSpec((1, Cout), full2),
        ],
        out_specs=pl.BlockSpec((1, H, W, Cout), batch),
        scratch_shapes=[pltpu.VMEM((Hp, Wp, Cin), jnp.float32),
                        pltpu.VMEM((Hp, Wp, Mid), jnp.float32)],
        compiler_params=pltpu.CompilerParams(
            dimension_semantics=("parallel",)),
    )(x, enc, blk["conv1"]["w"], b1, wsk, bsk,
      blk["conv2"]["w"], b2, wcx, wce, bc)


def output_conv(x, w, b, K, P):
    """x: (N,H,W,Cin) bf16 -> (N,Ho,Wo,Cout) f32."""
    N, H, W, Cin = x.shape
    Cout = w.shape[-1]
    Ho, Wo = H + 2 * P - K + 1, W + 2 * P - K + 1
    coff = _round_up(P, 8)
    Hp, Wp = H + 2 * P, coff + W + P
    b2 = b.reshape(1, Cout)
    kernel = _make_out_kernel(K, P, coff)
    batch = lambda n: (n, 0, 0, 0)
    return pl.pallas_call(
        kernel,
        out_shape=jax.ShapeDtypeStruct((N, Ho, Wo, Cout), jnp.float32),
        grid=(N,),
        in_specs=[
            pl.BlockSpec((1, H, W, Cin), batch),
            pl.BlockSpec((K, K, Cin, Cout), lambda n: (0, 0, 0, 0)),
            pl.BlockSpec((1, Cout), lambda n: (0, 0)),
        ],
        out_specs=pl.BlockSpec((1, Ho, Wo, Cout), batch),
        scratch_shapes=[pltpu.VMEM((Hp, Wp, Cin), jnp.float32)],
        compiler_params=pltpu.CompilerParams(
            dimension_semantics=("parallel",)),
    )(x, w, b2)


# ----------------------------------------------------------------------------
# Parameter construction (matches the torch module's shapes; weights bf16).
# ----------------------------------------------------------------------------
def _init_conv(key, k, cin, cout):
    kw_, kb = jax.random.split(key)
    fan_in = k * k * cin
    w = (jax.random.normal(kw_, (k, k, cin, cout), jnp.float32)
         / np.sqrt(fan_in)).astype(jnp.bfloat16)
    b = jax.random.normal(kb, (cout,), jnp.float32) * 0.01
    return {"w": w, "b": b}


def build_decoder_params(key, out_channels, num_blocks, base_channels=32,
                         channel_multiplier=1, out_ksize=3, out_padding=1,
                         block_ksize=3, block_padding=1,
                         block_mid_channel_multiplier=1,
                         block_ksize_increment=0):
    assert block_ksize_increment % 2 == 0
    channel_list = [base_channels * channel_multiplier ** i
                    for i in range(num_blocks + 1)]
    ksize_list = [block_ksize + block_ksize_increment * i for i in range(num_blocks)]
    pad_list = []
    for i in range(num_blocks):
        if block_ksize_increment == 0:
            pad_list.append(block_padding)
        else:
            pad_list.append(block_padding + block_ksize_increment * i // 2)

    params = {"blocks": {}, "concat": {}}
    cfg = {"num_blocks": num_blocks, "channel_list": channel_list,
           "ksize_list": ksize_list, "pad_list": pad_list,
           "out_ksize": out_ksize, "out_padding": out_padding}

    keys = jax.random.split(key, 4 * num_blocks + 1)
    kidx = 0
    for i in range(num_blocks - 1, -1, -1):
        cin, cout = channel_list[i + 1], channel_list[i]
        mid = cout * block_mid_channel_multiplier
        k = ksize_list[i]
        blk = {
            "conv1": _init_conv(keys[kidx], k, cin, mid),
            "conv2": _init_conv(keys[kidx + 1], k, mid, cout),
            "skip": _init_conv(keys[kidx + 2], 1, cin, cout) if cin != cout else None,
        }
        params["blocks"][f"decoder_block_{i + 1}"] = blk
        params["concat"][f"decoder_concat_{i + 1}"] = _init_conv(
            keys[kidx + 3], 1, cout * 2, cout)
        kidx += 4
    params["blocks"]["decoder_output"] = _init_conv(
        keys[kidx], out_ksize, channel_list[0], out_channels)
    return params, cfg


# ----------------------------------------------------------------------------
# Forward pass (Pallas).  Mirrors ResUNet2DDecoder.forward; NCHW in/out.
# ----------------------------------------------------------------------------
def decoder_forward(params, cfg, x_nchw, enc_features_nchw):
    x = jnp.transpose(x_nchw, (0, 2, 3, 1)).astype(jnp.bfloat16)
    enc = {k: jnp.transpose(v, (0, 2, 3, 1)).astype(jnp.bfloat16)
           for k, v in enc_features_nchw.items()}

    dec_features = {}
    nb = cfg["num_blocks"]
    for i in range(nb - 1, -1, -1):
        name = f"decoder_block_{i + 1}"
        x = fused_decoder_block(
            x, enc[f"encoder_block_{i}"],
            params["blocks"][name], params["concat"][f"decoder_concat_{i + 1}"],
            cfg["ksize_list"][i], cfg["pad_list"][i])
        dec_features[name] = x

    oc = params["blocks"]["decoder_output"]
    x = output_conv(x, oc["w"], oc["b"], cfg["out_ksize"], cfg["out_padding"])
    dec_features["decoder_output"] = x

    to_nchw = lambda t: jnp.transpose(t.astype(jnp.float32), (0, 3, 1, 2))
    return to_nchw(x), {k: to_nchw(v) for k, v in dec_features.items()}


# ----------------------------------------------------------------------------
# Pure-JAX reference with identical precision policy (bf16 operands, f32 acc).
# ----------------------------------------------------------------------------
def _ref_conv(x, w, b, padding, relu=False, residual=None):
    out = jax.lax.conv_general_dilated(
        x.astype(jnp.bfloat16), w, window_strides=(1, 1),
        padding=((padding, padding), (padding, padding)),
        dimension_numbers=("NHWC", "HWIO", "NHWC"),
        preferred_element_type=jnp.float32)
    out = out + b
    if residual is not None:
        out = out + residual
    if relu:
        out = jnp.maximum(out, 0.0)
    return out


def _ref_forward(params, cfg, x_nchw, enc_features_nchw):
    x = jnp.transpose(x_nchw, (0, 2, 3, 1)).astype(jnp.bfloat16)
    enc = {k: jnp.transpose(v, (0, 2, 3, 1)).astype(jnp.bfloat16)
           for k, v in enc_features_nchw.items()}
    nb = cfg["num_blocks"]
    for i in range(nb - 1, -1, -1):
        blk = params["blocks"][f"decoder_block_{i + 1}"]
        p = cfg["pad_list"][i]
        h = _ref_conv(x, blk["conv1"]["w"], blk["conv1"]["b"], p, relu=True)
        if blk["skip"] is None:
            skip = x.astype(jnp.float32)
        else:
            skip = _ref_conv(x, blk["skip"]["w"], blk["skip"]["b"], 0)
        y = _ref_conv(h, blk["conv2"]["w"], blk["conv2"]["b"], p, relu=True,
                      residual=skip)
        cat = jnp.concatenate([y.astype(jnp.bfloat16),
                               enc[f"encoder_block_{i}"]], axis=-1)
        cc = params["concat"][f"decoder_concat_{i + 1}"]
        x = _ref_conv(cat, cc["w"], cc["b"], 0).astype(jnp.bfloat16)
    oc = params["blocks"]["decoder_output"]
    out = _ref_conv(x, oc["w"], oc["b"], cfg["out_padding"])
    return jnp.transpose(out, (0, 3, 1, 2))


# ----------------------------------------------------------------------------
if __name__ == "__main__":
    # Small synthetic configuration:
    #   num_blocks=2, base_channels=8, channel_multiplier=2
    #   channel_list = [8, 16, 32]; decoder input has 32 channels.
    N, H, W = 2, 16, 16
    out_channels = 3
    num_blocks = 2
    base_channels = 8
    channel_multiplier = 2

    pkey = jax.random.PRNGKey(0)
    params, cfg = build_decoder_params(
        pkey, out_channels, num_blocks, base_channels=base_channels,
        channel_multiplier=channel_multiplier)

    ch = cfg["channel_list"]
    k_x, k_e0, k_e1 = jax.random.split(jax.random.PRNGKey(0), 3)
    x = jax.random.normal(k_x, (N, ch[num_blocks], H, W), jnp.float32)
    enc_features = {
        "encoder_block_0": jax.random.normal(k_e0, (N, ch[0], H, W), jnp.float32),
        "encoder_block_1": jax.random.normal(k_e1, (N, ch[1], H, W), jnp.float32),
    }

    out, dec_features = decoder_forward(params, cfg, x, enc_features)
    out = jax.block_until_ready(out)

    # sanity: shapes + numerical match vs pure-JAX conv reference.
    assert out.shape == (N, out_channels, H, W), out.shape
    assert dec_features["decoder_block_2"].shape == (N, ch[1], H, W)
    assert dec_features["decoder_block_1"].shape == (N, ch[0], H, W)
    ref = jax.block_until_ready(_ref_forward(params, cfg, x, enc_features))
    # Tolerance accounts for bf16 re-quantization of intermediates under
    # differing f32 summation orders (kernel vs XLA conv); both paths use
    # bf16 operands with f32 accumulation.
    np.testing.assert_allclose(np.asarray(out), np.asarray(ref),
                               rtol=2e-2, atol=2e-2)

    print("KERNEL_OK")
</pallas_src>

<mosaic_0001>
module attributes {stable_mosaic.version = 11 : i64} {
  func.func @kernel(%arg0: i32, %arg1: memref<1x16x16x32xbf16, #tpu.memory_space<vmem>>, %arg2: memref<1x16x16x16xbf16, #tpu.memory_space<vmem>>, %arg3: memref<3x3x32x16xbf16, #tpu.memory_space<vmem>>, %arg4: memref<1x16xf32, #tpu.memory_space<vmem>>, %arg5: memref<32x16xbf16, #tpu.memory_space<vmem>>, %arg6: memref<1x16xf32, #tpu.memory_space<vmem>>, %arg7: memref<3x3x16x16xbf16, #tpu.memory_space<vmem>>, %arg8: memref<1x16xf32, #tpu.memory_space<vmem>>, %arg9: memref<16x16xbf16, #tpu.memory_space<vmem>>, %arg10: memref<16x16xbf16, #tpu.memory_space<vmem>>, %arg11: memref<1x16xf32, #tpu.memory_space<vmem>>, %arg12: memref<1x16x16x16xbf16, #tpu.memory_space<vmem>>, %arg13: memref<18x25x32xf32, #tpu.memory_space<vmem>>, %arg14: memref<18x25x16xf32, #tpu.memory_space<vmem>>) attributes {dimension_semantics = [#tpu.dimension_semantics<parallel>], iteration_bounds = array<i64: 2>, scalar_prefetch = 0 : i64, scratch_operands = 2 : i64, tpu.core_type = #tpu.core_type<tc>, window_params = [{transform_indices = @transform_0, window_bounds = array<i64: 1, 16, 16, 32>}, {transform_indices = @transform_1, window_bounds = array<i64: 1, 16, 16, 16>}, {pipeline_mode = #tpu.pipeline_mode<synchronous>, transform_indices = @transform_2, window_bounds = array<i64: 3, 3, 32, 16>}, {pipeline_mode = #tpu.pipeline_mode<synchronous>, transform_indices = @transform_3, window_bounds = array<i64: 1, 16>}, {pipeline_mode = #tpu.pipeline_mode<synchronous>, transform_indices = @transform_4, window_bounds = array<i64: 32, 16>}, {pipeline_mode = #tpu.pipeline_mode<synchronous>, transform_indices = @transform_5, window_bounds = array<i64: 1, 16>}, {pipeline_mode = #tpu.pipeline_mode<synchronous>, transform_indices = @transform_6, window_bounds = array<i64: 3, 3, 16, 16>}, {pipeline_mode = #tpu.pipeline_mode<synchronous>, transform_indices = @transform_7, window_bounds = array<i64: 1, 16>}, {pipeline_mode = #tpu.pipeline_mode<synchronous>, transform_indices = @transform_8, window_bounds = array<i64: 16, 16>}, {pipeline_mode = #tpu.pipeline_mode<synchronous>, transform_indices = @transform_9, window_bounds = array<i64: 16, 16>}, {pipeline_mode = #tpu.pipeline_mode<synchronous>, transform_indices = @transform_10, window_bounds = array<i64: 1, 16>}, {transform_indices = @transform_11, window_bounds = array<i64: 1, 16, 16, 16>}]} {
    %c0 = arith.constant 0 : index
    %c0_0 = arith.constant 0 : index
    %c0_1 = arith.constant 0 : index
    %c0_2 = arith.constant 0 : index
    %0 = vector.load %arg1[%c0, %c0_0, %c0_1, %c0_2] : memref<1x16x16x32xbf16, #tpu.memory_space<vmem>>, vector<1x16x16x32xbf16>
    %1 = vector.shape_cast %0 : vector<1x16x16x32xbf16> to vector<16x16x32xbf16>
    %cst = arith.constant 0.000000e+00 : f32
    %2 = vector.broadcast %cst : f32 to vector<18x25x32xf32>
    %c0_3 = arith.constant 0 : index
    %c0_4 = arith.constant 0 : index
    %c0_5 = arith.constant 0 : index
    %3 = vector.load %arg13[%c0_3, %c0_4, %c0_5] : memref<18x25x32xf32, #tpu.memory_space<vmem>>, vector<18x25x32xf32>
    tpu.vector_store %arg13[%c0_3, %c0_4, %c0_5], %2 {strides = array<i32>} : memref<18x25x32xf32, #tpu.memory_space<vmem>>, vector<18x25x32xf32>,
    %4 = arith.extf %1 : vector<16x16x32xbf16> to vector<16x16x32xf32>
    %c1 = arith.constant 1 : index
    %c8 = arith.constant 8 : index
    %c0_6 = arith.constant 0 : index
    %5 = vector.load %arg13[%c1, %c8, %c0_6] : memref<18x25x32xf32, #tpu.memory_space<vmem>>, vector<16x16x32xf32>
    tpu.vector_store %arg13[%c1, %c8, %c0_6], %4 {strides = array<i32>} : memref<18x25x32xf32, #tpu.memory_space<vmem>>, vector<16x16x32xf32>,
    %c0_7 = arith.constant 0 : index
    %c7 = arith.constant 7 : index
    %c0_8 = arith.constant 0 : index
    %6 = vector.load %arg13[%c0_7, %c7, %c0_8] : memref<18x25x32xf32, #tpu.memory_space<vmem>>, vector<16x16x32xf32>
    %7 = arith.truncf %6 : vector<16x16x32xf32> to vector<16x16x32xbf16>
    %c0_9 = arith.constant 0 : index
    %c0_10 = arith.constant 0 : index
    %c0_11 = arith.constant 0 : index
    %c0_12 = arith.constant 0 : index
    %8 = vector.load %arg3[%c0_9, %c0_10, %c0_11, %c0_12] : memref<3x3x32x16xbf16, #tpu.memory_space<vmem>>, vector<1x1x32x16xbf16>
    %9 = vector.shape_cast %8 : vector<1x1x32x16xbf16> to vector<32x16xbf16>
    %cst_13 = arith.constant dense<0.000000e+00> : vector<16x16x16xf32>
    %10 = tpu.matmul %7, %9, %cst_13 {dimension_numbers = #tpu.dot_dimension_numbers<[2], [0], [0, 1], [1], [0, 0, 0, 1, 1, 1], [], []>} : vector<16x16x32xbf16>, vector<32x16xbf16>, vector<16x16x16xf32> -> vector<16x16x16xf32>
    %c0_14 = arith.constant 0 : index
    %c8_15 = arith.constant 8 : index
    %c0_16 = arith.constant 0 : index
    %11 = vector.load %arg13[%c0_14, %c8_15, %c0_16] : memref<18x25x32xf32, #tpu.memory_space<vmem>>, vector<16x16x32xf32>
    %12 = arith.truncf %11 : vector<16x16x32xf32> to vector<16x16x32xbf16>
    %c0_17 = arith.constant 0 : index
    %c1_18 = arith.constant 1 : index
    %c0_19 = arith.constant 0 : index
    %c0_20 = arith.constant 0 : index
    %13 = vector.load %arg3[%c0_17, %c1_18, %c0_19, %c0_20] : memref<3x3x32x16xbf16, #tpu.memory_space<vmem>>, vector<1x1x32x16xbf16>
    %14 = vector.shape_cast %13 : vector<1x1x32x16xbf16> to vector<32x16xbf16>
    %cst_21 = arith.constant dense<0.000000e+00> : vector<16x16x16xf32>
    %15 = tpu.matmul %12, %14, %cst_21 {dimension_numbers = #tpu.dot_dimension_numbers<[2], [0], [0, 1], [1], [0, 0, 0, 1, 1, 1], [], []>} : vector<16x16x32xbf16>, vector<32x16xbf16>, vector<16x16x16xf32> -> vector<16x16x16xf32>
    %16 = arith.addf %10, %15 : vector<16x16x16xf32>
    %c0_22 = arith.constant 0 : index
    %c9 = arith.constant 9 : index
    %c0_23 = arith.constant 0 : index
    %17 = vector.load %arg13[%c0_22, %c9, %c0_23] : memref<18x25x32xf32, #tpu.memory_space<vmem>>, vector<16x16x32xf32>
    %18 = arith.truncf %17 : vector<16x16x32xf32> to vector<16x16x32xbf16>
    %c0_24 = arith.constant 0 : index
    %c2 = arith.constant 2 : index
    %c0_25 = arith.constant 0 : index
    %c0_26 = arith.constant 0 : index
    %19 = vector.load %arg3[%c0_24, %c2, %c0_25, %c0_26] : memref<3x3x32x16xbf16, #tpu.memory_space<vmem>>, vector<1x1x32x16xbf16>
    %20 = vector.shape_cast %19 : vector<1x1x32x16xbf16> to vector<32x16xbf16>
    %cst_27 = arith.constant dense<0.000000e+00> : vector<16x16x16xf32>
    %21 = tpu.matmul %18, %20, %cst_27 {dimension_numbers = #tpu.dot_dimension_numbers<[2], [0], [0, 1], [1], [0, 0, 0, 1, 1, 1], [], []>} : vector<16x16x32xbf16>, vector<32x16xbf16>, vector<16x16x16xf32> -> vector<16x16x16xf32>
    %22 = arith.addf %16, %21 : vector<16x16x16xf32>
    %c1_28 = arith.constant 1 : index
    %c7_29 = arith.constant 7 : index
    %c0_30 = arith.constant 0 : index
    %23 = vector.load %arg13[%c1_28, %c7_29, %c0_30] : memref<18x25x32xf32, #tpu.memory_space<vmem>>, vector<16x16x32xf32>
    %24 = arith.truncf %23 : vector<16x16x32xf32> to vector<16x16x32xbf16>
    %c1_31 = arith.constant 1 : index
    %c0_32 = arith.constant 0 : index
    %c0_33 = arith.constant 0 : index
    %c0_34 = arith.constant 0 : index
    %25 = vector.load %arg3[%c1_31, %c0_32, %c0_33, %c0_34] : memref<3x3x32x16xbf16, #tpu.memory_space<vmem>>, vector<1x1x32x16xbf16>
    %26 = vector.shape_cast %25 : vector<1x1x32x16xbf16> to vector<32x16xbf16>
    %cst_35 = arith.constant dense<0.000000e+00> : vector<16x16x16xf32>
    %27 = tpu.matmul %24, %26, %cst_35 {dimension_numbers = #tpu.dot_dimension_numbers<[2], [0], [0, 1], [1], [0, 0, 0, 1, 1, 1], [], []>} : vector<16x16x32xbf16>, vector<32x16xbf16>, vector<16x16x16xf32> -> vector<16x16x16xf32>
    %28 = arith.addf %22, %27 : vector<16x16x16xf32>
    %c1_36 = arith.constant 1 : index
    %c8_37 = arith.constant 8 : index
    %c0_38 = arith.constant 0 : index
    %29 = vector.load %arg13[%c1_36, %c8_37, %c0_38] : memref<18x25x32xf32, #tpu.memory_space<vmem>>, vector<16x16x32xf32>
    %30 = arith.truncf %29 : vector<16x16x32xf32> to vector<16x16x32xbf16>
    %c1_39 = arith.constant 1 : index
    %c1_40 = arith.constant 1 : index
    %c0_41 = arith.constant 0 : index
    %c0_42 = arith.constant 0 : index
    %31 = vector.load %arg3[%c1_39, %c1_40, %c0_41, %c0_42] : memref<3x3x32x16xbf16, #tpu.memory_space<vmem>>, vector<1x1x32x16xbf16>
    %32 = vector.shape_cast %31 : vector<1x1x32x16xbf16> to vector<32x16xbf16>
    %cst_43 = arith.constant dense<0.000000e+00> : vector<16x16x16xf32>
    %33 = tpu.matmul %30, %32, %cst_43 {dimension_numbers = #tpu.dot_dimension_numbers<[2], [0], [0, 1], [1], [0, 0, 0, 1, 1, 1], [], []>} : vector<16x16x32xbf16>, vector<32x16xbf16>, vector<16x16x16xf32> -> vector<16x16x16xf32>
    %34 = arith.addf %28, %33 : vector<16x16x16xf32>
    %c1_44 = arith.constant 1 : index
    %c9_45 = arith.constant 9 : index
    %c0_46 = arith.constant 0 : index
    %35 = vector.load %arg13[%c1_44, %c9_45, %c0_46] : memref<18x25x32xf32, #tpu.memory_space<vmem>>, vector<16x16x32xf32>
    %36 = arith.truncf %35 : vector<16x16x32xf32> to vector<16x16x32xbf16>
    %c1_47 = arith.constant 1 : index
    %c2_48 = arith.constant 2 : index
    %c0_49 = arith.constant 0 : index
    %c0_50 = arith.constant 0 : index
    %37 = vector.load %arg3[%c1_47, %c2_48, %c0_49, %c0_50] : memref<3x3x32x16xbf16, #tpu.memory_space<vmem>>, vector<1x1x32x16xbf16>
    %38 = vector.shape_cast %37 : vector<1x1x32x16xbf16> to vector<32x16xbf16>
    %cst_51 = arith.constant dense<0.000000e+00> : vector<16x16x16xf32>
    %39 = tpu.matmul %36, %38, %cst_51 {dimension_numbers = #tpu.dot_dimension_numbers<[2], [0], [0, 1], [1], [0, 0, 0, 1, 1, 1], [], []>} : vector<16x16x32xbf16>, vector<32x16xbf16>, vector<16x16x16xf32> -> vector<16x16x16xf32>
    %40 = arith.addf %34, %39 : vector<16x16x16xf32>
    %c2_52 = arith.constant 2 : index
    %c7_53 = arith.constant 7 : index
    %c0_54 = arith.constant 0 : index
    %41 = vector.load %arg13[%c2_52, %c7_53, %c0_54] : memref<18x25x32xf32, #tpu.memory_space<vmem>>, vector<16x16x32xf32>
    %42 = arith.truncf %41 : vector<16x16x32xf32> to vector<16x16x32xbf16>
    %c2_55 = arith.constant 2 : index
    %c0_56 = arith.constant 0 : index
    %c0_57 = arith.constant 0 : index
    %c0_58 = arith.constant 0 : index
    %43 = vector.load %arg3[%c2_55, %c0_56, %c0_57, %c0_58] : memref<3x3x32x16xbf16, #tpu.memory_space<vmem>>, vector<1x1x32x16xbf16>
    %44 = vector.shape_cast %43 : vector<1x1x32x16xbf16> to vector<32x16xbf16>
    %cst_59 = arith.constant dense<0.000000e+00> : vector<16x16x16xf32>
    %45 = tpu.matmul %42, %44, %cst_59 {dimension_numbers = #tpu.dot_dimension_numbers<[2], [0], [0, 1], [1], [0, 0, 0, 1, 1, 1], [], []>} : vector<16x16x32xbf16>, vector<32x16xbf16>, vector<16x16x16xf32> -> vector<16x16x16xf32>
    %46 = arith.addf %40, %45 : vector<16x16x16xf32>
    %c2_60 = arith.constant 2 : index
    %c8_61 = arith.constant 8 : index
    %c0_62 = arith.constant 0 : index
    %47 = vector.load %arg13[%c2_60, %c8_61, %c0_62] : memref<18x25x32xf32, #tpu.memory_space<vmem>>, vector<16x16x32xf32>
    %48 = arith.truncf %47 : vector<16x16x32xf32> to vector<16x16x32xbf16>
    %c2_63 = arith.constant 2 : index
    %c1_64 = arith.constant 1 : index
    %c0_65 = arith.constant 0 : index
    %c0_66 = arith.constant 0 : index
    %49 = vector.load %arg3[%c2_63, %c1_64, %c0_65, %c0_66] : memref<3x3x32x16xbf16, #tpu.memory_space<vmem>>, vector<1x1x32x16xbf16>
    %50 = vector.shape_cast %49 : vector<1x1x32x16xbf16> to vector<32x16xbf16>
    %cst_67 = arith.constant dense<0.000000e+00> : vector<16x16x16xf32>
    %51 = tpu.matmul %48, %50, %cst_67 {dimension_numbers = #tpu.dot_dimension_numbers<[2], [0], [0, 1], [1], [0, 0, 0, 1, 1, 1], [], []>} : vector<16x16x32xbf16>, vector<32x16xbf16>, vector<16x16x16xf32> -> vector<16x16x16xf32>
    %52 = arith.addf %46, %51 : vector<16x16x16xf32>
    %c2_68 = arith.constant 2 : index
    %c9_69 = arith.constant 9 : index
    %c0_70 = arith.constant 0 : index
    %53 = vector.load %arg13[%c2_68, %c9_69, %c0_70] : memref<18x25x32xf32, #tpu.memory_space<vmem>>, vector<16x16x32xf32>
    %54 = arith.truncf %53 : vector<16x16x32xf32> to vector<16x16x32xbf16>
    %c2_71 = arith.constant 2 : index
    %c2_72 = arith.constant 2 : index
    %c0_73 = arith.constant 0 : index
    %c0_74 = arith.constant 0 : index
    %55 = vector.load %arg3[%c2_71, %c2_72, %c0_73, %c0_74] : memref<3x3x32x16xbf16, #tpu.memory_space<vmem>>, vector<1x1x32x16xbf16>
    %56 = vector.shape_cast %55 : vector<1x1x32x16xbf16> to vector<32x16xbf16>
    %cst_75 = arith.constant dense<0.000000e+00> : vector<16x16x16xf32>
    %57 = tpu.matmul %54, %56, %cst_75 {dimension_numbers = #tpu.dot_dimension_numbers<[2], [0], [0, 1], [1], [0, 0, 0, 1, 1, 1], [], []>} : vector<16x16x32xbf16>, vector<32x16xbf16>, vector<16x16x16xf32> -> vector<16x16x16xf32>
    %58 = arith.addf %52, %57 : vector<16x16x16xf32>
    %c0_76 = arith.constant 0 : index
    %c0_77 = arith.constant 0 : index
    %59 = vector.load %arg4[%c0_76, %c0_77] : memref<1x16xf32, #tpu.memory_space<vmem>>, vector<1x16xf32>
    %60 = vector.shape_cast %59 : vector<1x16xf32> to vector<16xf32>
    %61 = vector.shape_cast %60 : vector<16xf32> to vector<1x1x16xf32>
    %62 = vector.broadcast %61 : vector<1x1x16xf32> to vector<16x16x16xf32>
    %63 = arith.addf %58, %62 : vector<16x16x16xf32>
    %cst_78 = arith.constant 0.000000e+00 : f32
    %64 = vector.broadcast %cst_78 : f32 to vector<16x16x16xf32>
    %65 = arith.maximumf %63, %64 : vector<16x16x16xf32>
    %c0_79 = arith.constant 0 : index
    %c0_80 = arith.constant 0 : index
    %66 = vector.load %arg5[%c0_79, %c0_80] : memref<32x16xbf16, #tpu.memory_space<vmem>>, vector<32x16xbf16>
    %cst_81 = arith.constant dense<0.000000e+00> : vector<16x16x16xf32>
    %67 = tpu.matmul %1, %66, %cst_81 {dimension_numbers = #tpu.dot_dimension_numbers<[2], [0], [0, 1], [1], [0, 0, 0, 1, 1, 1], [], []>} : vector<16x16x32xbf16>, vector<32x16xbf16>, vector<16x16x16xf32> -> vector<16x16x16xf32>
    %c0_82 = arith.constant 0 : index
    %c0_83 = arith.constant 0 : index
    %68 = vector.load %arg6[%c0_82, %c0_83] : memref<1x16xf32, #tpu.memory_space<vmem>>, vector<1x16xf32>
    %69 = vector.shape_cast %68 : vector<1x16xf32> to vector<16xf32>
    %70 = vector.shape_cast %69 : vector<16xf32> to vector<1x1x16xf32>
    %71 = vector.broadcast %70 : vector<1x1x16xf32> to vector<16x16x16xf32>
    %72 = arith.addf %67, %71 : vector<16x16x16xf32>
    %cst_84 = arith.constant 0.000000e+00 : f32
    %73 = vector.broadcast %cst_84 : f32 to vector<18x25x16xf32>
    %c0_85 = arith.constant 0 : index
    %c0_86 = arith.constant 0 : index
    %c0_87 = arith.constant 0 : index
    %74 = vector.load %arg14[%c0_85, %c0_86, %c0_87] : memref<18x25x16xf32, #tpu.memory_space<vmem>>, vector<18x25x16xf32>
    tpu.vector_store %arg14[%c0_85, %c0_86, %c0_87], %73 {strides = array<i32>} : memref<18x25x16xf32, #tpu.memory_space<vmem>>, vector<18x25x16xf32>,
    %c1_88 = arith.constant 1 : index
    %c8_89 = arith.constant 8 : index
    %c0_90 = arith.constant 0 : index
    %75 = vector.load %arg14[%c1_88, %c8_89, %c0_90] : memref<18x25x16xf32, #tpu.memory_space<vmem>>, vector<16x16x16xf32>
    tpu.vector_store %arg14[%c1_88, %c8_89, %c0_90], %65 {strides = array<i32>} : memref<18x25x16xf32, #tpu.memory_space<vmem>>, vector<16x16x16xf32>,
    %c0_91 = arith.constant 0 : index
    %c7_92 = arith.constant 7 : index
    %c0_93 = arith.constant 0 : index
    %76 = vector.load %arg14[%c0_91, %c7_92, %c0_93] : memref<18x25x16xf32, #tpu.memory_space<vmem>>, vector<16x16x16xf32>
    %77 = arith.truncf %76 : vector<16x16x16xf32> to vector<16x16x16xbf16>
    %c0_94 = arith.constant 0 : index
    %c0_95 = arith.constant 0 : index
    %c0_96 = arith.constant 0 : index
    %c0_97 = arith.constant 0 : index
    %78 = vector.load %arg7[%c0_94, %c0_95, %c0_96, %c0_97] : memref<3x3x16x16xbf16, #tpu.memory_space<vmem>>, vector<1x1x16x16xbf16>
    %79 = vector.shape_cast %78 : vector<1x1x16x16xbf16> to vector<16x16xbf16>
    %cst_98 = arith.constant dense<0.000000e+00> : vector<16x16x16xf32>
    %80 = tpu.matmul %77, %79, %cst_98 {dimension_numbers = #tpu.dot_dimension_numbers<[2], [0], [0, 1], [1], [0, 0, 0, 1, 1, 1], [], []>} : vector<16x16x16xbf16>, vector<16x16xbf16>, vector<16x16x16xf32> -> vector<16x16x16xf32>
    %c0_99 = arith.constant 0 : index
    %c8_100 = arith.constant 8 : index
    %c0_101 = arith.constant 0 : index
    %81 = vector.load %arg14[%c0_99, %c8_100, %c0_101] : memref<18x25x16xf32, #tpu.memory_space<vmem>>, vector<16x16x16xf32>
    %82 = arith.truncf %81 : vector<16x16x16xf32> to vector<16x16x16xbf16>
    %c0_102 = arith.constant 0 : index
    %c1_103 = arith.constant 1 : index
    %c0_104 = arith.constant 0 : index
    %c0_105 = arith.constant 0 : index
    %83 = vector.load %arg7[%c0_102, %c1_103, %c0_104, %c0_105] : memref<3x3x16x16xbf16, #tpu.memory_space<vmem>>, vector<1x1x16x16xbf16>
    %84 = vector.shape_cast %83 : vector<1x1x16x16xbf16> to vector<16x16xbf16>
    %cst_106 = arith.constant dense<0.000000e+00> : vector<16x16x16xf32>
    %85 = tpu.matmul %82, %84, %cst_106 {dimension_numbers = #tpu.dot_dimension_numbers<[2], [0], [0, 1], [1], [0, 0, 0, 1, 1, 1], [], []>} : vector<16x16x16xbf16>, vector<16x16xbf16>, vector<16x16x16xf32> -> vector<16x16x16xf32>
    %86 = arith.addf %80, %85 : vector<16x16x16xf32>
    %c0_107 = arith.constant 0 : index
    %c9_108 = arith.constant 9 : index
    %c0_109 = arith.constant 0 : index
    %87 = vector.load %arg14[%c0_107, %c9_108, %c0_109] : memref<18x25x16xf32, #tpu.memory_space<vmem>>, vector<16x16x16xf32>
    %88 = arith.truncf %87 : vector<16x16x16xf32> to vector<16x16x16xbf16>
    %c0_110 = arith.constant 0 : index
    %c2_111 = arith.constant 2 : index
    %c0_112 = arith.constant 0 : index
    %c0_113 = arith.constant 0 : index
    %89 = vector.load %arg7[%c0_110, %c2_111, %c0_112, %c0_113] : memref<3x3x16x16xbf16, #tpu.memory_space<vmem>>, vector<1x1x16x16xbf16>
    %90 = vector.shape_cast %89 : vector<1x1x16x16xbf16> to vector<16x16xbf16>
    %cst_114 = arith.constant dense<0.000000e+00> : vector<16x16x16xf32>
    %91 = tpu.matmul %88, %90, %cst_114 {dimension_numbers = #tpu.dot_dimension_numbers<[2], [0], [0, 1], [1], [0, 0, 0, 1, 1, 1], [], []>} : vector<16x16x16xbf16>, vector<16x16xbf16>, vector<16x16x16xf32> -> vector<16x16x16xf32>
    %92 = arith.addf %86, %91 : vector<16x16x16xf32>
    %c1_115 = arith.constant 1 : index
    %c7_116 = arith.constant 7 : index
    %c0_117 = arith.constant 0 : index
    %93 = vector.load %arg14[%c1_115, %c7_116, %c0_117] : memref<18x25x16xf32, #tpu.memory_space<vmem>>, vector<16x16x16xf32>
    %94 = arith.truncf %93 : vector<16x16x16xf32> to vector<16x16x16xbf16>
    %c1_118 = arith.constant 1 : index
    %c0_119 = arith.constant 0 : index
    %c0_120 = arith.constant 0 : index
    %c0_121 = arith.constant 0 : index
    %95 = vector.load %arg7[%c1_118, %c0_119, %c0_120, %c0_121] : memref<3x3x16x16xbf16, #tpu.memory_space<vmem>>, vector<1x1x16x16xbf16>
    %96 = vector.shape_cast %95 : vector<1x1x16x16xbf16> to vector<16x16xbf16>
    %cst_122 = arith.constant dense<0.000000e+00> : vector<16x16x16xf32>
    %97 = tpu.matmul %94, %96, %cst_122 {dimension_numbers = #tpu.dot_dimension_numbers<[2], [0], [0, 1], [1], [0, 0, 0, 1, 1, 1], [], []>} : vector<16x16x16xbf16>, vector<16x16xbf16>, vector<16x16x16xf32> -> vector<16x16x16xf32>
    %98 = arith.addf %92, %97 : vector<16x16x16xf32>
    %c1_123 = arith.constant 1 : index
    %c8_124 = arith.constant 8 : index
    %c0_125 = arith.constant 0 : index
    %99 = vector.load %arg14[%c1_123, %c8_124, %c0_125] : memref<18x25x16xf32, #tpu.memory_space<vmem>>, vector<16x16x16xf32>
    %100 = arith.truncf %99 : vector<16x16x16xf32> to vector<16x16x16xbf16>
    %c1_126 = arith.constant 1 : index
    %c1_127 = arith.constant 1 : index
    %c0_128 = arith.constant 0 : index
    %c0_129 = arith.constant 0 : index
    %101 = vector.load %arg7[%c1_126, %c1_127, %c0_128, %c0_129] : memref<3x3x16x16xbf16, #tpu.memory_space<vmem>>, vector<1x1x16x16xbf16>
    %102 = vector.shape_cast %101 : vector<1x1x16x16xbf16> to vector<16x16xbf16>
    %cst_130 = arith.constant dense<0.000000e+00> : vector<16x16x16xf32>
    %103 = tpu.matmul %100, %102, %cst_130 {dimension_numbers = #tpu.dot_dimension_numbers<[2], [0], [0, 1], [1], [0, 0, 0, 1, 1, 1], [], []>} : vector<16x16x16xbf16>, vector<16x16xbf16>, vector<16x16x16xf32> -> vector<16x16x16xf32>
    %104 = arith.addf %98, %103 : vector<16x16x16xf32>
    %c1_131 = arith.constant 1 : index
    %c9_132 = arith.constant 9 : index
    %c0_133 = arith.constant 0 : index
    %105 = vector.load %arg14[%c1_131, %c9_132, %c0_133] : memref<18x25x16xf32, #tpu.memory_space<vmem>>, vector<16x16x16xf32>
    %106 = arith.truncf %105 : vector<16x16x16xf32> to vector<16x16x16xbf16>
    %c1_134 = arith.constant 1 : index
    %c2_135 = arith.constant 2 : index
    %c0_136 = arith.constant 0 : index
    %c0_137 = arith.constant 0 : index
    %107 = vector.load %arg7[%c1_134, %c2_135, %c0_136, %c0_137] : memref<3x3x16x16xbf16, #tpu.memory_space<vmem>>, vector<1x1x16x16xbf16>
    %108 = vector.shape_cast %107 : vector<1x1x16x16xbf16> to vector<16x16xbf16>
    %cst_138 = arith.constant dense<0.000000e+00> : vector<16x16x16xf32>
    %109 = tpu.matmul %106, %108, %cst_138 {dimension_numbers = #tpu.dot_dimension_numbers<[2], [0], [0, 1], [1], [0, 0, 0, 1, 1, 1], [], []>} : vector<16x16x16xbf16>, vector<16x16xbf16>, vector<16x16x16xf32> -> vector<16x16x16xf32>
    %110 = arith.addf %104, %109 : vector<16x16x16xf32>
    %c2_139 = arith.constant 2 : index
    %c7_140 = arith.constant 7 : index
    %c0_141 = arith.constant 0 : index
    %111 = vector.load %arg14[%c2_139, %c7_140, %c0_141] : memref<18x25x16xf32, #tpu.memory_space<vmem>>, vector<16x16x16xf32>
    %112 = arith.truncf %111 : vector<16x16x16xf32> to vector<16x16x16xbf16>
    %c2_142 = arith.constant 2 : index
    %c0_143 = arith.constant 0 : index
    %c0_144 = arith.constant 0 : index
    %c0_145 = arith.constant 0 : index
    %113 = vector.load %arg7[%c2_142, %c0_143, %c0_144, %c0_145] : memref<3x3x16x16xbf16, #tpu.memory_space<vmem>>, vector<1x1x16x16xbf16>
    %114 = vector.shape_cast %113 : vector<1x1x16x16xbf16> to vector<16x16xbf16>
    %cst_146 = arith.constant dense<0.000000e+00> : vector<16x16x16xf32>
    %115 = tpu.matmul %112, %114, %cst_146 {dimension_numbers = #tpu.dot_dimension_numbers<[2], [0], [0, 1], [1], [0, 0, 0, 1, 1, 1], [], []>} : vector<16x16x16xbf16>, vector<16x16xbf16>, vector<16x16x16xf32> -> vector<16x16x16xf32>
    %116 = arith.addf %110, %115 : vector<16x16x16xf32>
    %c2_147 = arith.constant 2 : index
    %c8_148 = arith.constant 8 : index
    %c0_149 = arith.constant 0 : index
    %117 = vector.load %arg14[%c2_147, %c8_148, %c0_149] : memref<18x25x16xf32, #tpu.memory_space<vmem>>, vector<16x16x16xf32>
    %118 = arith.truncf %117 : vector<16x16x16xf32> to vector<16x16x16xbf16>
    %c2_150 = arith.constant 2 : index
    %c1_151 = arith.constant 1 : index
    %c0_152 = arith.constant 0 : index
    %c0_153 = arith.constant 0 : index
    %119 = vector.load %arg7[%c2_150, %c1_151, %c0_152, %c0_153] : memref<3x3x16x16xbf16, #tpu.memory_space<vmem>>, vector<1x1x16x16xbf16>
    %120 = vector.shape_cast %119 : vector<1x1x16x16xbf16> to vector<16x16xbf16>
    %cst_154 = arith.constant dense<0.000000e+00> : vector<16x16x16xf32>
    %121 = tpu.matmul %118, %120, %cst_154 {dimension_numbers = #tpu.dot_dimension_numbers<[2], [0], [0, 1], [1], [0, 0, 0, 1, 1, 1], [], []>} : vector<16x16x16xbf16>, vector<16x16xbf16>, vector<16x16x16xf32> -> vector<16x16x16xf32>
    %122 = arith.addf %116, %121 : vector<16x16x16xf32>
    %c2_155 = arith.constant 2 : index
    %c9_156 = arith.constant 9 : index
    %c0_157 = arith.constant 0 : index
    %123 = vector.load %arg14[%c2_155, %c9_156, %c0_157] : memref<18x25x16xf32, #tpu.memory_space<vmem>>, vector<16x16x16xf32>
    %124 = arith.truncf %123 : vector<16x16x16xf32> to vector<16x16x16xbf16>
    %c2_158 = arith.constant 2 : index
    %c2_159 = arith.constant 2 : index
    %c0_160 = arith.constant 0 : index
    %c0_161 = arith.constant 0 : index
    %125 = vector.load %arg7[%c2_158, %c2_159, %c0_160, %c0_161] : memref<3x3x16x16xbf16, #tpu.memory_space<vmem>>, vector<1x1x16x16xbf16>
    %126 = vector.shape_cast %125 : vector<1x1x16x16xbf16> to vector<16x16xbf16>
    %cst_162 = arith.constant dense<0.000000e+00> : vector<16x16x16xf32>
    %127 = tpu.matmul %124, %126, %cst_162 {dimension_numbers = #tpu.dot_dimension_numbers<[2], [0], [0, 1], [1], [0, 0, 0, 1, 1, 1], [], []>} : vector<16x16x16xbf16>, vector<16x16xbf16>, vector<16x16x16xf32> -> vector<16x16x16xf32>
    %128 = arith.addf %122, %127 : vector<16x16x16xf32>
    %c0_163 = arith.constant 0 : index
    %c0_164 = arith.constant 0 : index
    %129 = vector.load %arg8[%c0_163, %c0_164] : memref<1x16xf32, #tpu.memory_space<vmem>>, vector<1x16xf32>
    %130 = vector.shape_cast %129 : vector<1x16xf32> to vector<16xf32>
    %131 = vector.shape_cast %130 : vector<16xf32> to vector<1x1x16xf32>
    %132 = vector.broadcast %131 : vector<1x1x16xf32> to vector<16x16x16xf32>
    %133 = arith.addf %128, %132 : vector<16x16x16xf32>
    %134 = arith.addf %133, %72 : vector<16x16x16xf32>
    %cst_165 = arith.constant 0.000000e+00 : f32
    %135 = vector.broadcast %cst_165 : f32 to vector<16x16x16xf32>
    %136 = arith.maximumf %134, %135 : vector<16x16x16xf32>
    %137 = arith.truncf %136 : vector<16x16x16xf32> to vector<16x16x16xbf16>
    %c0_166 = arith.constant 0 : index
    %c0_167 = arith.constant 0 : index
    %138 = vector.load %arg9[%c0_166, %c0_167] : memref<16x16xbf16, #tpu.memory_space<vmem>>, vector<16x16xbf16>
    %cst_168 = arith.constant dense<0.000000e+00> : vector<16x16x16xf32>
    %139 = tpu.matmul %137, %138, %cst_168 {dimension_numbers = #tpu.dot_dimension_numbers<[2], [0], [0, 1], [1], [0, 0, 0, 1, 1, 1], [], []>} : vector<16x16x16xbf16>, vector<16x16xbf16>, vector<16x16x16xf32> -> vector<16x16x16xf32>
    %c0_169 = arith.constant 0 : index
    %c0_170 = arith.constant 0 : index
    %c0_171 = arith.constant 0 : index
    %c0_172 = arith.constant 0 : index
    %140 = vector.load %arg2[%c0_169, %c0_170, %c0_171, %c0_172] : memref<1x16x16x16xbf16, #tpu.memory_space<vmem>>, vector<1x16x16x16xbf16>
    %141 = vector.shape_cast %140 : vector<1x16x16x16xbf16> to vector<16x16x16xbf16>
    %c0_173 = arith.constant 0 : index
    %c0_174 = arith.constant 0 : index
    %142 = vector.load %arg10[%c0_173, %c0_174] : memref<16x16xbf16, #tpu.memory_space<vmem>>, vector<16x16xbf16>
    %cst_175 = arith.constant dense<0.000000e+00> : vector<16x16x16xf32>
    %143 = tpu.matmul %141, %142, %cst_175 {dimension_numbers = #tpu.dot_dimension_numbers<[2], [0], [0, 1], [1], [0, 0, 0, 1, 1, 1], [], []>} : vector<16x16x16xbf16>, vector<16x16xbf16>, vector<16x16x16xf32> -> vector<16x16x16xf32>
    %144 = arith.addf %139, %143 : vector<16x16x16xf32>
    %c0_176 = arith.constant 0 : index
    %c0_177 = arith.constant 0 : index
    %145 = vector.load %arg11[%c0_176, %c0_177] : memref<1x16xf32, #tpu.memory_space<vmem>>, vector<1x16xf32>
    %146 = vector.shape_cast %145 : vector<1x16xf32> to vector<16xf32>
    %147 = vector.shape_cast %146 : vector<16xf32> to vector<1x1x16xf32>
    %148 = vector.broadcast %147 : vector<1x1x16xf32> to vector<16x16x16xf32>
    %149 = arith.addf %144, %148 : vector<16x16x16xf32>
    %150 = vector.shape_cast %149 : vector<16x16x16xf32> to vector<1x16x16x16xf32>
    %151 = arith.truncf %150 : vector<1x16x16x16xf32> to vector<1x16x16x16xbf16>
    %c0_178 = arith.constant 0 : index
    %c0_179 = arith.constant 0 : index
    %c0_180 = arith.constant 0 : index
    %c0_181 = arith.constant 0 : index
    %152 = vector.load %arg12[%c0_178, %c0_179, %c0_180, %c0_181] : memref<1x16x16x16xbf16, #tpu.memory_space<vmem>>, vector<1x16x16x16xbf16>
    tpu.vector_store %arg12[%c0_178, %c0_179, %c0_180, %c0_181], %151 {strides = array<i32>} : memref<1x16x16x16xbf16, #tpu.memory_space<vmem>>, vector<1x16x16x16xbf16>,
    return
  }
  func.func @transform_0(%arg0: i32) -> (i32, i32, i32, i32) {
    %c0_i32 = arith.constant 0 : i32
    %c0_i32_0 = arith.constant 0 : i32
    %c0_i32_1 = arith.constant 0 : i32
    %c0_i32_2 = arith.constant 0 : i32
    return %arg0, %c0_i32, %c0_i32_0, %c0_i32_1 : i32, i32, i32, i32
  }
  func.func @transform_1(%arg0: i32) -> (i32, i32, i32, i32) {
    %c0_i32 = arith.constant 0 : i32
    %c0_i32_0 = arith.constant 0 : i32
    %c0_i32_1 = arith.constant 0 : i32
    %c0_i32_2 = arith.constant 0 : i32
    return %arg0, %c0_i32, %c0_i32_0, %c0_i32_1 : i32, i32, i32, i32
  }
  func.func @transform_2(%arg0: i32) -> (i32, i32, i32, i32) {
    %c0_i32 = arith.constant 0 : i32
    %c0_i32_0 = arith.constant 0 : i32
    %c0_i32_1 = arith.constant 0 : i32
    %c0_i32_2 = arith.constant 0 : i32
    %c0_i32_3 = arith.constant 0 : i32
    return %c0_i32, %c0_i32_0, %c0_i32_1, %c0_i32_2 : i32, i32, i32, i32
  }
  func.func @transform_3(%arg0: i32) -> (i32, i32) {
    %c0_i32 = arith.constant 0 : i32
    %c0_i32_0 = arith.constant 0 : i32
    %c0_i32_1 = arith.constant 0 : i32
    return %c0_i32, %c0_i32_0 : i32, i32
  }
  func.func @transform_4(%arg0: i32) -> (i32, i32) {
    %c0_i32 = arith.constant 0 : i32
    %c0_i32_0 = arith.constant 0 : i32
    %c0_i32_1 = arith.constant 0 : i32
    return %c0_i32, %c0_i32_0 : i32, i32
  }
  func.func @transform_5(%arg0: i32) -> (i32, i32) {
    %c0_i32 = arith.constant 0 : i32
    %c0_i32_0 = arith.constant 0 : i32
    %c0_i32_1 = arith.constant 0 : i32
    return %c0_i32, %c0_i32_0 : i32, i32
  }
  func.func @transform_6(%arg0: i32) -> (i32, i32, i32, i32) {
    %c0_i32 = arith.constant 0 : i32
    %c0_i32_0 = arith.constant 0 : i32
    %c0_i32_1 = arith.constant 0 : i32
    %c0_i32_2 = arith.constant 0 : i32
    %c0_i32_3 = arith.constant 0 : i32
    return %c0_i32, %c0_i32_0, %c0_i32_1, %c0_i32_2 : i32, i32, i32, i32
  }
  func.func @transform_7(%arg0: i32) -> (i32, i32) {
    %c0_i32 = arith.constant 0 : i32
    %c0_i32_0 = arith.constant 0 : i32
    %c0_i32_1 = arith.constant 0 : i32
    return %c0_i32, %c0_i32_0 : i32, i32
  }
  func.func @transform_8(%arg0: i32) -> (i32, i32) {
    %c0_i32 = arith.constant 0 : i32
    %c0_i32_0 = arith.constant 0 : i32
    %c0_i32_1 = arith.constant 0 : i32
    return %c0_i32, %c0_i32_0 : i32, i32
  }
  func.func @transform_9(%arg0: i32) -> (i32, i32) {
    %c0_i32 = arith.constant 0 : i32
    %c0_i32_0 = arith.constant 0 : i32
    %c0_i32_1 = arith.constant 0 : i32
    return %c0_i32, %c0_i32_0 : i32, i32
  }
  func.func @transform_10(%arg0: i32) -> (i32, i32) {
    %c0_i32 = arith.constant 0 : i32
    %c0_i32_0 = arith.constant 0 : i32
    %c0_i32_1 = arith.constant 0 : i32
    return %c0_i32, %c0_i32_0 : i32, i32
  }
  func.func @transform_11(%arg0: i32) -> (i32, i32, i32, i32) {
    %c0_i32 = arith.constant 0 : i32
    %c0_i32_0 = arith.constant 0 : i32
    %c0_i32_1 = arith.constant 0 : i32
    %c0_i32_2 = arith.constant 0 : i32
    return %arg0, %c0_i32, %c0_i32_0, %c0_i32_1 : i32, i32, i32, i32
  }
}

</mosaic_0001>

<bundles_post_ra>
// kernel: tpu_custom_call.1
= control target key start
LH: loop header
LB: loop body
LE: loop exit
PB: predicated region body
PF: predicated region fallthrough
CT: control target
= control target key end

     0   :  { %s11846_s0 = inlined_call_operand.hbm [shape: bf16[2,16,16,32], index: 0, kind: input, shape index: {}]   ;;  %s11847_s1 = inlined_call_operand.hbm [shape: bf16[2,16,16,16], index: 1, kind: input, shape index: {}]   ;;  %s11848_s2 = inlined_call_operand.vmem [shape: bf16[3,3,32,16], index: 2, kind: input, shape index: {}]   ;;  %s11849_s3 = inlined_call_operand.vmem [shape: f32[1,16], index: 3, kind: input, shape index: {}]   ;;  %s11850_s4 = inlined_call_operand.vmem [shape: bf16[32,16], index: 4, kind: input, shape index: {}]   ;;  %s11851_s5 = inlined_call_operand.vmem [shape: f32[1,16], index: 5, kind: input, shape index: {}]   ;;  %s11852_s6 = inlined_call_operand.vmem [shape: bf16[3,3,16,16], index: 6, kind: input, shape index: {}]   ;;  %s11853_s7 = inlined_call_operand.vmem [shape: f32[1,16], index: 7, kind: input, shape index: {}]   ;;  %s11854_s8 = inlined_call_operand.vmem [shape: bf16[16,16], index: 8, kind: input, shape index: {}]   ;;  %s11855_s9 = inlined_call_operand.vmem [shape: bf16[16,16], index: 9, kind: input, shape index: {}]   ;;  %s11856_s10 = inlined_call_operand.vmem [shape: f32[1,16], index: 10, kind: input, shape index: {}]   ;;  %s11857_s11 = inlined_call_operand.hbm [shape: bf16[2,16,16,16], index: 11, kind: output, shape index: {}]  }
   0x1   :  { %11872 = sst [smem:[#allocation20_spill]] %s11846_s0 }
   0x2   :  { %16 = vsyncpa [#allocation5], 0 }
   0x3   :  { %18 = vsyncpa [#allocation5 + $0x1], 0 }
   0x4   :  { %19 = vsyncpa [#allocation8], 0 }
   0x5   :  { %21 = vsyncpa [#allocation8 + $0x1], 0 }
   0x6   :  { %22 = vsyncpa [#allocation6], 0 }
   0x7   :  { %24 = vsyncpa [#allocation6 + $0x1], 0  ;;  %s9993_s17 = smov 0   ;;  %s9995_s18 = smov 0  }
   0x8   :  { %s9997_s19 = smov 0   ;;  %s9999_s20 = smov 0  }
   0x9 LB: > { %11873 = sst [smem:[#allocation13_spill]] %s9911_s17  ;;  %s10014_s21 = sadd.s32 4294967295, %s9923_s20   ;;  %s9923_s20 = sphi %s9999_s20, %s11900_s20   ;;  %s9919_s19 = sphi %s9997_s19, %s11902_s19   ;;  %s9915_s18 = sphi %s9995_s18, %s11904_s18   ;;  %s9911_s17 = sphi %s9993_s17, %s11903_s17  }
   0xa   : > { %11874 = sst [smem:[#allocation14_spill]] %s9919_s19  ;;  %s7390_s22 = sadd.s32 4294967294, %s9923_s20  }
   0xb   : > { %s10018_s23 = sadd.s32 1, %s9923_s20   ;;  %s37_s24 = sadd.s32 1, %s9919_s19 }
   0xc   : > { %11875 = sst [smem:[#allocation15_spill]] %s10018_s23  ;;  %s34_s25 = ssub.s32 %s9923_s20, %s10018_s23 }
   0xd   : > { %p44_p0 = scmp.ne.s32.totalorder %s9919_s19, %s9915_s18  ;;  %p35_p1 = scmp.eq.s32.totalorder %s34_s25, 0 }
   0xe   : > { %p45_p2 = scmp.eq.s32.totalorder %s9923_s20, 0  ;;  %p50_p3 = scmp.ne.s32.totalorder %s9915_s18, %s9911_s17 }
   0xf   : > { %p51_p4 = scmp.eq.s32.totalorder %s10014_s21, 0  ;;  %p289_p7 = scmp.eq.s32.totalorder %s10014_s21, 1 }
  0x10   : > { %s10030_s26 = scalar_select %p35_p1, %s9919_s19, %s37_s24  }
  0x11   : > { %p10032_p5 = por %p45_p2, %p44_p0  ;;  %p10036_p6 = por %p51_p4, %p50_p3 }
  0x12   : > { %11876 = sst [smem:[#allocation16_spill]] %s10030_s26  ;;  %p295_p8 = scmp.eq.s32.totalorder %s7390_s22, 1 }
  0x13   : > { %s11878_s28 = scalar_select %p10036_p6, 1, 0 }
  0x14   : > { %p9688_p10 = scmp.lt.s32.totalorder %s9923_s20, 2  ;;  %p10043_p11 = por %p289_p7, %p44_p0 }
  0x15   : > { %p10047_p12 = por %p295_p8, %p50_p3  ;;  %s10052_s12 = sand.u32 1, %s9919_s19  }
  0x16   : > { %s11879_s29 = scalar_select %p10043_p11, 1, 0 }
  0x17   : > { %s11880_s30 = scalar_select %p10047_p12, 1, 0 }
  0x18   : > { %s11860_s13 = sshll.u32 %s9923_s20, 11  ;;  %s11859_s14 = sshll.u32 %s10052_s12, 7 }
  0x19   : > { %11881 = sst [smem:[#allocation17_spill]] %s11880_s30  ;;  %s11882_s0 = sld [smem:[#allocation20_spill]] }
  0x1a   : > { %s346_s24 = scalar_lea.vmem [#allocation4], %s11859_s14  ;;  %p10067_p13 = pnand %p9688_p10, %p10032_p5 }
  0x1b   : > { %s353_s25 = sshll.u32 %s346_s24, 4  ;;  %s10071_s25 = int_to_ptr.vmem [resolvable:$true] %s353_s25 }
  0x1c   : > { %p9795_p1 = pneg %p10067_p13 }
  0x1f   : > { %s10061_s22 = scalar_lea.hbm %s11882_s0, %s11860_s13  ;;  %s9798_s27 = scalar_lea.hbm %s11882_s0, 4096 }
  0x20   : > { %s9793_s15 = scalar_lea.hbm %s10061_s22, 2048  ;;  %p9799_p4 = scmp.lt.u32.totalorder %s10061_s22, %s11882_s0 }
  0x21   : > { %p9794_p0 = scmp.ne.s32.totalorder %s10061_s22, %s9793_s15  ;;  %p9800_p5 = scmp.lt.u32.totalorder %s9798_s27, %s9793_s15 }
  0x22   : > { %p9802_p8 = scmp.lt.u32.totalorder %s9793_s15, %s10061_s22 }
  0x23   : > { %p9796_p2 = pnand %p9795_p1, %p9794_p0  ;;  %p9801_p7 = por %p9800_p5, %p9799_p4 }
  0x25   : > { %p9797_p3 = pneg %p9796_p2  ;;  %p9803_p10 = por %p9802_p8, %p9801_p7 }
  0x27   : > { %p9804_p9 = pnand %p9803_p10, %p9797_p3 }
  0x29   : > { %9807 = shalt.err (!%p9804_p9)
}
  0x2a   : > { %s9808_s19 = scalar_lea.vmem %s10071_s25, 2048  ;;  %s9925_s16 = smov [#allocation4]  }
  0x2b   : > { %p9809_p0 = scmp.ne.s32.totalorder %s10071_s25, %s9808_s19  ;;  %s9813_s24 = sshll.u32 %s9925_s16, 4  ;;  %s9814_s24 = int_to_ptr.vmem [resolvable:$false] %s9813_s24 }
  0x2c   : > { %s9815_s13 = scalar_lea.vmem %s9814_s24, 4096  ;;  %p9816_p11 = scmp.lt.s32.totalorder %s10071_s25, %s9814_s24 }
  0x2d   : > { %p9811_p2 = pnand %p9809_p0, %p9795_p1  ;;  %p9817_p4 = scmp.lt.s32.totalorder %s9815_s13, %s9808_s19 }
  0x2f   : > { %p9812_p12 = pneg %p9811_p2  ;;  %p9818_p5 = por %p9817_p4, %p9816_p11 }
  0x31   : > { %p9819_p7 = pnand %p9818_p5, %p9812_p12 }
  0x33   : > { %9822 = shalt.err (!%p9819_p7)
}
  0x34   : > { %s11866_s14 = smov 64   ;;  %s9927_s15 = smov 4  }
  0x35   : > { %s11884_s19 = scalar_lea.sflag [#allocation5], %s10052_s12  ;;  %p7399_p9 = scmp.ge.s32.totalorder %s9923_s20, 1 }
  0x36   : > { %9680 = dma.hbm_to_vmem [thread:$0]  (!%p10067_p13), %s10061_s22, 2048, %s10071_s25, %s11884_s19, %s11866_s14, %s11866_s14, %s9927_s15  }
  0x37   : > { %p382_p11 = scmp.lt.s32.totalorder %s9923_s20, 3  ;;  %s11886_s16 = sshll.u32 %s9923_s20, 11 }
  0x38   : > { %s10115_s0 = scalar_lea.hbm %s11847_s1, %s11886_s16  ;;  %s11887_s23 = sshll.u32 %s10052_s12, 7 }
  0x39   : > { %p10106_p12 = pnand %p7399_p9, %p382_p11  ;;  %s367_s30 = scalar_lea.vmem [#allocation7], %s11887_s23 }
  0x3a   : > { %s374_s17 = sshll.u32 %s367_s30, 4  ;;  %s364_s22 = scalar_lea.sflag [#allocation8], %s10052_s12  ;;  %s10119_s17 = int_to_ptr.vmem [resolvable:$true] %s374_s17 }
  0x3b   : > { %s9823_s25 = scalar_lea.hbm %s10115_s0, 2048  ;;  %s9828_s16 = scalar_lea.hbm %s11847_s1, 4096 }
  0x3c   : > { %p9824_p3 = scmp.ne.s32.totalorder %s10115_s0, %s9823_s25  ;;  %p9829_p0 = scmp.lt.u32.totalorder %s10115_s0, %s11847_s1 }
  0x3d   : > { %p9830_p2 = scmp.lt.u32.totalorder %s9828_s16, %s9823_s25  ;;  %p9832_p5 = scmp.lt.u32.totalorder %s9823_s25, %s10115_s0 }
  0x3e   : > { %p9826_p8 = pnand %p9824_p3, %p9795_p1 }
  0x3f   : > { %p9831_p4 = por %p9830_p2, %p9829_p0 }
  0x40   : > { %p9827_p10 = pneg %p9826_p8 }
  0x41   : > { %p9833_p7 = por %p9832_p5, %p9831_p4 }
  0x43   : > { %p9834_p9 = pnand %p9833_p7, %p9827_p10 }
  0x45   : > { %9837 = shalt.err (!%p9834_p9)
}
  0x46   : > { %s9838_s23 = scalar_lea.vmem %s10119_s17, 2048  ;;  %s9928_s30 = smov [#allocation7]  }
  0x47   : > { %p9839_p11 = scmp.ne.s32.totalorder %s10119_s17, %s9838_s23  ;;  %s9843_s19 = sshll.u32 %s9928_s30, 4  ;;  %s9844_s19 = int_to_ptr.vmem [resolvable:$false] %s9843_s19 }
  0x48   : > { %s9845_s14 = scalar_lea.vmem %s9844_s19, 4096  ;;  %p9846_p6 = scmp.lt.s32.totalorder %s10119_s17, %s9844_s19 }
  0x49   : > { %p9841_p3 = pnand %p9839_p11, %p9795_p1  ;;  %p9847_p0 = scmp.lt.s32.totalorder %s9845_s14, %s9838_s23 }
  0x4b   : > { %p9842_p8 = pneg %p9841_p3  ;;  %p9848_p2 = por %p9847_p0, %p9846_p6 }
  0x4d   : > { %p9849_p4 = pnand %p9848_p2, %p9842_p8 }
  0x4f   : > { %9852 = shalt.err (!%p9849_p4)
}
  0x50   : > { %s11888_s25 = smov 64   ;;  %386 = sbr.rel (%p10106_p12) target bundleno = 1877 (0x755), region = 64 }
  0x51   : > { %9683 = dma.hbm_to_vmem [thread:$0]  (!%p10067_p13), %s10115_s0, 2048, %s10119_s17, %s364_s22, %s11888_s25, %s11888_s25, %s9927_s15  }
  0x57   : > { %s10153_s24 = sand.u32 1, %s9915_s18   ;;  %p11889_p6 = scmp.ne.s32.totalorder %s11878_s28, 0 }
  0x58   : > { %s10156_s16 = sshll.u32 %s10153_s24, 7  ;;  %s389_s26 = scalar_lea.sflag [#allocation5], %s10153_s24 }
  0x59   : > { %s10160_s13 = scalar_lea.vmem [#allocation4], %s10156_s16 }
  0x5a   : > { %9898 = dma.done.wait (%p11889_p6), %s389_s26, 2048  }
  0x5b   : > { %9900 = vsyncadd (%p11889_p6), %s389_s26, 4294965248  ;;  %s398_s0 = scalar_lea.sflag [#allocation8], %s10153_s24  ;;  %s10168_s17 = scalar_lea.vmem [#allocation7], %s10156_s16 }
  0x5c   : > { %9902 = dma.done.wait (%p11889_p6), %s398_s0, 2048  }
  0x5d   : > { %9904 = vsyncadd (%p11889_p6), %s398_s0, 4294965248  ;;  %vm478_vm0 = vcmask 261120   ;;  %vm482_vm1 = vcmask 253952   ;;  %v11868_v0 = vmov 0.0   ;;  %v9727_v1 = vld [vmem:[%s11848_s2 + $0x10] sm:$0xff]   ;;  %v9728_v2 = vld [vmem:[%s11848_s2 + $0x18] sm:$0xff]  }
  0x5e   : > { %480 = vst.msk [vmem:[#allocation2 + $0x8] sm:$0xff] %vm478_vm0, %v11868_v0  ;;  %481 = vst.msk [vmem:[#allocation2 + $0x10] sm:$0xff] %vm478_vm0, %v11868_v0  ;;  %8293 = vmatprep.subr.bf16.mxu0 %v9727_v1  ;;  %9027 = vmatprep.subr.bf16.mxu1 %v9727_v1  ;;  %v10327_v6 = vld [vmem:[%s11848_s2] sm:$0xff]   ;;  %v10335_v10 = vld [vmem:[%s10160_s13 + $0x8] sm:$0xff]   ;;  %vm3690_vm2 = vcmask 130048   ;;  %vm3694_vm3 = vcmask 122880  }
  0x5f   : > { %479 = vst.msk [vmem:[#allocation2] sm:$0xff] %vm478_vm0, %v11868_v0  ;;  %484 = vst.msk [vmem:[#allocation2 + $0x20] sm:$0xff] %vm478_vm0, %v11868_v0  ;;  %8294 = vmatpush3.bf16.msra.mxu0 %v9727_v1  ;;  %v10330_v7 = vld [vmem:[%s10160_s13] sm:$0xff]   ;;  %9029 = vmatpush3.bf16.msra.mxu1 %v9727_v1  ;;  %v10338_v11 = vld [vmem:[%s10160_s13 + $0x10] sm:$0xff]   ;;  %v554_v13 = vunpack.c.l.bf16 %v10335_v10  ;;  %v555_v14 = vunpack.c.h.bf16 %v10335_v10  ;;  %vm7247_vm4 = vcmask 125952   ;;  %s11701_s30 = scalar_lea.vmem [#allocation9], %s10156_s16 }
  0x60   : > { %485 = vst.msk [vmem:[#allocation2 + $0x28] sm:$0xff] %vm478_vm0, %v11868_v0  ;;  %486 = vst.msk [vmem:[#allocation2 + $0x30] sm:$0xff] %vm478_vm0, %v11868_v0  ;;  %8295 = vmatprep.subr.bf16.mxu0 %v9728_v2  ;;  %v552_v8 = vunpack.c.l.bf16 %v10330_v7  ;;  %v553_v9 = vunpack.c.h.bf16 %v10330_v7  ;;  %v10341_v12 = vld [vmem:[%s10160_s13 + $0x18] sm:$0xff]   ;;  %9028 = vmatprep.subr.bf16.mxu1 %v9728_v2  ;;  %v556_v15 = vunpack.c.l.bf16 %v10338_v11  ;;  %v557_v16 = vunpack.c.h.bf16 %v10338_v11  ;;  %v10353_v19 = vld [vmem:[%s10160_s13 + $0x20] sm:$0xff]   ;;  %s7925_s16 = sshll.u32 %s10014_s21, 11  ;;  %s7294_s19 = sshll.u32 %s11701_s30, 4  ;;  %s11796_s19 = int_to_ptr.vmem [resolvable:$true] %s7294_s19 }
  0x61   : > { %488 = vst.msk [vmem:[#allocation2 + $0x40] sm:$0xff] %vm478_vm0, %v11868_v0  ;;  %489 = vst.msk [vmem:[#allocation2 + $0x48] sm:$0xff] %vm478_vm0, %v11868_v0  ;;  %v558_v17 = vunpack.c.l.bf16 %v10341_v12  ;;  %v559_v18 = vunpack.c.h.bf16 %v10341_v12  ;;  %v10356_v20 = vld [vmem:[%s10160_s13 + $0x28] sm:$0xff]   ;;  %v10359_v21 = vld [vmem:[%s10160_s13 + $0x30] sm:$0xff]   ;;  %v560_v22 = vunpack.c.l.bf16 %v10353_v19  ;;  %v561_v23 = vunpack.c.h.bf16 %v10353_v19  ;;  %s11794_s26 = scalar_lea.hbm %s11857_s11, %s7925_s16  ;;  %s7281_s21 = scalar_lea.sflag [#allocation6], %s10153_s24 }
  0x62   : > { %490 = vst.msk [vmem:[#allocation2 + $0x50] sm:$0xff] %vm478_vm0, %v11868_v0  ;;  %492 = vst.msk [vmem:[#allocation2 + $0x60] sm:$0xff] %vm478_vm0, %v11868_v0  ;;  %v562_v24 = vunpack.c.l.bf16 %v10356_v20  ;;  %v563_v25 = vunpack.c.h.bf16 %v10356_v20  ;;  %v564_v26 = vunpack.c.l.bf16 %v10359_v21  ;;  %v565_v27 = vunpack.c.h.bf16 %v10359_v21  ;;  %v10375_v28 = vld [vmem:[%s10160_s13 + $0x38] sm:$0xff]   ;;  %v10386_v31 = vld [vmem:[%s10160_s13 + $0x40] sm:$0xff]   ;;  %s9853_s0 = scalar_lea.vmem %s11796_s19, 2048  ;;  %p11895_p1 = scmp.ne.s32.totalorder %s11879_s29, 0 }
  0x63   : > { %493 = vst.msk [vmem:[#allocation2 + $0x68] sm:$0xff] %vm478_vm0, %v11868_v0  ;;  %494 = vst.msk [vmem:[#allocation2 + $0x70] sm:$0xff] %vm478_vm0, %v11868_v0  ;;  %8296 = vmatpush3.bf16.msra.mxu0 %v9728_v2  ;;  %9030 = vmatpush3.bf16.msra.mxu1 %v9728_v2  ;;  %v566_v29 = vunpack.c.l.bf16 %v10375_v28  ;;  %v567_v30 = vunpack.c.h.bf16 %v10375_v28  ;;  %v10389_v32 = vld [vmem:[%s10160_s13 + $0x48] sm:$0xff]   ;;  %v10392_v33 = vld [vmem:[%s10160_s13 + $0x50] sm:$0xff]   ;;  %v568_v34 = vunpack.c.l.bf16 %v10386_v31  ;;  %v569_v35 = vunpack.c.h.bf16 %v10386_v31  ;;  %p9854_p13 = scmp.ne.s32.totalorder %s11796_s19, %s9853_s0  ;;  %s9930_s28 = smov [#allocation9]  }
  0x64   : > { %496 = vst.msk [vmem:[#allocation2 + $0x80] sm:$0xff] %vm478_vm0, %v11868_v0  ;;  %497 = vst.msk [vmem:[#allocation2 + $0x88] sm:$0xff] %vm478_vm0, %v11868_v0  ;;  %8329 = vmatprep.subr.bf16.mxu0 %v10327_v6  ;;  %v570_v36 = vunpack.c.l.bf16 %v10389_v32  ;;  %v571_v37 = vunpack.c.h.bf16 %v10389_v32  ;;  %v10401_v38 = vld [vmem:[%s10160_s13 + $0x58] sm:$0xff]   ;;  %v470_v39 = vld [vmem:[%s10160_s13 + $0x60] sm:$0xff]   ;;  %v572_v41 = vunpack.c.l.bf16 %v10392_v33  ;;  %v573_v42 = vunpack.c.h.bf16 %v10392_v33  ;;  %s9857_s12 = sshll.u32 %s9930_s28, 4  ;;  %s9858_s12 = int_to_ptr.vmem [resolvable:$false] %s9857_s12 }
  0x65   : > { %498 = vst.msk [vmem:[#allocation2 + $0x90] sm:$0xff] %vm478_vm0, %v11868_v0  ;;  %500 = vst.msk [vmem:[#allocation2 + $0xa0] sm:$0xff] %vm478_vm0, %v11868_v0  ;;  %v669_v3 = vld [vmem:[#allocation2 + $0x8] sm:$0xff]  ;;  %v670_v4 = vld [vmem:[#allocation2 + $0x10] sm:$0xff]  ;;  %v574_v43 = vunpack.c.l.bf16 %v10401_v38  ;;  %v575_v44 = vunpack.c.h.bf16 %v10401_v38  ;;  %v576_v48 = vunpack.c.l.bf16 %v470_v39  ;;  %v577_v49 = vunpack.c.h.bf16 %v470_v39  ;;  %p9855_p12 = pnand %p9854_p13, %p11895_p1  ;;  %s9859_s15 = scalar_lea.vmem %s9858_s12, 4096 }
  0x66   : > { %501 = vst.msk [vmem:[#allocation2 + $0xa8] sm:$0xff] %vm478_vm0, %v11868_v0  ;;  %502 = vst.msk [vmem:[#allocation2 + $0xb0] sm:$0xff] %vm478_vm0, %v11868_v0  ;;  %v701_v5 = vpack.c.bf16 %v670_v4, %v669_v3  ;;  %v472_v40 = vld [vmem:[%s10160_s13 + $0x68] sm:$0xff]   ;;  %v474_v45 = vld [vmem:[%s10160_s13 + $0x70] sm:$0xff]   ;;  %p9860_p5 = scmp.lt.s32.totalorder %s11796_s19, %s9858_s12  ;;  %p9861_p7 = scmp.lt.s32.totalorder %s9859_s15, %s9853_s0 }
  0x67   : > { %504 = vst.msk [vmem:[#allocation2 + $0xc0] sm:$0xff] %vm478_vm0, %v11868_v0  ;;  %505 = vst.msk [vmem:[#allocation2 + $0xc8] sm:$0xff] %vm478_vm0, %v11868_v0  ;;  %v578_v50 = vunpack.c.l.bf16 %v472_v40  ;;  %v579_v51 = vunpack.c.h.bf16 %v472_v40  ;;  %v9730_v55 = vld [vmem:[%s11848_s2 + $0x8] sm:$0xff]   ;;  %v580_v56 = vunpack.c.l.bf16 %v474_v45  ;;  %v581_v57 = vunpack.c.h.bf16 %v474_v45  ;;  %v9731_v63 = vld [vmem:[%s11848_s2 + $0x20] sm:$0xff]   ;;  %p9856_p10 = pneg %p9855_p12 }
  0x68   : > { %506 = vst.msk [vmem:[#allocation2 + $0xd0] sm:$0xff] %vm478_vm0, %v11868_v0  ;;  %508 = vst.msk [vmem:[#allocation2 + $0xe0] sm:$0xff] %vm478_vm0, %v11868_v0  ;;  %8297 = vmatprep.mubr.msk.bf16.mxu0 %vm478_vm0, %v701_v5  ;;  %p9862_p9 = por %p9861_p7, %p9860_p5 }
  0x69   : > { %509 = vst.msk [vmem:[#allocation2 + $0xe8] sm:$0xff] %vm478_vm0, %v11868_v0  ;;  %510 = vst.msk [vmem:[#allocation2 + $0xf0] sm:$0xff] %vm478_vm0, %v11868_v0 }
  0x6a   : > { %512 = vst.msk [vmem:[#allocation2 + $0x100] sm:$0xff] %vm478_vm0, %v11868_v0  ;;  %513 = vst.msk [vmem:[#allocation2 + $0x108] sm:$0xff] %vm478_vm0, %v11868_v0  ;;  %p9863_p11 = pnand %p9862_p9, %p9856_p10 }
  0x6b   : > { %514 = vst.msk [vmem:[#allocation2 + $0x110] sm:$0xff] %vm478_vm0, %v11868_v0  ;;  %516 = vst.msk [vmem:[#allocation2 + $0x120] sm:$0xff] %vm478_vm0, %v11868_v0 }
  0x6c   : > { %517 = vst.msk [vmem:[#allocation2 + $0x128] sm:$0xff] %vm478_vm0, %v11868_v0  ;;  %518 = vst.msk [vmem:[#allocation2 + $0x130] sm:$0xff] %vm478_vm0, %v11868_v0 }
  0x6d   : > { %520 = vst.msk [vmem:[#allocation2 + $0x140] sm:$0xff] %vm478_vm0, %v11868_v0  ;;  %521 = vst.msk [vmem:[#allocation2 + $0x148] sm:$0xff] %vm478_vm0, %v11868_v0 }
  0x6e   : > { %522 = vst.msk [vmem:[#allocation2 + $0x150] sm:$0xff] %vm478_vm0, %v11868_v0  ;;  %524 = vst.msk [vmem:[#allocation2 + $0x160] sm:$0xff] %vm478_vm0, %v11868_v0 }
  0x6f   : > { %525 = vst.msk [vmem:[#allocation2 + $0x168] sm:$0xff] %vm478_vm0, %v11868_v0  ;;  %526 = vst.msk [vmem:[#allocation2 + $0x170] sm:$0xff] %vm478_vm0, %v11868_v0 }
  0x70   : > { %528 = vst.msk [vmem:[#allocation2 + $0x180] sm:$0xff] %vm478_vm0, %v11868_v0  ;;  %529 = vst.msk [vmem:[#allocation2 + $0x188] sm:$0xff] %vm478_vm0, %v11868_v0 }
  0x71   : > { %530 = vst.msk [vmem:[#allocation2 + $0x190] sm:$0xff] %vm478_vm0, %v11868_v0  ;;  %532 = vst.msk [vmem:[#allocation2 + $0x1a0] sm:$0xff] %vm478_vm0, %v11868_v0 }
  0x72   : > { %533 = vst.msk [vmem:[#allocation2 + $0x1a8] sm:$0xff] %vm478_vm0, %v11868_v0  ;;  %534 = vst.msk [vmem:[#allocation2 + $0x1b0] sm:$0xff] %vm478_vm0, %v11868_v0 }
  0x73   : > { %536 = vst.msk [vmem:[#allocation2 + $0x1c0] sm:$0xff] %vm478_vm0, %v11868_v0  ;;  %537 = vst.msk [vmem:[#allocation2 + $0x1c8] sm:$0xff] %vm478_vm0, %v11868_v0 }
  0x74   : > { %538 = vst.msk [vmem:[#allocation2 + $0x1d0] sm:$0xff] %vm478_vm0, %v11868_v0  ;;  %540 = vst.msk [vmem:[#allocation2 + $0x1e0] sm:$0xff] %vm478_vm0, %v11868_v0 }
  0x75   : > { %541 = vst.msk [vmem:[#allocation2 + $0x1e8] sm:$0xff] %vm478_vm0, %v11868_v0  ;;  %542 = vst.msk [vmem:[#allocation2 + $0x1f0] sm:$0xff] %vm478_vm0, %v11868_v0 }
  0x76   : > { %544 = vst.msk [vmem:[#allocation2 + $0x200] sm:$0xff] %vm478_vm0, %v11868_v0  ;;  %545 = vst.msk [vmem:[#allocation2 + $0x208] sm:$0xff] %vm478_vm0, %v11868_v0 }
  0x77   : > { %546 = vst.msk [vmem:[#allocation2 + $0x210] sm:$0xff] %vm478_vm0, %v11868_v0  ;;  %548 = vst.msk [vmem:[#allocation2 + $0x220] sm:$0xff] %vm478_vm0, %v11868_v0 }
  0x78   : > { %549 = vst.msk [vmem:[#allocation2 + $0x228] sm:$0xff] %vm478_vm0, %v11868_v0  ;;  %550 = vst.msk [vmem:[#allocation2 + $0x230] sm:$0xff] %vm478_vm0, %v11868_v0 }
  0x79   : > { %483 = vst.msk [vmem:[#allocation2 + $0x18] sm:$0x1] %vm482_vm1, %v11868_v0  ;;  %487 = vst.msk [vmem:[#allocation2 + $0x38] sm:$0x1] %vm482_vm1, %v11868_v0 }
  0x7a   : > { %491 = vst.msk [vmem:[#allocation2 + $0x58] sm:$0x1] %vm482_vm1, %v11868_v0  ;;  %495 = vst.msk [vmem:[#allocation2 + $0x78] sm:$0x1] %vm482_vm1, %v11868_v0 }
  0x7b   : > { %499 = vst.msk [vmem:[#allocation2 + $0x98] sm:$0x1] %vm482_vm1, %v11868_v0  ;;  %503 = vst.msk [vmem:[#allocation2 + $0xb8] sm:$0x1] %vm482_vm1, %v11868_v0 }
  0x7c   : > { %507 = vst.msk [vmem:[#allocation2 + $0xd8] sm:$0x1] %vm482_vm1, %v11868_v0  ;;  %511 = vst.msk [vmem:[#allocation2 + $0xf8] sm:$0x1] %vm482_vm1, %v11868_v0 }
  0x7d   : > { %515 = vst.msk [vmem:[#allocation2 + $0x118] sm:$0x1] %vm482_vm1, %v11868_v0  ;;  %519 = vst.msk [vmem:[#allocation2 + $0x138] sm:$0x1] %vm482_vm1, %v11868_v0 }
  0x7e   : > { %523 = vst.msk [vmem:[#allocation2 + $0x158] sm:$0x1] %vm482_vm1, %v11868_v0  ;;  %527 = vst.msk [vmem:[#allocation2 + $0x178] sm:$0x1] %vm482_vm1, %v11868_v0 }
  0x7f   : > { %531 = vst.msk [vmem:[#allocation2 + $0x198] sm:$0x1] %vm482_vm1, %v11868_v0  ;;  %535 = vst.msk [vmem:[#allocation2 + $0x1b8] sm:$0x1] %vm482_vm1, %v11868_v0 }
  0x80   : > { %539 = vst.msk [vmem:[#allocation2 + $0x1d8] sm:$0x1] %vm482_vm1, %v11868_v0  ;;  %543 = vst.msk [vmem:[#allocation2 + $0x1f8] sm:$0x1] %vm482_vm1, %v11868_v0 }
  0x81   : > { %547 = vst.msk [vmem:[#allocation2 + $0x218] sm:$0x1] %vm482_vm1, %v11868_v0  ;;  %551 = vst.msk [vmem:[#allocation2 + $0x238] sm:$0x1] %vm482_vm1, %v11868_v0 }
  0x82   : > { %585 = vst.msk [vmem:[#allocation2 + $0x28] sm:$0xff] %vm478_vm0, %v552_v8  ;;  %586 = vst.msk [vmem:[#allocation2 + $0x30] sm:$0xff] %vm478_vm0, %v553_v9 }
  0x83   : > { %587 = vst.msk [vmem:[#allocation2 + $0x48] sm:$0xff] %vm478_vm0, %v554_v13  ;;  %588 = vst.msk [vmem:[#allocation2 + $0x50] sm:$0xff] %vm478_vm0, %v555_v14 }
  0x84   : > { %589 = vst.msk [vmem:[#allocation2 + $0x68] sm:$0xff] %vm478_vm0, %v556_v15  ;;  %590 = vst.msk [vmem:[#allocation2 + $0x70] sm:$0xff] %vm478_vm0, %v557_v16  ;;  %v617_v15 = vld [vmem:[#allocation2 + $0x7] sm:$0xff]  ;;  %v618_v16 = vld [vmem:[#allocation2 + $0xf] sm:$0xff] }
  0x85   : > { %591 = vst.msk [vmem:[#allocation2 + $0x88] sm:$0xff] %vm478_vm0, %v558_v17  ;;  %592 = vst.msk [vmem:[#allocation2 + $0x90] sm:$0xff] %vm478_vm0, %v559_v18  ;;  %v649_v18 = vpack.c.bf16 %v618_v16, %v617_v15  ;;  %v10518_v16 = vld [vmem:[%s10160_s13 + $0x78] sm:$0xff]  }
  0x86   : > { %593 = vst.msk [vmem:[#allocation2 + $0xa8] sm:$0xff] %vm478_vm0, %v560_v22  ;;  %594 = vst.msk [vmem:[#allocation2 + $0xb0] sm:$0xff] %vm478_vm0, %v561_v23 }
  0x87   : > { %595 = vst.msk [vmem:[#allocation2 + $0xc8] sm:$0xff] %vm478_vm0, %v562_v24  ;;  %596 = vst.msk [vmem:[#allocation2 + $0xd0] sm:$0xff] %vm478_vm0, %v563_v25 }
  0x88   : > { %597 = vst.msk [vmem:[#allocation2 + $0xe8] sm:$0xff] %vm478_vm0, %v564_v26  ;;  %598 = vst.msk [vmem:[#allocation2 + $0xf0] sm:$0xff] %vm478_vm0, %v565_v27  ;;  %v9732_v27 = vld [vmem:[%s11848_s2 + $0x28] sm:$0xff]  }
  0x89   : > { %599 = vst.msk [vmem:[#allocation2 + $0x108] sm:$0xff] %vm478_vm0, %v566_v29  ;;  %600 = vst.msk [vmem:[#allocation2 + $0x110] sm:$0xff] %vm478_vm0, %v567_v30  ;;  %v671_v46 = vld [vmem:[#allocation2 + $0x28] sm:$0xff]  ;;  %v672_v47 = vld [vmem:[#allocation2 + $0x30] sm:$0xff] }
  0x8a   : > { %11890 = vst [vmem:[#allocation18_spill] sm:$0xff] %v10401_v38  ;;  %601 = vst.msk [vmem:[#allocation2 + $0x128] sm:$0xff] %vm478_vm0, %v568_v34  ;;  %v10414_v52 = vpack.c.bf16 %v672_v47, %v671_v46  ;;  %v673_v53 = vld [vmem:[#allocation2 + $0x48] sm:$0xff]  ;;  %v674_v54 = vld [vmem:[#allocation2 + $0x50] sm:$0xff] }
  0x8b   : > { %602 = vst.msk [vmem:[#allocation2 + $0x130] sm:$0xff] %vm478_vm0, %v569_v35  ;;  %603 = vst.msk [vmem:[#allocation2 + $0x148] sm:$0xff] %vm478_vm0, %v570_v36  ;;  %v10423_v58 = vpack.c.bf16 %v674_v54, %v673_v53  ;;  %v675_v59 = vld [vmem:[#allocation2 + $0x68] sm:$0xff]  ;;  %v676_v60 = vld [vmem:[#allocation2 + $0x70] sm:$0xff] }
  0x8c   : > { %604 = vst.msk [vmem:[#allocation2 + $0x150] sm:$0xff] %vm478_vm0, %v571_v37  ;;  %605 = vst.msk [vmem:[#allocation2 + $0x168] sm:$0xff] %vm478_vm0, %v572_v41  ;;  %8298 = vmatmul.mubr.msk.bf16.vlgmr.msra.gmra.mrb[0].mxu0 %vm478_vm0, %v10414_v52  ;;  %v677_v61 = vld [vmem:[#allocation2 + $0x88] sm:$0xff]  ;;  %v678_v62 = vld [vmem:[#allocation2 + $0x90] sm:$0xff]  ;;  %v10439_v1 = vpack.c.bf16 %v676_v60, %v675_v59 }
  0x8d   : > { %606 = vst.msk [vmem:[#allocation2 + $0x170] sm:$0xff] %vm478_vm0, %v573_v42  ;;  %607 = vst.msk [vmem:[#allocation2 + $0x188] sm:$0xff] %vm478_vm0, %v574_v43  ;;  %8330 = vmatpush3.bf16.msra.mxu0 %v10327_v6  ;;  %8301 = vmatprep.mubr.msk.bf16.mxu0 %vm478_vm0, %v10423_v58  ;;  %v10441_v2 = vpack.c.bf16 %v678_v62, %v677_v61  ;;  %v679_v3 = vld [vmem:[#allocation2 + $0xa8] sm:$0xff]  ;;  %v680_v4 = vld [vmem:[#allocation2 + $0xb0] sm:$0xff] }
  0x8e   : > { %608 = vst.msk [vmem:[#allocation2 + $0x190] sm:$0xff] %vm478_vm0, %v575_v44  ;;  %609 = vst.msk [vmem:[#allocation2 + $0x1a8] sm:$0xff] %vm478_vm0, %v576_v48  ;;  %8331 = vmatprep.subr.bf16.mxu0 %v9730_v55  ;;  %v681_v5 = vld [vmem:[#allocation2 + $0xc8] sm:$0xff]  ;;  %v682_v6 = vld [vmem:[#allocation2 + $0xd0] sm:$0xff]  ;;  %v10447_v8 = vpack.c.bf16 %v680_v4, %v679_v3 }
  0x8f   : > { %610 = vst.msk [vmem:[#allocation2 + $0x1b0] sm:$0xff] %vm478_vm0, %v577_v49  ;;  %611 = vst.msk [vmem:[#allocation2 + $0x1c8] sm:$0xff] %vm478_vm0, %v578_v50  ;;  %v10449_v9 = vpack.c.bf16 %v682_v6, %v681_v5  ;;  %v683_v13 = vld [vmem:[#allocation2 + $0xe8] sm:$0xff]  ;;  %v684_v14 = vld [vmem:[#allocation2 + $0xf0] sm:$0xff] }
  0x90   : > { %612 = vst.msk [vmem:[#allocation2 + $0x1d0] sm:$0xff] %vm478_vm0, %v579_v51  ;;  %613 = vst.msk [vmem:[#allocation2 + $0x1e8] sm:$0xff] %vm478_vm0, %v580_v56  ;;  %v10455_v17 = vpack.c.bf16 %v684_v14, %v683_v13  ;;  %v619_v22 = vld [vmem:[#allocation2 + $0x27] sm:$0xff]  ;;  %v620_v23 = vld [vmem:[#allocation2 + $0x2f] sm:$0xff] }
  0x91   : > { %614 = vst.msk [vmem:[#allocation2 + $0x1f0] sm:$0xff] %vm478_vm0, %v581_v57  ;;  %8332 = vmatpush3.bf16.msra.mxu0 %v9730_v55  ;;  %v621_v24 = vld [vmem:[#allocation2 + $0x47] sm:$0xff]  ;;  %v622_v25 = vld [vmem:[#allocation2 + $0x4f] sm:$0xff]  ;;  %v10460_v26 = vpack.c.bf16 %v620_v23, %v619_v22  ;;  %11891 = vst [vmem:[#allocation19_spill] sm:$0xff] %v10518_v16  ;;  %v582_v22 = vunpack.c.l.bf16 %v10518_v16  ;;  %v583_v23 = vunpack.c.h.bf16 %v10518_v16 }
  0x92   : > { %8365 = vmatprep.subr.bf16.mxu0 %v9731_v63  ;;  %v10465_v29 = vpack.c.bf16 %v622_v25, %v621_v24  ;;  %v623_v30 = vld [vmem:[#allocation2 + $0x67] sm:$0xff]  ;;  %v624_v34 = vld [vmem:[#allocation2 + $0x6f] sm:$0xff] }
  0x93   : > { %v625_v35 = vld [vmem:[#allocation2 + $0x87] sm:$0xff]  ;;  %v626_v36 = vld [vmem:[#allocation2 + $0x8f] sm:$0xff]  ;;  %v10476_v39 = vpack.c.bf16 %v624_v34, %v623_v30  ;;  %615 = vst.msk [vmem:[#allocation2 + $0x208] sm:$0xff] %vm478_vm0, %v582_v22  ;;  %616 = vst.msk [vmem:[#allocation2 + $0x210] sm:$0xff] %vm478_vm0, %v583_v23 }
  0x94   : > { %8302 = vmatmul.mubr.msk.bf16.gmra.mrb[4].mxu0 %vm478_vm0, %v10439_v1  ;;  %v10472_v37 = vld [vmem:[%s11848_s2 + $0x30] sm:$0xff]   ;;  %v10478_v40 = vpack.c.bf16 %v626_v36, %v625_v35  ;;  %v627_v41 = vld [vmem:[#allocation2 + $0xa7] sm:$0xff] }
  0x95   : > { %8305 = vmatprep.mubr.msk.bf16.mxu0 %vm478_vm0, %v10441_v2  ;;  %v628_v42 = vld [vmem:[#allocation2 + $0xaf] sm:$0xff]  ;;  %v629_v43 = vld [vmem:[#allocation2 + $0xc7] sm:$0xff] }
  0x96   : > { %v630_v44 = vld [vmem:[#allocation2 + $0xcf] sm:$0xff]  ;;  %v10485_v45 = vpack.c.bf16 %v628_v42, %v627_v41  ;;  %v631_v47 = vld [vmem:[#allocation2 + $0xe7] sm:$0xff] }
  0x97   : > { %v10487_v46 = vpack.c.bf16 %v630_v44, %v629_v43  ;;  %v632_v48 = vld [vmem:[#allocation2 + $0xef] sm:$0xff]  ;;  %v633_v49 = vld [vmem:[#allocation2 + $0x107] sm:$0xff] }
  0x98   : > { %v634_v50 = vld [vmem:[#allocation2 + $0x10f] sm:$0xff]  ;;  %v10493_v51 = vpack.c.bf16 %v632_v48, %v631_v47  ;;  %v635_v54 = vld [vmem:[#allocation2 + $0x127] sm:$0xff] }
  0x99   : > { %v10495_v53 = vpack.c.bf16 %v634_v50, %v633_v49  ;;  %v636_v55 = vld [vmem:[#allocation2 + $0x12f] sm:$0xff]  ;;  %v637_v56 = vld [vmem:[#allocation2 + $0x147] sm:$0xff]  ;;  %v9734_v49 = vld [vmem:[%s11848_s2 + $0x38] sm:$0xff]  }
  0x9a   : > { %v638_v57 = vld [vmem:[#allocation2 + $0x14f] sm:$0xff]  ;;  %v10501_v59 = vpack.c.bf16 %v636_v55, %v635_v54  ;;  %v639_v61 = vld [vmem:[#allocation2 + $0x167] sm:$0xff] }
  0x9b   : > { %v10503_v60 = vpack.c.bf16 %v638_v57, %v637_v56  ;;  %v640_v62 = vld [vmem:[#allocation2 + $0x16f] sm:$0xff]  ;;  %v643_v6 = vld [vmem:[#allocation2 + $0x1a7] sm:$0xff] }
  0x9c   : > { %8306 = vmatmul.mubr.msk.bf16.gmra.mrb[8].mxu0 %vm478_vm0, %v10447_v8  ;;  %v642_v3 = vld [vmem:[#allocation2 + $0x18f] sm:$0xff]  ;;  %v10509_v4 = vpack.c.bf16 %v640_v62, %v639_v61  ;;  %v645_v14 = vld [vmem:[#allocation2 + $0x1c7] sm:$0xff] }
  0x9d   : > { %8309 = vmatprep.mubr.msk.bf16.mxu0 %vm478_vm0, %v10449_v9  ;;  %v644_v13 = vld [vmem:[#allocation2 + $0x1af] sm:$0xff]  ;;  %v647_v25 = vld [vmem:[#allocation2 + $0x1e7] sm:$0xff] }
  0x9e   : > { %v646_v15 = vld [vmem:[#allocation2 + $0x1cf] sm:$0xff]  ;;  %v10552_v57 = vld [vmem:[%s11848_s2 + $0x40] sm:$0xff]  }
  0x9f   : > { %v10524_v24 = vpack.c.bf16 %v646_v15, %v645_v14  ;;  %v1164_v30 = vld [vmem:[#allocation2 + $0x9] sm:$0xff]  ;;  %v1165_v34 = vld [vmem:[#allocation2 + $0x11] sm:$0xff] }
  0xa0   : > { %v1196_v36 = vpack.c.bf16 %v1165_v34, %v1164_v30  ;;  %v1166_v41 = vld [vmem:[#allocation2 + $0x29] sm:$0xff]  ;;  %v1167_v42 = vld [vmem:[#allocation2 + $0x31] sm:$0xff] }
  0xa1   : > { %v1168_v43 = vld [vmem:[#allocation2 + $0x49] sm:$0xff]  ;;  %v1169_v44 = vld [vmem:[#allocation2 + $0x51] sm:$0xff]  ;;  %v10537_v47 = vpack.c.bf16 %v1167_v42, %v1166_v41 }
  0xa2   : > { %v10539_v48 = vpack.c.bf16 %v1169_v44, %v1168_v43  ;;  %v1170_v50 = vld [vmem:[#allocation2 + $0x69] sm:$0xff]  ;;  %v1171_v54 = vld [vmem:[#allocation2 + $0x71] sm:$0xff] }
  0xa3   : > { %v1172_v55 = vld [vmem:[#allocation2 + $0x89] sm:$0xff]  ;;  %v1173_v56 = vld [vmem:[#allocation2 + $0x91] sm:$0xff]  ;;  %v10554_v61 = vpack.c.bf16 %v1171_v54, %v1170_v50 }
  0xa4   : > { %8310 = vmatmul.mubr.msk.bf16.gmra.mrb[12].mxu0 %vm478_vm0, %v10455_v17  ;;  %v10556_v62 = vpack.c.bf16 %v1173_v56, %v1172_v55  ;;  %v1178_v15 = vld [vmem:[#allocation2 + $0xe9] sm:$0xff]  ;;  %v1179_v22 = vld [vmem:[#allocation2 + $0xf1] sm:$0xff] }
  0xa5   : > { %8333 = vmatprep.mubr.msk.bf16.mxu0 %vm478_vm0, %v649_v18  ;;  %v10520_v18 = vpack.c.bf16 %v644_v13, %v643_v6  ;;  %v1177_v6 = vld [vmem:[#allocation2 + $0xd1] sm:$0xff]  ;;  %v1790_v23 = vld [vmem:[#allocation2 + $0x108] sm:$0xff] }
  0xa6   : > { %v1181_v30 = vld [vmem:[#allocation2 + $0x111] sm:$0xff]  ;;  %v1182_v42 = vld [vmem:[#allocation2 + $0x129] sm:$0xff] }
  0xa7   : > { %v1792_v43 = vld [vmem:[#allocation2 + $0x128] sm:$0xff]  ;;  %v1793_v44 = vld [vmem:[#allocation2 + $0x130] sm:$0xff] }
  0xa8   : > { %v10583_v50 = vpack.c.bf16 %v1793_v44, %v1792_v43  ;;  %v1794_v54 = vld [vmem:[#allocation2 + $0x148] sm:$0xff]  ;;  %v1795_v55 = vld [vmem:[#allocation2 + $0x150] sm:$0xff] }
  0xa9   : > { %v1184_v56 = vld [vmem:[#allocation2 + $0x149] sm:$0xff]  ;;  %v1189_v44 = vld [vmem:[#allocation2 + $0x191] sm:$0xff] }
  0xaa   : > { %v1188_v43 = vld [vmem:[#allocation2 + $0x189] sm:$0xff]  ;;  %v1193_v0 = vld [vmem:[#allocation2 + $0x1d1] sm:$0xff] }
  0xac   : > { %8334 = vmatmul.mubr.msk.bf16.vlgmr.msra.gmra.mrb[0].mxu0 %vm478_vm0, %v10460_v26 }
  0xad   : > { %8366 = vmatpush3.bf16.msra.mxu0 %v9731_v63  ;;  %8337 = vmatprep.mubr.msk.bf16.mxu0 %vm478_vm0, %v10465_v29  ;;  %v641_v63 = vld [vmem:[#allocation2 + $0x187] sm:$0xff] }
  0xae   : > { %8367 = vmatprep.subr.bf16.mxu0 %v9732_v27  ;;  %v10511_v5 = vpack.c.bf16 %v642_v3, %v641_v63  ;;  %v1175_v63 = vld [vmem:[#allocation2 + $0xb1] sm:$0xff]  ;;  %v1176_v3 = vld [vmem:[#allocation2 + $0xc9] sm:$0xff] }
  0xaf   : > { %v10565_v14 = vpack.c.bf16 %v1177_v6, %v1176_v3 }
  0xb1   : > { %8368 = vmatpush3.bf16.msra.mxu0 %v9732_v27  ;;  %v648_v27 = vld [vmem:[#allocation2 + $0x1ef] sm:$0xff] }
  0xb2   : > { %8401 = vmatprep.subr.bf16.mxu0 %v10472_v37  ;;  %v10532_v35 = vpack.c.bf16 %v648_v27, %v647_v25  ;;  %v1791_v25 = vld [vmem:[#allocation2 + $0x110] sm:$0xff] }
  0xb3   : > { %v1180_v27 = vld [vmem:[#allocation2 + $0x109] sm:$0xff]  ;;  %v10571_v34 = vpack.c.bf16 %v1791_v25, %v1790_v23  ;;  %v1187_v25 = vld [vmem:[#allocation2 + $0x171] sm:$0xff] }
  0xb4   : > { %8338 = vmatmul.mubr.msk.bf16.gmra.mrb[4].mxu0 %vm478_vm0, %v10476_v39  ;;  %v10577_v41 = vpack.c.bf16 %v1181_v30, %v1180_v27  ;;  %v1797_v23 = vld [vmem:[#allocation2 + $0x170] sm:$0xff]  ;;  %v1798_v30 = vld [vmem:[#allocation2 + $0x188] sm:$0xff] }
  0xb5   : > { %8341 = vmatprep.mubr.msk.bf16.mxu0 %vm478_vm0, %v10478_v40  ;;  %8313 = vmatprep.mubr.msk.bf16.mxu1 %vm478_vm0, %v10571_v34 }
  0xb6   : > { %8314 = vmatmul.mubr.msk.bf16.vlgmr.msra.gmra.mrb[0].mxu1 %vm478_vm0, %v10583_v50 }
  0xbc   : > { %8342 = vmatmul.mubr.msk.bf16.gmra.mrb[8].mxu0 %vm478_vm0, %v10485_v45 }
  0xbd   : > { %8345 = vmatprep.mubr.msk.bf16.mxu0 %vm478_vm0, %v10487_v46 }
  0xc4   : > { %8346 = vmatmul.mubr.msk.bf16.gmra.mrb[12].mxu0 %vm478_vm0, %v10493_v51 }
  0xc5   : > { %8349 = vmatprep.mubr.msk.bf16.mxu0 %vm478_vm0, %v10495_v53 }
  0xcc   : > { %8350 = vmatmul.mubr.msk.bf16.gmra.mrb[16].mxu0 %vm478_vm0, %v10501_v59 }
  0xcd   : > { %8353 = vmatprep.mubr.msk.bf16.mxu0 %vm478_vm0, %v10503_v60 }
  0xd4   : > { %8354 = vmatmul.mubr.msk.bf16.gmra.mrb[20].mxu0 %vm478_vm0, %v10509_v4 }
  0xd5   : > { %8357 = vmatprep.mubr.msk.bf16.mxu0 %vm478_vm0, %v10511_v5 }
  0xdc   : > { %8358 = vmatmul.mubr.msk.bf16.gmra.mrb[24].mxu0 %vm478_vm0, %v10520_v18 }
  0xdd   : > { %8361 = vmatprep.mubr.msk.bf16.mxu0 %vm478_vm0, %v10524_v24 }
  0xe4   : > { %8362 = vmatmul.mubr.msk.bf16.gmra.mrb[28].mxu0 %vm478_vm0, %v10532_v35 }
  0xe5   : > { %8369 = vmatprep.mubr.msk.bf16.mxu0 %vm478_vm0, %v1196_v36  ;;  %v10573_v36 = vpack.c.bf16 %v1179_v22, %v1178_v15  ;;  %v1186_v15 = vld [vmem:[#allocation2 + $0x169] sm:$0xff] }
  0xe6   : > { %v1796_v22 = vld [vmem:[#allocation2 + $0x168] sm:$0xff] }
  0xe7   : > { %v10599_v27 = vpack.c.bf16 %v1797_v23, %v1796_v22  ;;  %v1801_v22 = vld [vmem:[#allocation2 + $0x1b0] sm:$0xff] }
  0xe8   : > { %v1191_v23 = vld [vmem:[#allocation2 + $0x1b1] sm:$0xff] }
  0xec   : > { %8370 = vmatmul.mubr.msk.bf16.vlgmr.msra.gmra.mrb[0].mxu0 %vm478_vm0, %v10537_v47 }
  0xed   : > { %8402 = vmatpush3.bf16.msra.mxu0 %v10472_v37  ;;  %8373 = vmatprep.mubr.msk.bf16.mxu0 %vm478_vm0, %v10539_v48  ;;  %v1174_v37 = vld [vmem:[#allocation2 + $0xa9] sm:$0xff] }
  0xee   : > { %8403 = vmatprep.subr.bf16.mxu0 %v9734_v49  ;;  %v10563_v13 = vpack.c.bf16 %v1175_v63, %v1174_v37  ;;  %v1185_v37 = vld [vmem:[#allocation2 + $0x151] sm:$0xff]  ;;  %v10585_v63 = vpack.c.bf16 %v1795_v55, %v1794_v54  ;;  %v10605_v54 = vpack.c.bf16 %v1187_v25, %v1186_v15  ;;  %v10609_v55 = vpack.c.bf16 %v1189_v44, %v1188_v43  ;;  %v1192_v25 = vld [vmem:[#allocation2 + $0x1c9] sm:$0xff] }
  0xef   : > { %v10593_v6 = vpack.c.bf16 %v1185_v37, %v1184_v56  ;;  %v1190_v56 = vld [vmem:[#allocation2 + $0x1a9] sm:$0xff]  ;;  %v10625_v44 = vpack.c.bf16 %v1193_v0, %v1192_v25 }
  0xf0   : > { %8317 = vmatprep.mubr.msk.bf16.mxu1 %vm478_vm0, %v10585_v63  ;;  %v1800_v37 = vld [vmem:[#allocation2 + $0x1a8] sm:$0xff]  ;;  %v1803_v15 = vld [vmem:[#allocation2 + $0x1d0] sm:$0xff]  ;;  %v10621_v43 = vpack.c.bf16 %v1191_v23, %v1190_v56 }
  0xf1   : > { %8404 = vmatpush3.bf16.msra.mxu0 %v9734_v49  ;;  %v1183_v49 = vld [vmem:[#allocation2 + $0x131] sm:$0xff]  ;;  %8318 = vmatmul.mubr.msk.bf16.gmra.mrb[4].mxu1 %vm478_vm0, %v10599_v27  ;;  %v9736_v0 = vld [vmem:[%s11848_s2 + $0x48] sm:$0xff]  }
  0xf2   : > { %8437 = vmatprep.subr.bf16.mxu0 %v10552_v57  ;;  %v10589_v3 = vpack.c.bf16 %v1183_v49, %v1182_v42  ;;  %v1799_v42 = vld [vmem:[#allocation2 + $0x190] sm:$0xff] }
  0xf3   : > { %v10601_v49 = vpack.c.bf16 %v1799_v42, %v1798_v30  ;;  %v10615_v30 = vpack.c.bf16 %v1801_v22, %v1800_v37  ;;  %v1802_v42 = vld [vmem:[#allocation2 + $0x1c8] sm:$0xff]  ;;  %v1805_v22 = vld [vmem:[#allocation2 + $0x1f0] sm:$0xff] }
  0xf4   : > { %8374 = vmatmul.mubr.msk.bf16.gmra.mrb[4].mxu0 %vm478_vm0, %v10554_v61  ;;  %v10617_v16 = vpack.c.bf16 %v1803_v15, %v1802_v42  ;;  %v1804_v37 = vld [vmem:[#allocation2 + $0x1e8] sm:$0xff]  ;;  %v1195_v15 = vld [vmem:[#allocation2 + $0x1f1] sm:$0xff] }
  0xf5   : > { %8377 = vmatprep.mubr.msk.bf16.mxu0 %vm478_vm0, %v10556_v62  ;;  %8321 = vmatprep.mubr.msk.bf16.mxu1 %vm478_vm0, %v10601_v49  ;;  %v1194_v42 = vld [vmem:[#allocation2 + $0x1e9] sm:$0xff]  ;;  %v10631_v38 = vpack.c.bf16 %v1805_v22, %v1804_v37  ;;  %v9738_v37 = vld [vmem:[%s11848_s2 + $0x58] sm:$0xff]   ;;  %v9739_v22 = vld [vmem:[%s11848_s2 + $0x60] sm:$0xff]  }
  0xf6   : > { %v10635_v56 = vpack.c.bf16 %v1195_v15, %v1194_v42  ;;  %v9737_v23 = vld [vmem:[%s11848_s2 + $0x50] sm:$0xff]   ;;  %v9742_v42 = vld [vmem:[%s11848_s2 + $0x78] sm:$0xff]   ;;  %v9743_v15 = vld [vmem:[%s11848_s2 + $0x80] sm:$0xff]  }
  0xf9   : > { %8322 = vmatmul.mubr.msk.bf16.gmra.mrb[8].mxu1 %vm478_vm0, %v10615_v30 }
  0xfa   : > { %8325 = vmatprep.mubr.msk.bf16.mxu1 %vm478_vm0, %v10617_v16 }
  0xfc   : > { %8378 = vmatmul.mubr.msk.bf16.gmra.mrb[8].mxu0 %vm478_vm0, %v10563_v13 }
  0xfd   : > { %8381 = vmatprep.mubr.msk.bf16.mxu0 %vm478_vm0, %v10565_v14 }
 0x101   : > { %8326 = vmatmul.mubr.msk.bf16.gmra.mrb[12].mxu1 %vm478_vm0, %v10631_v38 }
 0x102   : > { %8621 = vmatprep.mubr.msk.bf16.mxu1 %vm478_vm0, %v10330_v7  ;;  %v2701_v7 = vld [vmem:[#allocation2 + $0xa8] sm:$0xff] }
 0x104   : > { %8382 = vmatmul.mubr.msk.bf16.gmra.mrb[12].mxu0 %vm478_vm0, %v10573_v36 }
 0x105   : > { %8385 = vmatprep.mubr.msk.bf16.mxu0 %vm478_vm0, %v10577_v41 }
 0x10c   : > { %8386 = vmatmul.mubr.msk.bf16.gmra.mrb[16].mxu0 %vm478_vm0, %v10589_v3 }
 0x10d   : > { %8389 = vmatprep.mubr.msk.bf16.mxu0 %vm478_vm0, %v10593_v6 }
 0x114   : > { %8390 = vmatmul.mubr.msk.bf16.gmra.mrb[20].mxu0 %vm478_vm0, %v10605_v54 }
 0x115   : > { %8393 = vmatprep.mubr.msk.bf16.mxu0 %vm478_vm0, %v10609_v55 }
 0x11c   : > { %8394 = vmatmul.mubr.msk.bf16.gmra.mrb[24].mxu0 %vm478_vm0, %v10621_v43 }
 0x11d   : > { %8397 = vmatprep.mubr.msk.bf16.mxu0 %vm478_vm0, %v10625_v44 }
 0x124   : > { %8398 = vmatmul.mubr.msk.bf16.gmra.mrb[28].mxu0 %vm478_vm0, %v10635_v56 }
 0x125   : > { %8405 = vmatprep.mubr.msk.bf16.mxu0 %vm478_vm0, %v10460_v26  ;;  %v1500_v26 = vld [vmem:[#allocation2 + $0x207] sm:$0xff] }
 0x12c   : > { %8406 = vmatmul.mubr.msk.bf16.vlgmr.msra.gmra.mrb[0].mxu0 %vm478_vm0, %v10465_v29 }
 0x12d   : > { %8438 = vmatpush3.bf16.msra.mxu0 %v10552_v57  ;;  %8409 = vmatprep.mubr.msk.bf16.mxu0 %vm478_vm0, %v10476_v39  ;;  %v1501_v57 = vld [vmem:[#allocation2 + $0x20f] sm:$0xff] }
 0x12e   : > { %8439 = vmatprep.subr.bf16.mxu0 %v9736_v0  ;;  %v10676_v25 = vpack.c.bf16 %v1501_v57, %v1500_v26  ;;  %v2702_v26 = vld [vmem:[#allocation2 + $0xb0] sm:$0xff]  ;;  %v2703_v57 = vld [vmem:[#allocation2 + $0xc8] sm:$0xff] }
 0x131   : > { %8440 = vmatpush3.bf16.msra.mxu0 %v9736_v0 }
 0x132   : > { %8473 = vmatprep.subr.bf16.mxu0 %v9737_v23 }
 0x134   : > { %8410 = vmatmul.mubr.msk.bf16.gmra.mrb[4].mxu0 %vm478_vm0, %v10478_v40 }
 0x135   : > { %8413 = vmatprep.mubr.msk.bf16.mxu0 %vm478_vm0, %v10485_v45 }
 0x13c   : > { %8414 = vmatmul.mubr.msk.bf16.gmra.mrb[8].mxu0 %vm478_vm0, %v10487_v46 }
 0x13d   : > { %8417 = vmatprep.mubr.msk.bf16.mxu0 %vm478_vm0, %v10493_v51 }
 0x144   : > { %8418 = vmatmul.mubr.msk.bf16.gmra.mrb[12].mxu0 %vm478_vm0, %v10495_v53 }
 0x145   : > { %8421 = vmatprep.mubr.msk.bf16.mxu0 %vm478_vm0, %v10501_v59 }
 0x14c   : > { %8422 = vmatmul.mubr.msk.bf16.gmra.mrb[16].mxu0 %vm478_vm0, %v10503_v60 }
 0x14d   : > { %8425 = vmatprep.mubr.msk.bf16.mxu0 %vm478_vm0, %v10509_v4 }
 0x154   : > { %8426 = vmatmul.mubr.msk.bf16.gmra.mrb[20].mxu0 %vm478_vm0, %v10511_v5 }
 0x155   : > { %8429 = vmatprep.mubr.msk.bf16.mxu0 %vm478_vm0, %v10520_v18 }
 0x15c   : > { %8430 = vmatmul.mubr.msk.bf16.gmra.mrb[24].mxu0 %vm478_vm0, %v10524_v24 }
 0x15d   : > { %8433 = vmatprep.mubr.msk.bf16.mxu0 %vm478_vm0, %v10532_v35 }
 0x164   : > { %8434 = vmatmul.mubr.msk.bf16.gmra.mrb[28].mxu0 %vm478_vm0, %v10676_v25 }
 0x165   : > { %8441 = vmatprep.mubr.msk.bf16.mxu0 %vm478_vm0, %v10414_v52  ;;  %v1806_v52 = vld [vmem:[#allocation2 + $0x208] sm:$0xff] }
 0x16c   : > { %8442 = vmatmul.mubr.msk.bf16.vlgmr.msra.gmra.mrb[0].mxu0 %vm478_vm0, %v10423_v58  ;;  %v1807_v58 = vld [vmem:[#allocation2 + $0x210] sm:$0xff] }
 0x16d   : > { %8474 = vmatpush3.bf16.msra.mxu0 %v9737_v23  ;;  %8445 = vmatprep.mubr.msk.bf16.mxu0 %vm478_vm0, %v10439_v1  ;;  %v10716_v1 = vpack.c.bf16 %v1807_v58, %v1806_v52  ;;  %v9744_v23 = vld [vmem:[%s11848_s2 + $0x88] sm:$0xff]   ;;  %v2706_v58 = vld [vmem:[#allocation2 + $0xf0] sm:$0xff] }
 0x16e   : > { %8475 = vmatprep.subr.bf16.mxu0 %v9738_v37  ;;  %v2705_v52 = vld [vmem:[#allocation2 + $0xe8] sm:$0xff] }
 0x171   : > { %8476 = vmatpush3.bf16.msra.mxu0 %v9738_v37  ;;  %v2730_v37 = vpack.c.bf16 %v2702_v26, %v2701_v7 }
 0x172   : > { %8509 = vmatprep.subr.bf16.mxu0 %v9739_v22 }
 0x174   : > { %8446 = vmatmul.mubr.msk.bf16.gmra.mrb[4].mxu0 %vm478_vm0, %v10441_v2  ;;  %v9740_v2 = vld [vmem:[%s11848_s2 + $0x68] sm:$0xff]  }
 0x175   : > { %8449 = vmatprep.mubr.msk.bf16.mxu0 %vm478_vm0, %v10447_v8  ;;  %v9741_v8 = vld [vmem:[%s11848_s2 + $0x70] sm:$0xff]  }
 0x17c   : > { %8450 = vmatmul.mubr.msk.bf16.gmra.mrb[8].mxu0 %vm478_vm0, %v10449_v9  ;;  %v2112_v9 = vld [vmem:[#allocation2 + $0x209] sm:$0xff] }
 0x17d   : > { %8453 = vmatprep.mubr.msk.bf16.mxu0 %vm478_vm0, %v10455_v17  ;;  %v2113_v17 = vld [vmem:[#allocation2 + $0x211] sm:$0xff] }
 0x184   : > { %8454 = vmatmul.mubr.msk.bf16.gmra.mrb[12].mxu0 %vm478_vm0, %v10571_v34 }
 0x185   : > { %8457 = vmatprep.mubr.msk.bf16.mxu0 %vm478_vm0, %v10583_v50 }
 0x18c   : > { %8458 = vmatmul.mubr.msk.bf16.gmra.mrb[16].mxu0 %vm478_vm0, %v10585_v63 }
 0x18d   : > { %8461 = vmatprep.mubr.msk.bf16.mxu0 %vm478_vm0, %v10599_v27 }
 0x194   : > { %8462 = vmatmul.mubr.msk.bf16.gmra.mrb[20].mxu0 %vm478_vm0, %v10601_v49 }
 0x195   : > { %8465 = vmatprep.mubr.msk.bf16.mxu0 %vm478_vm0, %v10615_v30 }
 0x19c   : > { %8466 = vmatmul.mubr.msk.bf16.gmra.mrb[24].mxu0 %vm478_vm0, %v10617_v16 }
 0x19d   : > { %8469 = vmatprep.mubr.msk.bf16.mxu0 %vm478_vm0, %v10631_v38 }
 0x1a4   : > { %8470 = vmatmul.mubr.msk.bf16.gmra.mrb[28].mxu0 %vm478_vm0, %v10716_v1 }
 0x1a5   : > { %8477 = vmatprep.mubr.msk.bf16.mxu0 %vm478_vm0, %v10537_v47  ;;  %v10756_v47 = vpack.c.bf16 %v2113_v17, %v2112_v9 }
 0x1ac   : > { %8478 = vmatmul.mubr.msk.bf16.vlgmr.msra.gmra.mrb[0].mxu0 %vm478_vm0, %v10539_v48 }
 0x1ad   : > { %8510 = vmatpush3.bf16.msra.mxu0 %v9739_v22  ;;  %8481 = vmatprep.mubr.msk.bf16.mxu0 %vm478_vm0, %v10554_v61 }
 0x1ae   : > { %8511 = vmatprep.subr.bf16.mxu0 %v9740_v2 }
 0x1b1   : > { %8512 = vmatpush3.bf16.msra.mxu0 %v9740_v2  ;;  %v11083_v2 = vld [vmem:[%s11849_s3] ss:$0 sm:$0xff] }
 0x1b2   : > { %8545 = vmatprep.subr.bf16.mxu0 %v9741_v8 }
 0x1b4   : > { %8482 = vmatmul.mubr.msk.bf16.gmra.mrb[4].mxu0 %vm478_vm0, %v10556_v62 }
 0x1b5   : > { %8485 = vmatprep.mubr.msk.bf16.mxu0 %vm478_vm0, %v10563_v13 }
 0x1bc   : > { %8486 = vmatmul.mubr.msk.bf16.gmra.mrb[8].mxu0 %vm478_vm0, %v10565_v14 }
 0x1bd   : > { %8489 = vmatprep.mubr.msk.bf16.mxu0 %vm478_vm0, %v10573_v36 }
 0x1c4   : > { %8490 = vmatmul.mubr.msk.bf16.gmra.mrb[12].mxu0 %vm478_vm0, %v10577_v41 }
 0x1c5   : > { %8493 = vmatprep.mubr.msk.bf16.mxu0 %vm478_vm0, %v10589_v3 }
 0x1cc   : > { %8494 = vmatmul.mubr.msk.bf16.gmra.mrb[16].mxu0 %vm478_vm0, %v10593_v6 }
 0x1cd   : > { %8497 = vmatprep.mubr.msk.bf16.mxu0 %vm478_vm0, %v10605_v54 }
 0x1d4   : > { %8498 = vmatmul.mubr.msk.bf16.gmra.mrb[20].mxu0 %vm478_vm0, %v10609_v55 }
 0x1d5   : > { %8501 = vmatprep.mubr.msk.bf16.mxu0 %vm478_vm0, %v10621_v43 }
 0x1dc   : > { %8502 = vmatmul.mubr.msk.bf16.gmra.mrb[24].mxu0 %vm478_vm0, %v10625_v44 }
 0x1dd   : > { %8505 = vmatprep.mubr.msk.bf16.mxu0 %vm478_vm0, %v10635_v56 }
 0x1e4   : > { %8506 = vmatmul.mubr.msk.bf16.gmra.mrb[28].mxu0 %vm478_vm0, %v10756_v47 }
 0x1e5   : > { %8513 = vmatprep.mubr.msk.bf16.mxu0 %vm478_vm0, %v10465_v29  ;;  %v2419_v29 = vld [vmem:[#allocation2 + $0x227] sm:$0xff] }
 0x1ec   : > { %8514 = vmatmul.mubr.msk.bf16.vlgmr.msra.gmra.mrb[0].mxu0 %vm478_vm0, %v10476_v39  ;;  %v2420_v39 = vld [vmem:[#allocation2 + $0x22f] sm:$0xff] }
 0x1ed   : > { %8546 = vmatpush3.bf16.msra.mxu0 %v9741_v8  ;;  %8517 = vmatprep.mubr.msk.bf16.mxu0 %vm478_vm0, %v10478_v40  ;;  %v2695_v40 = vld [vmem:[#allocation2 + $0x48] sm:$0xff] }
 0x1ee   : > { %8547 = vmatprep.subr.bf16.mxu0 %v9742_v42 }
 0x1f1   : > { %8548 = vmatpush3.bf16.msra.mxu0 %v9742_v42 }
 0x1f2   : > { %8581 = vmatprep.subr.bf16.mxu0 %v9743_v15 }
 0x1f4   : > { %8518 = vmatmul.mubr.msk.bf16.gmra.mrb[4].mxu0 %vm478_vm0, %v10485_v45  ;;  %v2696_v45 = vld [vmem:[#allocation2 + $0x50] sm:$0xff] }
 0x1f5   : > { %8521 = vmatprep.mubr.msk.bf16.mxu0 %vm478_vm0, %v10487_v46  ;;  %v2436_v46 = vpack.c.bf16 %v2420_v39, %v2419_v29 }
 0x1fc   : > { %8522 = vmatmul.mubr.msk.bf16.gmra.mrb[8].mxu0 %vm478_vm0, %v10493_v51  ;;  %v2727_v51 = vpack.c.bf16 %v2696_v45, %v2695_v40 }
 0x1fd   : > { %8525 = vmatprep.mubr.msk.bf16.mxu0 %vm478_vm0, %v10495_v53  ;;  %v9745_v53 = vld [vmem:[%s11850_s4] sm:$0xff]  }
 0x1fe   : > { %8617 = vmatprep.subr.bf16.mxu1 %v9745_v53 }
 0x1ff   : > { %8618 = vmatpush3.bf16.msra.mxu1 %v9745_v53 }
 0x204   : > { %8526 = vmatmul.mubr.msk.bf16.gmra.mrb[12].mxu0 %vm478_vm0, %v10501_v59  ;;  %v9746_v59 = vld [vmem:[%s11850_s4 + $0x8] sm:$0xff]  }
 0x205   : > { %8529 = vmatprep.mubr.msk.bf16.mxu0 %vm478_vm0, %v10503_v60  ;;  %v2697_v60 = vld [vmem:[#allocation2 + $0x68] sm:$0xff]  ;;  %8619 = vmatprep.subr.bf16.mxu1 %v9746_v59 }
 0x206   : > { %8620 = vmatpush3.bf16.msra.mxu1 %v9746_v59 }
 0x209   : > { %8622 = vmatmul.mubr.msk.bf16.vlgmr.msra.gmra.mrb[16].mxu1 %vm478_vm0, %v10335_v10  ;;  %v2732_v10 = vpack.c.bf16 %v2706_v58, %v2705_v52 }
 0x20a   : > { %8625 = vmatprep.mubr.msk.bf16.mxu1 %vm478_vm0, %v10338_v11  ;;  %v11892_v11 = vld [vmem:[#allocation18_spill] sm:$0xff] }
 0x20c   : > { %8530 = vmatmul.mubr.msk.bf16.gmra.mrb[16].mxu0 %vm478_vm0, %v10509_v4  ;;  %v2698_v4 = vld [vmem:[#allocation2 + $0x70] sm:$0xff] }
 0x20d   : > { %8533 = vmatprep.mubr.msk.bf16.mxu0 %vm478_vm0, %v10511_v5  ;;  %v2699_v5 = vld [vmem:[#allocation2 + $0x88] sm:$0xff] }
 0x211   : > { %8626 = vmatmul.mubr.msk.bf16.gmra.mrb[20].mxu1 %vm478_vm0, %v10341_v12  ;;  %v2725_v12 = vld [vmem:[#allocation2 + $0x228] sm:$0xff] }
 0x212   : > { %8629 = vmatprep.mubr.msk.bf16.mxu1 %vm478_vm0, %v10353_v19  ;;  %v2726_v19 = vld [vmem:[#allocation2 + $0x230] sm:$0xff] }
 0x214   : > { %8534 = vmatmul.mubr.msk.bf16.gmra.mrb[20].mxu0 %vm478_vm0, %v10520_v18  ;;  %v2700_v18 = vld [vmem:[#allocation2 + $0x90] sm:$0xff] }
 0x215   : > { %8537 = vmatprep.mubr.msk.bf16.mxu0 %vm478_vm0, %v10524_v24  ;;  %v2728_v24 = vpack.c.bf16 %v2698_v4, %v2697_v60  ;;  %v2729_v0 = vpack.c.bf16 %v2700_v18, %v2699_v5 }
 0x219   : > { %8630 = vmatmul.mubr.msk.bf16.gmra.mrb[24].mxu1 %vm478_vm0, %v10356_v20  ;;  %v2742_v20 = vpack.c.bf16 %v2726_v19, %v2725_v12 }
 0x21a   : > { %8633 = vmatprep.mubr.msk.bf16.mxu1 %vm478_vm0, %v10359_v21  ;;  %v3031_v21 = vld [vmem:[#allocation2 + $0x229] sm:$0xff] }
 0x21c   : > { %8538 = vmatmul.mubr.msk.bf16.gmra.mrb[24].mxu0 %vm478_vm0, %v10532_v35  ;;  %v9747_v35 = vld [vmem:[%s11852_s6 + $0x8] sm:$0xff]  }
 0x21d   : > { %8541 = vmatprep.mubr.msk.bf16.mxu0 %vm478_vm0, %v10676_v25  ;;  %8653 = vmatprep.subr.bf16.mxu1 %v9747_v35  ;;  %v2704_v25 = vld [vmem:[#allocation2 + $0xd0] sm:$0xff] }
 0x21e   : > { %8654 = vmatpush3.bf16.msra.mxu1 %v9747_v35  ;;  %v2731_v22 = vpack.c.bf16 %v2704_v25, %v2703_v57 }
 0x221   : > { %8634 = vmatmul.mubr.msk.bf16.gmra.mrb[28].mxu1 %vm478_vm0, %v10375_v28  ;;  %v3032_v28 = vld [vmem:[#allocation2 + $0x231] sm:$0xff] }
 0x222   : > { %8637 = vmatprep.mubr.msk.bf16.mxu1 %vm478_vm0, %v10386_v31  ;;  %v3048_v31 = vpack.c.bf16 %v3032_v28, %v3031_v21 }
 0x224   : > { %8542 = vmatmul.mubr.msk.bf16.gmra.mrb[28].mxu0 %vm478_vm0, %v2436_v46 }
 0x225   : > { %8549 = vmatprep.mubr.msk.bf16.mxu0 %vm478_vm0, %v2727_v51 }
 0x229   : > { %8638 = vmatmul.mubr.msk.bf16.gmra.mrb[32].mxu1 %vm478_vm0, %v10389_v32  ;;  %v9790_v32 = vld [vmem:[%s10160_s13 + $0x60] sm:$0xff]  }
 0x22a   : > { %8641 = vmatprep.mubr.msk.bf16.mxu1 %vm478_vm0, %v10392_v33  ;;  %v9791_v33 = vld [vmem:[%s10160_s13 + $0x68] sm:$0xff]  }
 0x22c   : > { %8550 = vmatmul.mubr.msk.bf16.vlgmr.msra.gmra.mrb[0].mxu0 %vm478_vm0, %v2728_v24 }
 0x22d   : > { %8582 = vmatpush3.bf16.msra.mxu0 %v9743_v15  ;;  %8553 = vmatprep.mubr.msk.bf16.mxu0 %vm478_vm0, %v2729_v0 }
 0x22e   : > { %8583 = vmatprep.subr.bf16.mxu0 %v9744_v23 }
 0x231   : > { %8584 = vmatpush3.bf16.msra.mxu0 %v9744_v23  ;;  %8642 = vmatmul.mubr.msk.bf16.gmra.mrb[36].mxu1 %vm478_vm0, %v11892_v11 }
 0x232   : > { %8645 = vmatprep.mubr.msk.bf16.mxu1 %vm478_vm0, %v9790_v32 }
 0x234   : > { %8554 = vmatmul.mubr.msk.bf16.gmra.mrb[4].mxu0 %vm478_vm0, %v2730_v37 }
 0x235   : > { %8557 = vmatprep.mubr.msk.bf16.mxu0 %vm478_vm0, %v2731_v22 }
 0x239   : > { %8646 = vmatmul.mubr.msk.bf16.gmra.mrb[40].mxu1 %vm478_vm0, %v9791_v33 }
 0x23c   : > { %8558 = vmatmul.mubr.msk.bf16.gmra.mrb[8].mxu0 %vm478_vm0, %v2732_v10  ;;  %v11106_v10 = vld [vmem:[%s11852_s6 + $0x10] sm:$0xff]  }
 0x23d   : > { %8561 = vmatprep.mubr.msk.bf16.mxu0 %vm478_vm0, %v10571_v34  ;;  %v11048_v34 = vpop.f32.mrb[0].mxu1 }
 0x244   : > { %8562 = vmatmul.mubr.msk.bf16.gmra.mrb[12].mxu0 %vm478_vm0, %v10583_v50 }
 0x245   : > { %8565 = vmatprep.mubr.msk.bf16.mxu0 %vm478_vm0, %v10585_v63 }
 0x24c   : > { %8566 = vmatmul.mubr.msk.bf16.gmra.mrb[16].mxu0 %vm478_vm0, %v10599_v27 }
 0x24d   : > { %8569 = vmatprep.mubr.msk.bf16.mxu0 %vm478_vm0, %v10601_v49 }
 0x254   : > { %8570 = vmatmul.mubr.msk.bf16.gmra.mrb[20].mxu0 %vm478_vm0, %v10615_v30 }
 0x255   : > { %8573 = vmatprep.mubr.msk.bf16.mxu0 %vm478_vm0, %v10617_v16  ;;  %v9792_v16 = vld [vmem:[%s10160_s13 + $0x70] sm:$0xff]  }
 0x256   : > { %8649 = vmatprep.mubr.msk.bf16.mxu1 %vm478_vm0, %v9792_v16 }
 0x25c   : > { %8574 = vmatmul.mubr.msk.bf16.gmra.mrb[24].mxu0 %vm478_vm0, %v10631_v38  ;;  %v11893_v38 = vmov 0.0  }
 0x25d   : > { %8577 = vmatprep.mubr.msk.bf16.mxu0 %vm478_vm0, %v10716_v1  ;;  %3701 = vst.msk [vmem:[#allocation3 + $0x48] sm:$0xff] %vm3690_vm2, %v11893_v38  ;;  %3691 = vst.msk [vmem:[#allocation3] sm:$0xff] %vm3690_vm2, %v11893_v38 }
 0x25e   : > { %3692 = vst.msk [vmem:[#allocation3 + $0x8] sm:$0xff] %vm3690_vm2, %v11893_v38  ;;  %3693 = vst.msk [vmem:[#allocation3 + $0x10] sm:$0xff] %vm3690_vm2, %v11893_v38 }
 0x25f   : > { %3696 = vst.msk [vmem:[#allocation3 + $0x20] sm:$0xff] %vm3690_vm2, %v11893_v38  ;;  %3697 = vst.msk [vmem:[#allocation3 + $0x28] sm:$0xff] %vm3690_vm2, %v11893_v38 }
 0x260   : > { %3698 = vst.msk [vmem:[#allocation3 + $0x30] sm:$0xff] %vm3690_vm2, %v11893_v38  ;;  %3700 = vst.msk [vmem:[#allocation3 + $0x40] sm:$0xff] %vm3690_vm2, %v11893_v38 }
 0x261   : > { %3702 = vst.msk [vmem:[#allocation3 + $0x50] sm:$0xff] %vm3690_vm2, %v11893_v38  ;;  %3704 = vst.msk [vmem:[#allocation3 + $0x60] sm:$0xff] %vm3690_vm2, %v11893_v38 }
 0x262   : > { %3705 = vst.msk [vmem:[#allocation3 + $0x68] sm:$0xff] %vm3690_vm2, %v11893_v38  ;;  %3706 = vst.msk [vmem:[#allocation3 + $0x70] sm:$0xff] %vm3690_vm2, %v11893_v38 }
 0x263   : > { %3708 = vst.msk [vmem:[#allocation3 + $0x80] sm:$0xff] %vm3690_vm2, %v11893_v38  ;;  %3709 = vst.msk [vmem:[#allocation3 + $0x88] sm:$0xff] %vm3690_vm2, %v11893_v38 }
 0x264   : > { %8578 = vmatmul.mubr.msk.bf16.gmra.mrb[28].mxu0 %vm478_vm0, %v2742_v20  ;;  %3710 = vst.msk [vmem:[#allocation3 + $0x90] sm:$0xff] %vm3690_vm2, %v11893_v38  ;;  %3712 = vst.msk [vmem:[#allocation3 + $0xa0] sm:$0xff] %vm3690_vm2, %v11893_v38 }
 0x265   : > { %8585 = vmatprep.mubr.msk.bf16.mxu0 %vm478_vm0, %v10539_v48  ;;  %3713 = vst.msk [vmem:[#allocation3 + $0xa8] sm:$0xff] %vm3690_vm2, %v11893_v38  ;;  %3714 = vst.msk [vmem:[#allocation3 + $0xb0] sm:$0xff] %vm3690_vm2, %v11893_v38  ;;  %v11894_v48 = vld [vmem:[#allocation19_spill] sm:$0xff] }
 0x266   : > { %3716 = vst.msk [vmem:[#allocation3 + $0xc0] sm:$0xff] %vm3690_vm2, %v11893_v38  ;;  %3717 = vst.msk [vmem:[#allocation3 + $0xc8] sm:$0xff] %vm3690_vm2, %v11893_v38  ;;  %8650 = vmatmul.mubr.msk.bf16.gmra.mrb[44].mxu1 %vm478_vm0, %v11894_v48 }
 0x267   : > { %3718 = vst.msk [vmem:[#allocation3 + $0xd0] sm:$0xff] %vm3690_vm2, %v11893_v38  ;;  %3720 = vst.msk [vmem:[#allocation3 + $0xe0] sm:$0xff] %vm3690_vm2, %v11893_v38 }
 0x268   : > { %3721 = vst.msk [vmem:[#allocation3 + $0xe8] sm:$0xff] %vm3690_vm2, %v11893_v38  ;;  %3722 = vst.msk [vmem:[#allocation3 + $0xf0] sm:$0xff] %vm3690_vm2, %v11893_v38 }
 0x269   : > { %3724 = vst.msk [vmem:[#allocation3 + $0x100] sm:$0xff] %vm3690_vm2, %v11893_v38  ;;  %3725 = vst.msk [vmem:[#allocation3 + $0x108] sm:$0xff] %vm3690_vm2, %v11893_v38 }
 0x26a   : > { %3726 = vst.msk [vmem:[#allocation3 + $0x110] sm:$0xff] %vm3690_vm2, %v11893_v38  ;;  %3728 = vst.msk [vmem:[#allocation3 + $0x120] sm:$0xff] %vm3690_vm2, %v11893_v38 }
 0x26b   : > { %3729 = vst.msk [vmem:[#allocation3 + $0x128] sm:$0xff] %vm3690_vm2, %v11893_v38  ;;  %3730 = vst.msk [vmem:[#allocation3 + $0x130] sm:$0xff] %vm3690_vm2, %v11893_v38 }
 0x26c   : > { %8586 = vmatmul.mubr.msk.bf16.vlgmr.msra.gmra.mrb[0].mxu0 %vm478_vm0, %v10554_v61  ;;  %3732 = vst.msk [vmem:[#allocation3 + $0x140] sm:$0xff] %vm3690_vm2, %v11893_v38  ;;  %3733 = vst.msk [vmem:[#allocation3 + $0x148] sm:$0xff] %vm3690_vm2, %v11893_v38  ;;  %v3847_v61 = vld [vmem:[#allocation3 + $0x8] sm:$0xff] }
 0x26d   : > { %8589 = vmatprep.mubr.msk.bf16.mxu0 %vm478_vm0, %v10556_v62  ;;  %3734 = vst.msk [vmem:[#allocation3 + $0x150] sm:$0xff] %vm3690_vm2, %v11893_v38  ;;  %3736 = vst.msk [vmem:[#allocation3 + $0x160] sm:$0xff] %vm3690_vm2, %v11893_v38  ;;  %v3848_v62 = vld [vmem:[#allocation3 + $0x10] sm:$0xff] }
 0x26e   : > { %3737 = vst.msk [vmem:[#allocation3 + $0x168] sm:$0xff] %vm3690_vm2, %v11893_v38  ;;  %3738 = vst.msk [vmem:[#allocation3 + $0x170] sm:$0xff] %vm3690_vm2, %v11893_v38 }
 0x26f   : > { %3740 = vst.msk [vmem:[#allocation3 + $0x180] sm:$0xff] %vm3690_vm2, %v11893_v38  ;;  %3741 = vst.msk [vmem:[#allocation3 + $0x188] sm:$0xff] %vm3690_vm2, %v11893_v38 }
 0x270   : > { %3742 = vst.msk [vmem:[#allocation3 + $0x190] sm:$0xff] %vm3690_vm2, %v11893_v38  ;;  %3744 = vst.msk [vmem:[#allocation3 + $0x1a0] sm:$0xff] %vm3690_vm2, %v11893_v38 }
 0x271   : > { %3745 = vst.msk [vmem:[#allocation3 + $0x1a8] sm:$0xff] %vm3690_vm2, %v11893_v38  ;;  %3746 = vst.msk [vmem:[#allocation3 + $0x1b0] sm:$0xff] %vm3690_vm2, %v11893_v38 }
 0x272   : > { %3748 = vst.msk [vmem:[#allocation3 + $0x1c0] sm:$0xff] %vm3690_vm2, %v11893_v38  ;;  %3749 = vst.msk [vmem:[#allocation3 + $0x1c8] sm:$0xff] %vm3690_vm2, %v11893_v38 }
 0x273   : > { %3750 = vst.msk [vmem:[#allocation3 + $0x1d0] sm:$0xff] %vm3690_vm2, %v11893_v38  ;;  %3752 = vst.msk [vmem:[#allocation3 + $0x1e0] sm:$0xff] %vm3690_vm2, %v11893_v38 }
 0x274   : > { %8590 = vmatmul.mubr.msk.bf16.gmra.mrb[4].mxu0 %vm478_vm0, %v10563_v13  ;;  %3753 = vst.msk [vmem:[#allocation3 + $0x1e8] sm:$0xff] %vm3690_vm2, %v11893_v38  ;;  %3754 = vst.msk [vmem:[#allocation3 + $0x1f0] sm:$0xff] %vm3690_vm2, %v11893_v38  ;;  %v3879_v13 = vpack.c.bf16 %v3848_v62, %v3847_v61 }
 0x275   : > { %8593 = vmatprep.mubr.msk.bf16.mxu0 %vm478_vm0, %v10565_v14  ;;  %3756 = vst.msk [vmem:[#allocation3 + $0x200] sm:$0xff] %vm3690_vm2, %v11893_v38  ;;  %3757 = vst.msk [vmem:[#allocation3 + $0x208] sm:$0xff] %vm3690_vm2, %v11893_v38  ;;  %v11045_v14 = vld [vmem:[%s11852_s6] sm:$0xff]  }
 0x276   : > { %3758 = vst.msk [vmem:[#allocation3 + $0x210] sm:$0xff] %vm3690_vm2, %v11893_v38  ;;  %3760 = vst.msk [vmem:[#allocation3 + $0x220] sm:$0xff] %vm3690_vm2, %v11893_v38  ;;  %8655 = vmatprep.mubr.msk.bf16.mxu1 %vm3690_vm2, %v3879_v13  ;;  %8687 = vmatprep.subr.bf16.mxu1 %v11045_v14 }
 0x277   : > { %3761 = vst.msk [vmem:[#allocation3 + $0x228] sm:$0xff] %vm3690_vm2, %v11893_v38  ;;  %3762 = vst.msk [vmem:[#allocation3 + $0x230] sm:$0xff] %vm3690_vm2, %v11893_v38 }
 0x278   : > { %3695 = vst.msk [vmem:[#allocation3 + $0x18] sm:$0x1] %vm3694_vm3, %v11893_v38  ;;  %3699 = vst.msk [vmem:[#allocation3 + $0x38] sm:$0x1] %vm3694_vm3, %v11893_v38 }
 0x279   : > { %3703 = vst.msk [vmem:[#allocation3 + $0x58] sm:$0x1] %vm3694_vm3, %v11893_v38  ;;  %3707 = vst.msk [vmem:[#allocation3 + $0x78] sm:$0x1] %vm3694_vm3, %v11893_v38 }
 0x27a   : > { %3711 = vst.msk [vmem:[#allocation3 + $0x98] sm:$0x1] %vm3694_vm3, %v11893_v38  ;;  %3715 = vst.msk [vmem:[#allocation3 + $0xb8] sm:$0x1] %vm3694_vm3, %v11893_v38 }
 0x27b   : > { %3719 = vst.msk [vmem:[#allocation3 + $0xd8] sm:$0x1] %vm3694_vm3, %v11893_v38  ;;  %3723 = vst.msk [vmem:[#allocation3 + $0xf8] sm:$0x1] %vm3694_vm3, %v11893_v38 }
 0x27c   : > { %8594 = vmatmul.mubr.msk.bf16.gmra.mrb[8].mxu0 %vm478_vm0, %v10573_v36  ;;  %3727 = vst.msk [vmem:[#allocation3 + $0x118] sm:$0x1] %vm3694_vm3, %v11893_v38  ;;  %3731 = vst.msk [vmem:[#allocation3 + $0x138] sm:$0x1] %vm3694_vm3, %v11893_v38  ;;  %v11050_v36 = vpop.f32.mrb[1].mxu1 }
 0x27d   : > { %8597 = vmatprep.mubr.msk.bf16.mxu0 %vm478_vm0, %v10577_v41  ;;  %3735 = vst.msk [vmem:[#allocation3 + $0x158] sm:$0x1] %vm3694_vm3, %v11893_v38  ;;  %3739 = vst.msk [vmem:[#allocation3 + $0x178] sm:$0x1] %vm3694_vm3, %v11893_v38  ;;  %v11052_v41 = vpop.f32.mrb[2].mxu1 }
 0x27e   : > { %3743 = vst.msk [vmem:[#allocation3 + $0x198] sm:$0x1] %vm3694_vm3, %v11893_v38  ;;  %3747 = vst.msk [vmem:[#allocation3 + $0x1b8] sm:$0x1] %vm3694_vm3, %v11893_v38  ;;  %v11054_v50 = vpop.f32.mrb[3].mxu1 }
 0x27f   : > { %3751 = vst.msk [vmem:[#allocation3 + $0x1d8] sm:$0x1] %vm3694_vm3, %v11893_v38  ;;  %3755 = vst.msk [vmem:[#allocation3 + $0x1f8] sm:$0x1] %vm3694_vm3, %v11893_v38  ;;  %v11056_v63 = vpop.f32.mrb[4].mxu1 }
 0x280   : > { %3759 = vst.msk [vmem:[#allocation3 + $0x218] sm:$0x1] %vm3694_vm3, %v11893_v38  ;;  %3763 = vst.msk [vmem:[#allocation3 + $0x238] sm:$0x1] %vm3694_vm3, %v11893_v38 }
 0x284   : > { %8598 = vmatmul.mubr.msk.bf16.gmra.mrb[12].mxu0 %vm478_vm0, %v10589_v3  ;;  %v11058_v3 = vpop.f32.mrb[5].mxu1 }
 0x285   : > { %8601 = vmatprep.mubr.msk.bf16.mxu0 %vm478_vm0, %v10593_v6  ;;  %v11060_v6 = vpop.f32.mrb[6].mxu1 }
 0x286   : > { %v11062_v27 = vpop.f32.mrb[7].mxu1 }
 0x287   : > { %v11064_v49 = vpop.f32.mrb[8].mxu1 }
 0x28c   : > { %8602 = vmatmul.mubr.msk.bf16.gmra.mrb[16].mxu0 %vm478_vm0, %v10605_v54  ;;  %v11066_v54 = vpop.f32.mrb[9].mxu1 }
 0x28d   : > { %8605 = vmatprep.mubr.msk.bf16.mxu0 %vm478_vm0, %v10609_v55  ;;  %v11068_v55 = vpop.f32.mrb[10].mxu1 }
 0x28e   : > { %v11070_v30 = vpop.f32.mrb[11].mxu1 }
 0x294   : > { %8606 = vmatmul.mubr.msk.bf16.gmra.mrb[20].mxu0 %vm478_vm0, %v10621_v43  ;;  %v11072_v43 = vpop.f32.mrb[12].mxu1 }
 0x295   : > { %8609 = vmatprep.mubr.msk.bf16.mxu0 %vm478_vm0, %v10625_v44  ;;  %v11074_v44 = vpop.f32.mrb[13].mxu1 }
 0x29c   : > { %8610 = vmatmul.mubr.msk.bf16.gmra.mrb[24].mxu0 %vm478_vm0, %v10635_v56  ;;  %v11076_v56 = vpop.f32.mrb[14].mxu1 }
 0x29d   : > { %8613 = vmatprep.mubr.msk.bf16.mxu0 %vm478_vm0, %v10756_v47  ;;  %v11078_v1 = vpop.f32.mrb[15].mxu1 }
 0x2a4   : > { %8614 = vmatmul.mubr.msk.bf16.gmra.mrb[28].mxu0 %vm478_vm0, %v3048_v31 }
 0x33f   : > { %v8587_v8 = vpop.f32.mrb[0].mxu0 }
 0x340   : > { %v3316_v9 = vadd.f32 %v8587_v8, %v11083_v2  ;;  %v3148_v17 = vpop.f32.mrb[1].mxu0 }
 0x341   : > { %v3314_v47 = vadd.f32 %v11083_v2, %v3148_v17  ;;  %v8588_v42 = vpop.f32.mrb[2].mxu0 }
 0x342   : > { %v3348_v15 = vmax.f32 %v3316_v9, 0.0  ;;  %v3317_v29 = vadd.f32 %v8588_v42, %v11083_v2  ;;  %v3151_v39 = vpop.f32.mrb[3].mxu0 }
 0x343   : > { %v3346_v40 = vmax.f32 %v3314_v47, 0.0  ;;  %v3315_v45 = vadd.f32 %v11083_v2, %v3151_v39 }
 0x344   : > { %3767 = vst.msk [vmem:[#allocation3 + $0x48] sm:$0xff] %vm3690_vm2, %v3348_v15  ;;  %v3349_v46 = vmax.f32 %v3317_v29, 0.0 }
 0x345   : > { %3765 = vst.msk [vmem:[#allocation3 + $0x28] sm:$0xff] %vm3690_vm2, %v3346_v40  ;;  %v3347_v51 = vmax.f32 %v3315_v45, 0.0 }
 0x346   : > { %3768 = vst.msk [vmem:[#allocation3 + $0x50] sm:$0xff] %vm3690_vm2, %v3349_v46 }
 0x347   : > { %3766 = vst.msk [vmem:[#allocation3 + $0x30] sm:$0xff] %vm3690_vm2, %v3347_v51  ;;  %v8591_v53 = vpop.f32.mrb[4].mxu0 }
 0x348   : > { %v3320_v59 = vadd.f32 %v8591_v53, %v11083_v2  ;;  %v3164_v60 = vpop.f32.mrb[5].mxu0 }
 0x349   : > { %v3318_v4 = vadd.f32 %v11083_v2, %v3164_v60  ;;  %v8592_v5 = vpop.f32.mrb[6].mxu0 }
 0x34a   : > { %v3352_v18 = vmax.f32 %v3320_v59, 0.0  ;;  %v3321_v24 = vadd.f32 %v8592_v5, %v11083_v2  ;;  %v3167_v35 = vpop.f32.mrb[7].mxu0 }
 0x34b   : > { %v3350_v0 = vmax.f32 %v3318_v4, 0.0  ;;  %v3319_v23 = vadd.f32 %v11083_v2, %v3167_v35  ;;  %v3851_v58 = vld [vmem:[#allocation3 + $0x48] sm:$0xff] }
 0x34c   : > { %3771 = vst.msk [vmem:[#allocation3 + $0x88] sm:$0xff] %vm3690_vm2, %v3352_v18  ;;  %v3353_v7 = vmax.f32 %v3321_v24, 0.0  ;;  %v3849_v25 = vld [vmem:[#allocation3 + $0x28] sm:$0xff] }
 0x34d   : > { %3769 = vst.msk [vmem:[#allocation3 + $0x68] sm:$0xff] %vm3690_vm2, %v3350_v0  ;;  %v3351_v26 = vmax.f32 %v3319_v23, 0.0  ;;  %v3852_v57 = vld [vmem:[#allocation3 + $0x50] sm:$0xff] }
 0x34e   : > { %3772 = vst.msk [vmem:[#allocation3 + $0x90] sm:$0xff] %vm3690_vm2, %v3353_v7  ;;  %v3850_v37 = vld [vmem:[#allocation3 + $0x30] sm:$0xff]  ;;  %v11109_v19 = vpack.c.bf16 %v3852_v57, %v3851_v58 }
 0x34f   : > { %3770 = vst.msk [vmem:[#allocation3 + $0x70] sm:$0xff] %vm3690_vm2, %v3351_v26  ;;  %v8595_v22 = vpop.f32.mrb[8].mxu0  ;;  %v11101_v52 = vpack.c.bf16 %v3850_v37, %v3849_v25 }
 0x350   : > { %v3324_v11 = vadd.f32 %v8595_v22, %v11083_v2  ;;  %v3180_v12 = vpop.f32.mrb[9].mxu0 }
 0x351   : > { %v3322_v20 = vadd.f32 %v11083_v2, %v3180_v12  ;;  %v8596_v21 = vpop.f32.mrb[10].mxu0  ;;  %8656 = vmatmul.mubr.msk.bf16.vlgmr.msra.gmra.mrb[16].mxu1 %vm3690_vm2, %v11101_v52 }
 0x352   : > { %v3356_v28 = vmax.f32 %v3324_v11, 0.0  ;;  %v3325_v31 = vadd.f32 %v8596_v21, %v11083_v2  ;;  %v3183_v32 = vpop.f32.mrb[11].mxu0  ;;  %8659 = vmatprep.mubr.msk.bf16.mxu1 %vm3690_vm2, %v11109_v19  ;;  %8688 = vmatpush3.bf16.msra.mxu1 %v11045_v14 }
 0x353   : > { %v3354_v33 = vmax.f32 %v3322_v20, 0.0  ;;  %v3323_v38 = vadd.f32 %v11083_v2, %v3183_v32  ;;  %8721 = vmatprep.subr.bf16.mxu1 %v11106_v10  ;;  %v3855_v9 = vld [vmem:[#allocation3 + $0x88] sm:$0xff] }
 0x354   : > { %3775 = vst.msk [vmem:[#allocation3 + $0xc8] sm:$0xff] %vm3690_vm2, %v3356_v28  ;;  %v3357_v16 = vmax.f32 %v3325_v31, 0.0  ;;  %v3853_v62 = vld [vmem:[#allocation3 + $0x68] sm:$0xff] }
 0x355   : > { %3773 = vst.msk [vmem:[#allocation3 + $0xa8] sm:$0xff] %vm3690_vm2, %v3354_v33  ;;  %v3355_v48 = vmax.f32 %v3323_v38, 0.0  ;;  %v3856_v61 = vld [vmem:[#allocation3 + $0x90] sm:$0xff] }
 0x356   : > { %3776 = vst.msk [vmem:[#allocation3 + $0xd0] sm:$0xff] %vm3690_vm2, %v3357_v16  ;;  %v3854_v13 = vld [vmem:[#allocation3 + $0x70] sm:$0xff]  ;;  %v11127_v42 = vpack.c.bf16 %v3856_v61, %v3855_v9 }
 0x357   : > { %3774 = vst.msk [vmem:[#allocation3 + $0xb0] sm:$0xff] %vm3690_vm2, %v3355_v48  ;;  %v8599_v8 = vpop.f32.mrb[12].mxu0  ;;  %v11124_v14 = vpack.c.bf16 %v3854_v13, %v3853_v62 }
 0x358   : > { %v3328_v17 = vadd.f32 %v8599_v8, %v11083_v2  ;;  %v3196_v47 = vpop.f32.mrb[13].mxu0 }
 0x359   : > { %v3326_v15 = vadd.f32 %v11083_v2, %v3196_v47  ;;  %v8600_v29 = vpop.f32.mrb[14].mxu0  ;;  %8660 = vmatmul.mubr.msk.bf16.gmra.mrb[20].mxu1 %vm3690_vm2, %v11124_v14 }
 0x35a   : > { %v3360_v39 = vmax.f32 %v3328_v17, 0.0  ;;  %v3329_v40 = vadd.f32 %v8600_v29, %v11083_v2  ;;  %v3199_v45 = vpop.f32.mrb[15].mxu0  ;;  %8663 = vmatprep.mubr.msk.bf16.mxu1 %vm3690_vm2, %v11127_v42 }
 0x35b   : > { %v3358_v46 = vmax.f32 %v3326_v15, 0.0  ;;  %v3327_v51 = vadd.f32 %v11083_v2, %v3199_v45  ;;  %v3859_v35 = vld [vmem:[#allocation3 + $0xc8] sm:$0xff] }
 0x35c   : > { %3779 = vst.msk [vmem:[#allocation3 + $0x108] sm:$0xff] %vm3690_vm2, %v3360_v39  ;;  %v3361_v53 = vmax.f32 %v3329_v40, 0.0  ;;  %v3857_v4 = vld [vmem:[#allocation3 + $0xa8] sm:$0xff] }
 0x35d   : > { %3777 = vst.msk [vmem:[#allocation3 + $0xe8] sm:$0xff] %vm3690_vm2, %v3358_v46  ;;  %v3359_v59 = vmax.f32 %v3327_v51, 0.0  ;;  %v3860_v60 = vld [vmem:[#allocation3 + $0xd0] sm:$0xff] }
 0x35e   : > { %3780 = vst.msk [vmem:[#allocation3 + $0x110] sm:$0xff] %vm3690_vm2, %v3361_v53  ;;  %v3858_v5 = vld [vmem:[#allocation3 + $0xb0] sm:$0xff]  ;;  %v11143_v7 = vpack.c.bf16 %v3860_v60, %v3859_v35 }
 0x35f   : > { %3778 = vst.msk [vmem:[#allocation3 + $0xf0] sm:$0xff] %vm3690_vm2, %v3359_v59  ;;  %v8603_v18 = vpop.f32.mrb[16].mxu0  ;;  %v11140_v24 = vpack.c.bf16 %v3858_v5, %v3857_v4 }
 0x360   : > { %v9031_v0 = vadd.f32 %v8603_v18, %v11048_v34  ;;  %v3212_v23 = vpop.f32.mrb[17].mxu0 }
 0x361   : > { %v9032_v26 = vadd.f32 %v3212_v23, %v11050_v36  ;;  %v8604_v57 = vpop.f32.mrb[18].mxu0  ;;  %8664 = vmatmul.mubr.msk.bf16.gmra.mrb[24].mxu1 %vm3690_vm2, %v11140_v24 }
 0x362   : > { %v3332_v25 = vadd.f32 %v9031_v0, %v11083_v2  ;;  %v9033_v37 = vadd.f32 %v8604_v57, %v11052_v41  ;;  %v3215_v22 = vpop.f32.mrb[19].mxu0  ;;  %8667 = vmatprep.mubr.msk.bf16.mxu1 %vm3690_vm2, %v11143_v7 }
 0x363   : > { %v3330_v58 = vadd.f32 %v9032_v26, %v11083_v2  ;;  %v9034_v34 = vadd.f32 %v3215_v22, %v11054_v50  ;;  %v3863_v16 = vld [vmem:[#allocation3 + $0x108] sm:$0xff] }
 0x364   : > { %v3364_v11 = vmax.f32 %v3332_v25, 0.0  ;;  %v3333_v12 = vadd.f32 %v9033_v37, %v11083_v2  ;;  %v3861_v31 = vld [vmem:[#allocation3 + $0xe8] sm:$0xff] }
 0x365   : > { %v3362_v36 = vmax.f32 %v3330_v58, 0.0  ;;  %v3331_v20 = vadd.f32 %v9034_v34, %v11083_v2  ;;  %v3864_v21 = vld [vmem:[#allocation3 + $0x110] sm:$0xff] }
 0x366   : > { %3783 = vst.msk [vmem:[#allocation3 + $0x148] sm:$0xff] %vm3690_vm2, %v3364_v11  ;;  %v3365_v28 = vmax.f32 %v3333_v12, 0.0  ;;  %v3862_v41 = vld [vmem:[#allocation3 + $0xf0] sm:$0xff]  ;;  %v11162_v61 = vpack.c.bf16 %v3864_v21, %v3863_v16 }
 0x367   : > { %3781 = vst.msk [vmem:[#allocation3 + $0x128] sm:$0xff] %vm3690_vm2, %v3362_v36  ;;  %v3363_v32 = vmax.f32 %v3331_v20, 0.0  ;;  %v8607_v33 = vpop.f32.mrb[20].mxu0  ;;  %v11158_v38 = vpack.c.bf16 %v3862_v41, %v3861_v31 }
 0x368   : > { %3784 = vst.msk [vmem:[#allocation3 + $0x150] sm:$0xff] %vm3690_vm2, %v3365_v28  ;;  %v9035_v50 = vadd.f32 %v8607_v33, %v11056_v63  ;;  %v3228_v48 = vpop.f32.mrb[21].mxu0 }
 0x369   : > { %3782 = vst.msk [vmem:[#allocation3 + $0x130] sm:$0xff] %vm3690_vm2, %v3363_v32  ;;  %v9036_v62 = vadd.f32 %v3228_v48, %v11058_v3  ;;  %v8608_v13 = vpop.f32.mrb[22].mxu0  ;;  %8668 = vmatmul.mubr.msk.bf16.gmra.mrb[28].mxu1 %vm3690_vm2, %v11158_v38 }
 0x36a   : > { %v3336_v8 = vadd.f32 %v9035_v50, %v11083_v2  ;;  %v9037_v9 = vadd.f32 %v8608_v13, %v11060_v6  ;;  %v3231_v17 = vpop.f32.mrb[23].mxu0  ;;  %8671 = vmatprep.mubr.msk.bf16.mxu1 %vm3690_vm2, %v11162_v61 }
 0x36b   : > { %v3334_v63 = vadd.f32 %v9036_v62, %v11083_v2  ;;  %v9038_v47 = vadd.f32 %v3231_v17, %v11062_v27 }
 0x36c   : > { %v3368_v15 = vmax.f32 %v3336_v8, 0.0  ;;  %v3337_v29 = vadd.f32 %v9037_v9, %v11083_v2 }
 0x36d   : > { %v3366_v3 = vmax.f32 %v3334_v63, 0.0  ;;  %v3335_v39 = vadd.f32 %v9038_v47, %v11083_v2  ;;  %v3867_v18 = vld [vmem:[#allocation3 + $0x148] sm:$0xff] }
 0x36e   : > { %3787 = vst.msk [vmem:[#allocation3 + $0x188] sm:$0xff] %vm3690_vm2, %v3368_v15  ;;  %v3369_v40 = vmax.f32 %v3337_v29, 0.0  ;;  %v3865_v27 = vld [vmem:[#allocation3 + $0x128] sm:$0xff] }
 0x36f   : > { %3785 = vst.msk [vmem:[#allocation3 + $0x168] sm:$0xff] %vm3690_vm2, %v3366_v3  ;;  %v3367_v6 = vmax.f32 %v3335_v39, 0.0  ;;  %v8611_v45 = vpop.f32.mrb[24].mxu0  ;;  %v3868_v46 = vld [vmem:[#allocation3 + $0x150] sm:$0xff] }
 0x370   : > { %3788 = vst.msk [vmem:[#allocation3 + $0x190] sm:$0xff] %vm3690_vm2, %v3369_v40  ;;  %v9039_v51 = vadd.f32 %v8611_v45, %v11064_v49  ;;  %v3244_v53 = vpop.f32.mrb[25].mxu0  ;;  %v3866_v59 = vld [vmem:[#allocation3 + $0x130] sm:$0xff]  ;;  %v11186_v26 = vpack.c.bf16 %v3868_v46, %v3867_v18 }
 0x371   : > { %3786 = vst.msk [vmem:[#allocation3 + $0x170] sm:$0xff] %vm3690_vm2, %v3367_v6  ;;  %v9040_v60 = vadd.f32 %v3244_v53, %v11066_v54  ;;  %v8612_v4 = vpop.f32.mrb[26].mxu0  ;;  %v11182_v5 = vpack.c.bf16 %v3866_v59, %v3865_v27  ;;  %v3798_v3 = vld [vmem:[#allocation3 + $0xf] sm:$0xff]  ;;  %v3799_v53 = vld [vmem:[#allocation3 + $0x27] sm:$0xff] }
 0x372   : > { %v3340_v35 = vadd.f32 %v9039_v51, %v11083_v2  ;;  %v9041_v0 = vadd.f32 %v8612_v4, %v11068_v55  ;;  %v3247_v23 = vpop.f32.mrb[27].mxu0  ;;  %v3800_v46 = vld [vmem:[#allocation3 + $0x2f] sm:$0xff]  ;;  %v3801_v59 = vld [vmem:[#allocation3 + $0x47] sm:$0xff] }
 0x373   : > { %v3338_v49 = vadd.f32 %v9040_v60, %v11083_v2  ;;  %v9042_v57 = vadd.f32 %v3247_v23, %v11070_v30  ;;  %8672 = vmatmul.mubr.msk.bf16.gmra.mrb[32].mxu1 %vm3690_vm2, %v11182_v5  ;;  %v3802_v51 = vld [vmem:[#allocation3 + $0x4f] sm:$0xff]  ;;  %v11233_v27 = vpack.c.bf16 %v3800_v46, %v3799_v53  ;;  %v11238_v60 = vld [vmem:[%s11852_s6 + $0x18] sm:$0xff]  }
 0x374   : > { %v3372_v25 = vmax.f32 %v3340_v35, 0.0  ;;  %v3341_v54 = vadd.f32 %v9041_v0, %v11083_v2  ;;  %8675 = vmatprep.mubr.msk.bf16.mxu1 %vm3690_vm2, %v11186_v26  ;;  %v11240_v4 = vpack.c.bf16 %v3802_v51, %v3801_v59  ;;  %v3804_v18 = vld [vmem:[#allocation3 + $0x6f] sm:$0xff]  ;;  %v3803_v0 = vld [vmem:[#allocation3 + $0x67] sm:$0xff] }
 0x375   : > { %v3370_v37 = vmax.f32 %v3338_v49, 0.0  ;;  %v3339_v22 = vadd.f32 %v9042_v57, %v11083_v2  ;;  %v3871_v41 = vld [vmem:[#allocation3 + $0x188] sm:$0xff]  ;;  %v11248_v23 = vpack.c.bf16 %v3804_v18, %v3803_v0  ;;  %v4331_v51 = vld [vmem:[#allocation3 + $0x31] sm:$0xff] }
 0x376   : > { %3791 = vst.msk [vmem:[#allocation3 + $0x1c8] sm:$0xff] %vm3690_vm2, %v3372_v25  ;;  %v3373_v55 = vmax.f32 %v3341_v54, 0.0  ;;  %v3869_v36 = vld [vmem:[#allocation3 + $0x168] sm:$0xff]  ;;  %v4333_v59 = vld [vmem:[#allocation3 + $0x51] sm:$0xff] }
 0x377   : > { %3789 = vst.msk [vmem:[#allocation3 + $0x1a8] sm:$0xff] %vm3690_vm2, %v3370_v37  ;;  %v3371_v58 = vmax.f32 %v3339_v22, 0.0  ;;  %v8615_v34 = vpop.f32.mrb[28].mxu0  ;;  %v3872_v30 = vld [vmem:[#allocation3 + $0x190] sm:$0xff]  ;;  %v3805_v49 = vld [vmem:[#allocation3 + $0x87] sm:$0xff] }
 0x378   : > { %3792 = vst.msk [vmem:[#allocation3 + $0x1d0] sm:$0xff] %vm3690_vm2, %v3373_v55  ;;  %v9043_v11 = vadd.f32 %v8615_v34, %v11072_v43  ;;  %v3260_v12 = vpop.f32.mrb[29].mxu0  ;;  %v3870_v20 = vld [vmem:[#allocation3 + $0x170] sm:$0xff]  ;;  %v11206_v50 = vpack.c.bf16 %v3872_v30, %v3871_v41  ;;  %v3807_v54 = vld [vmem:[#allocation3 + $0xa7] sm:$0xff] }
 0x379   : > { %3790 = vst.msk [vmem:[#allocation3 + $0x1b0] sm:$0xff] %vm3690_vm2, %v3371_v58  ;;  %v9044_v21 = vadd.f32 %v3260_v12, %v11074_v44  ;;  %v8616_v28 = vpop.f32.mrb[30].mxu0  ;;  %v11202_v31 = vpack.c.bf16 %v3870_v20, %v3869_v36  ;;  %v3806_v35 = vld [vmem:[#allocation3 + $0x8f] sm:$0xff]  ;;  %v3809_v22 = vld [vmem:[#allocation3 + $0xc7] sm:$0xff] }
 0x37a   : > { %v3344_v32 = vadd.f32 %v9043_v11, %v11083_v2  ;;  %v9045_v33 = vadd.f32 %v8616_v28, %v11076_v56  ;;  %v3263_v16 = vpop.f32.mrb[31].mxu0  ;;  %v11250_v57 = vpack.c.bf16 %v3806_v35, %v3805_v49  ;;  %v3810_v25 = vld [vmem:[#allocation3 + $0xcf] sm:$0xff]  ;;  %v3811_v30 = vld [vmem:[#allocation3 + $0xe7] sm:$0xff] }
 0x37b   : > { %v3342_v43 = vadd.f32 %v9044_v21, %v11083_v2  ;;  %v9046_v48 = vadd.f32 %v3263_v16, %v11078_v1  ;;  %8676 = vmatmul.mubr.msk.bf16.gmra.mrb[36].mxu1 %vm3690_vm2, %v11202_v31  ;;  %v11258_v55 = vpack.c.bf16 %v3810_v25, %v3809_v22  ;;  %v3812_v58 = vld [vmem:[#allocation3 + $0xef] sm:$0xff]  ;;  %v3813_v12 = vld [vmem:[#allocation3 + $0x107] sm:$0xff] }
 0x37c   : > { %v3376_v62 = vmax.f32 %v3344_v32, 0.0  ;;  %v3345_v44 = vadd.f32 %v9045_v33, %v11083_v2  ;;  %8679 = vmatprep.mubr.msk.bf16.mxu1 %vm3690_vm2, %v11206_v50  ;;  %v3814_v34 = vld [vmem:[#allocation3 + $0x10f] sm:$0xff]  ;;  %v11264_v11 = vpack.c.bf16 %v3812_v58, %v3811_v30  ;;  %v3815_v28 = vld [vmem:[#allocation3 + $0x127] sm:$0xff] }
 0x37d   : > { %v3374_v13 = vmax.f32 %v3342_v43, 0.0  ;;  %v3343_v8 = vadd.f32 %v9046_v48, %v11083_v2  ;;  %v3875_v15 = vld [vmem:[#allocation3 + $0x1c8] sm:$0xff]  ;;  %v11266_v36 = vpack.c.bf16 %v3814_v34, %v3813_v12  ;;  %v9751_v35 = vld [vmem:[%s11852_s6 + $0x20] sm:$0xff]   ;;  %v4341_v12 = vld [vmem:[#allocation3 + $0xd1] sm:$0xff] }
 0x37e   : > { %3795 = vst.msk [vmem:[#allocation3 + $0x208] sm:$0xff] %vm3690_vm2, %v3376_v62  ;;  %v3377_v56 = vmax.f32 %v3345_v44, 0.0  ;;  %v3873_v1 = vld [vmem:[#allocation3 + $0x1a8] sm:$0xff] }
 0x37f   : > { %3793 = vst.msk [vmem:[#allocation3 + $0x1e8] sm:$0xff] %vm3690_vm2, %v3374_v13  ;;  %v3375_v9 = vmax.f32 %v3343_v8, 0.0  ;;  %v3876_v17 = vld [vmem:[#allocation3 + $0x1d0] sm:$0xff]  ;;  %v3797_v2 = vld [vmem:[#allocation3 + $0x7] sm:$0xff] }
 0x380   : > { %3796 = vst.msk [vmem:[#allocation3 + $0x210] sm:$0xff] %vm3690_vm2, %v3377_v56  ;;  %v3874_v63 = vld [vmem:[#allocation3 + $0x1b0] sm:$0xff]  ;;  %v11222_v29 = vpack.c.bf16 %v3876_v17, %v3875_v15  ;;  %v3829_v6 = vpack.c.bf16 %v3798_v3, %v3797_v2  ;;  %v3817_v32 = vld [vmem:[#allocation3 + $0x147] sm:$0xff] }
 0x381   : > { %3794 = vst.msk [vmem:[#allocation3 + $0x1f0] sm:$0xff] %vm3690_vm2, %v3375_v9  ;;  %v11220_v47 = vpack.c.bf16 %v3874_v63, %v3873_v1  ;;  %v3816_v20 = vld [vmem:[#allocation3 + $0x12f] sm:$0xff]  ;;  %v3819_v48 = vld [vmem:[#allocation3 + $0x167] sm:$0xff] }
 0x382   : > { %v3818_v21 = vld [vmem:[#allocation3 + $0x14f] sm:$0xff]  ;;  %v11272_v41 = vpack.c.bf16 %v3816_v20, %v3815_v28  ;;  %v3821_v44 = vld [vmem:[#allocation3 + $0x187] sm:$0xff] }
 0x383   : > { %8680 = vmatmul.mubr.msk.bf16.gmra.mrb[40].mxu1 %vm3690_vm2, %v11220_v47  ;;  %v11274_v33 = vpack.c.bf16 %v3818_v21, %v3817_v32  ;;  %v3820_v16 = vld [vmem:[#allocation3 + $0x16f] sm:$0xff]  ;;  %v3823_v9 = vld [vmem:[#allocation3 + $0x1a7] sm:$0xff] }
 0x384   : > { %8683 = vmatprep.mubr.msk.bf16.mxu1 %vm3690_vm2, %v11222_v29  ;;  %v3822_v43 = vld [vmem:[#allocation3 + $0x18f] sm:$0xff]  ;;  %v11280_v62 = vpack.c.bf16 %v3820_v16, %v3819_v48  ;;  %v3825_v1 = vld [vmem:[#allocation3 + $0x1c7] sm:$0xff] }
 0x385   : > { %v11282_v13 = vpack.c.bf16 %v3822_v43, %v3821_v44  ;;  %v3824_v8 = vld [vmem:[#allocation3 + $0x1af] sm:$0xff] }
 0x386   : > { %v3877_v39 = vld [vmem:[#allocation3 + $0x1e8] sm:$0xff]  ;;  %v11288_v17 = vpack.c.bf16 %v3824_v8, %v3823_v9  ;;  %v4329_v2 = vld [vmem:[#allocation3 + $0x11] sm:$0xff] }
 0x387   : > { %v3826_v56 = vld [vmem:[#allocation3 + $0x1cf] sm:$0xff] }
 0x388   : > { %v3878_v40 = vld [vmem:[#allocation3 + $0x1f0] sm:$0xff]  ;;  %v11290_v63 = vpack.c.bf16 %v3826_v56, %v3825_v1 }
 0x389   : > { %v11228_v45 = vpack.c.bf16 %v3878_v40, %v3877_v39  ;;  %v4328_v15 = vld [vmem:[#allocation3 + $0x9] sm:$0xff]  ;;  %v4343_v32 = vld [vmem:[#allocation3 + $0xf1] sm:$0xff] }
 0x38a   : > { %v3828_v3 = vld [vmem:[#allocation3 + $0x1ef] sm:$0xff]  ;;  %v3827_v39 = vld [vmem:[#allocation3 + $0x1e7] sm:$0xff]  ;;  %v4360_v40 = vpack.c.bf16 %v4329_v2, %v4328_v15 }
 0x38b   : > { %8684 = vmatmul.mubr.msk.bf16.gmra.mrb[44].mxu1 %vm3690_vm2, %v11228_v45  ;;  %v4330_v46 = vld [vmem:[#allocation3 + $0x29] sm:$0xff]  ;;  %v4345_v43 = vld [vmem:[#allocation3 + $0x111] sm:$0xff] }
 0x38c   : > { %8689 = vmatprep.mubr.msk.bf16.mxu1 %vm3690_vm2, %v3829_v6  ;;  %v11296_v6 = vpack.c.bf16 %v3828_v3, %v3827_v39  ;;  %v4332_v53 = vld [vmem:[#allocation3 + $0x49] sm:$0xff]  ;;  %v11301_v18 = vpack.c.bf16 %v4331_v51, %v4330_v46  ;;  %v4347_v56 = vld [vmem:[#allocation3 + $0x131] sm:$0xff] }
 0x38d   : > { %v11306_v0 = vpack.c.bf16 %v4333_v59, %v4332_v53  ;;  %v4334_v49 = vld [vmem:[#allocation3 + $0x69] sm:$0xff]  ;;  %v4349_v1 = vld [vmem:[#allocation3 + $0x151] sm:$0xff] }
 0x38e   : > { %v4336_v25 = vld [vmem:[#allocation3 + $0x89] sm:$0xff]  ;;  %v4351_v39 = vld [vmem:[#allocation3 + $0x171] sm:$0xff] }
 0x38f   : > { %v4338_v34 = vld [vmem:[#allocation3 + $0xa9] sm:$0xff]  ;;  %v4353_v46 = vld [vmem:[#allocation3 + $0x191] sm:$0xff] }
 0x390   : > { %v4340_v30 = vld [vmem:[#allocation3 + $0xc9] sm:$0xff] }
 0x391   : > { %v11323_v21 = vpack.c.bf16 %v4341_v12, %v4340_v30  ;;  %v4342_v28 = vld [vmem:[#allocation3 + $0xe9] sm:$0xff]  ;;  %v4359_v30 = vld [vmem:[#allocation3 + $0x1f1] sm:$0xff] }
 0x392   : > { %v4344_v16 = vld [vmem:[#allocation3 + $0x109] sm:$0xff]  ;;  %v11329_v48 = vpack.c.bf16 %v4343_v32, %v4342_v28 }
 0x393   : > { %8690 = vmatmul.mubr.msk.bf16.vlgmr.msra.gmra.mrb[16].mxu1 %vm3690_vm2, %v11233_v27  ;;  %v11331_v44 = vpack.c.bf16 %v4345_v43, %v4344_v16  ;;  %v4346_v8 = vld [vmem:[#allocation3 + $0x129] sm:$0xff]  ;;  %v9761_v43 = vld [vmem:[%s10168_s17 + $0x18] sm:$0xff]  }
 0x394   : > { %8722 = vmatpush3.bf16.msra.mxu1 %v11106_v10  ;;  %8693 = vmatprep.mubr.msk.bf16.mxu1 %vm3690_vm2, %v11240_v4  ;;  %v3808_v10 = vld [vmem:[#allocation3 + $0xaf] sm:$0xff]  ;;  %v11337_v15 = vpack.c.bf16 %v4347_v56, %v4346_v8  ;;  %v9762_v56 = vld [vmem:[%s10168_s17 + $0x20] sm:$0xff]  }
 0x395   : > { %8755 = vmatprep.subr.bf16.mxu1 %v11238_v60  ;;  %v11256_v37 = vpack.c.bf16 %v3808_v10, %v3807_v54  ;;  %v4335_v10 = vld [vmem:[#allocation3 + $0x71] sm:$0xff]  ;;  %v4348_v9 = vld [vmem:[#allocation3 + $0x149] sm:$0xff] }
 0x396   : > { %v4337_v54 = vld [vmem:[#allocation3 + $0x91] sm:$0xff]  ;;  %v11313_v22 = vpack.c.bf16 %v4335_v10, %v4334_v49  ;;  %v11339_v2 = vpack.c.bf16 %v4349_v1, %v4348_v9  ;;  %v4350_v3 = vld [vmem:[#allocation3 + $0x169] sm:$0xff] }
 0x397   : > { %v11315_v58 = vpack.c.bf16 %v4337_v54, %v4336_v25  ;;  %v11345_v51 = vpack.c.bf16 %v4351_v39, %v4350_v3  ;;  %v4354_v59 = vld [vmem:[#allocation3 + $0x1a9] sm:$0xff]  ;;  %v4355_v49 = vld [vmem:[#allocation3 + $0x1b1] sm:$0xff] }
 0x398   : > { %v4356_v10 = vld [vmem:[#allocation3 + $0x1c9] sm:$0xff]  ;;  %v4357_v25 = vld [vmem:[#allocation3 + $0x1d1] sm:$0xff]  ;;  %v11353_v54 = vpack.c.bf16 %v4355_v49, %v4354_v59 }
 0x399   : > { %v9752_v28 = vld [vmem:[%s11852_s6 + $0x28] sm:$0xff]   ;;  %v9753_v16 = vld [vmem:[%s11852_s6 + $0x30] sm:$0xff]  }
 0x39a   : > { %v5826_v8 = vld [vmem:[#allocation3 + $0xb0] sm:$0xff]  ;;  %v5825_v1 = vld [vmem:[#allocation3 + $0xa8] sm:$0xff] }
 0x39b   : > { %8694 = vmatmul.mubr.msk.bf16.gmra.mrb[20].mxu1 %vm3690_vm2, %v11248_v23  ;;  %v5828_v9 = vld [vmem:[#allocation3 + $0xd0] sm:$0xff]  ;;  %v5854_v3 = vpack.c.bf16 %v5826_v8, %v5825_v1  ;;  %v5827_v39 = vld [vmem:[#allocation3 + $0xc8] sm:$0xff] }
 0x39c   : > { %8697 = vmatprep.mubr.msk.bf16.mxu1 %vm3690_vm2, %v11250_v57  ;;  %v5830_v59 = vld [vmem:[#allocation3 + $0xf0] sm:$0xff] }
 0x39d   : > { %v9764_v49 = vld [vmem:[%s10168_s17 + $0x30] sm:$0xff]  }
 0x3a3   : > { %8698 = vmatmul.mubr.msk.bf16.gmra.mrb[24].mxu1 %vm3690_vm2, %v11256_v37 }
 0x3a4   : > { %8701 = vmatprep.mubr.msk.bf16.mxu1 %vm3690_vm2, %v11258_v55 }
 0x3ab   : > { %8702 = vmatmul.mubr.msk.bf16.gmra.mrb[28].mxu1 %vm3690_vm2, %v11264_v11 }
 0x3ac   : > { %8705 = vmatprep.mubr.msk.bf16.mxu1 %vm3690_vm2, %v11266_v36 }
 0x3b3   : > { %8706 = vmatmul.mubr.msk.bf16.gmra.mrb[32].mxu1 %vm3690_vm2, %v11272_v41 }
 0x3b4   : > { %8709 = vmatprep.mubr.msk.bf16.mxu1 %vm3690_vm2, %v11274_v33 }
 0x3bb   : > { %8710 = vmatmul.mubr.msk.bf16.gmra.mrb[36].mxu1 %vm3690_vm2, %v11280_v62 }
 0x3bc   : > { %8713 = vmatprep.mubr.msk.bf16.mxu1 %vm3690_vm2, %v11282_v13 }
 0x3c3   : > { %8714 = vmatmul.mubr.msk.bf16.gmra.mrb[40].mxu1 %vm3690_vm2, %v11288_v17 }
 0x3c4   : > { %8717 = vmatprep.mubr.msk.bf16.mxu1 %vm3690_vm2, %v11290_v63 }
 0x3cb   : > { %8718 = vmatmul.mubr.msk.bf16.gmra.mrb[44].mxu1 %vm3690_vm2, %v11296_v6 }
 0x3cc   : > { %8723 = vmatprep.mubr.msk.bf16.mxu1 %vm3690_vm2, %v4360_v40  ;;  %v4352_v40 = vld [vmem:[#allocation3 + $0x189] sm:$0xff] }
 0x3cd   : > { %v11347_v53 = vpack.c.bf16 %v4353_v46, %v4352_v40  ;;  %v5855_v40 = vpack.c.bf16 %v5828_v9, %v5827_v39  ;;  %v9763_v46 = vld [vmem:[%s10168_s17 + $0x28] sm:$0xff]  }
 0x3d3   : > { %8724 = vmatmul.mubr.msk.bf16.vlgmr.msra.gmra.mrb[16].mxu1 %vm3690_vm2, %v11301_v18 }
 0x3d4   : > { %8756 = vmatpush3.bf16.msra.mxu1 %v11238_v60  ;;  %8727 = vmatprep.mubr.msk.bf16.mxu1 %vm3690_vm2, %v11306_v0  ;;  %v4339_v60 = vld [vmem:[#allocation3 + $0xb1] sm:$0xff] }
 0x3d5   : > { %8789 = vmatprep.subr.bf16.mxu1 %v9751_v35  ;;  %v11321_v20 = vpack.c.bf16 %v4339_v60, %v4338_v34  ;;  %v11355_v34 = vpack.c.bf16 %v4357_v25, %v4356_v10  ;;  %v4358_v60 = vld [vmem:[#allocation3 + $0x1e9] sm:$0xff] }
 0x3d6   : > { %v11361_v12 = vpack.c.bf16 %v4359_v30, %v4358_v60  ;;  %v5832_v10 = vld [vmem:[#allocation3 + $0x110] sm:$0xff]  ;;  %v5829_v25 = vld [vmem:[#allocation3 + $0xe8] sm:$0xff] }
 0x3d7   : > { %v5856_v60 = vpack.c.bf16 %v5830_v59, %v5829_v25  ;;  %v5831_v30 = vld [vmem:[#allocation3 + $0x108] sm:$0xff] }
 0x3db   : > { %8728 = vmatmul.mubr.msk.bf16.gmra.mrb[20].mxu1 %vm3690_vm2, %v11313_v22 }
 0x3dc   : > { %8731 = vmatprep.mubr.msk.bf16.mxu1 %vm3690_vm2, %v11315_v58 }
 0x3e3   : > { %8732 = vmatmul.mubr.msk.bf16.gmra.mrb[24].mxu1 %vm3690_vm2, %v11321_v20 }
 0x3e4   : > { %8735 = vmatprep.mubr.msk.bf16.mxu1 %vm3690_vm2, %v11323_v21 }
 0x3eb   : > { %8736 = vmatmul.mubr.msk.bf16.gmra.mrb[28].mxu1 %vm3690_vm2, %v11329_v48 }
 0x3ec   : > { %8739 = vmatprep.mubr.msk.bf16.mxu1 %vm3690_vm2, %v11331_v44 }
 0x3f3   : > { %8740 = vmatmul.mubr.msk.bf16.gmra.mrb[32].mxu1 %vm3690_vm2, %v11337_v15 }
 0x3f4   : > { %8743 = vmatprep.mubr.msk.bf16.mxu1 %vm3690_vm2, %v11339_v2 }
 0x3fb   : > { %8744 = vmatmul.mubr.msk.bf16.gmra.mrb[36].mxu1 %vm3690_vm2, %v11345_v51 }
 0x3fc   : > { %8747 = vmatprep.mubr.msk.bf16.mxu1 %vm3690_vm2, %v11347_v53 }
 0x403   : > { %8748 = vmatmul.mubr.msk.bf16.gmra.mrb[40].mxu1 %vm3690_vm2, %v11353_v54 }
 0x404   : > { %8751 = vmatprep.mubr.msk.bf16.mxu1 %vm3690_vm2, %v11355_v34 }
 0x40b   : > { %8752 = vmatmul.mubr.msk.bf16.gmra.mrb[44].mxu1 %vm3690_vm2, %v11361_v12 }
 0x40c   : > { %8757 = vmatprep.mubr.msk.bf16.mxu1 %vm3690_vm2, %v11233_v27  ;;  %v4657_v27 = vld [vmem:[#allocation3 + $0x20f] sm:$0xff] }
 0x413   : > { %8758 = vmatmul.mubr.msk.bf16.vlgmr.msra.gmra.mrb[16].mxu1 %vm3690_vm2, %v11240_v4 }
 0x414   : > { %8790 = vmatpush3.bf16.msra.mxu1 %v9751_v35  ;;  %8761 = vmatprep.mubr.msk.bf16.mxu1 %vm3690_vm2, %v11248_v23  ;;  %v4656_v35 = vld [vmem:[#allocation3 + $0x207] sm:$0xff] }
 0x415   : > { %8823 = vmatprep.subr.bf16.mxu1 %v9752_v28  ;;  %v11398_v32 = vpack.c.bf16 %v4657_v27, %v4656_v35  ;;  %v9765_v27 = vld [vmem:[%s10168_s17 + $0x38] sm:$0xff]   ;;  %v5834_v35 = vld [vmem:[#allocation3 + $0x130] sm:$0xff] }
 0x41b   : > { %8762 = vmatmul.mubr.msk.bf16.gmra.mrb[20].mxu1 %vm3690_vm2, %v11250_v57 }
 0x41c   : > { %8765 = vmatprep.mubr.msk.bf16.mxu1 %vm3690_vm2, %v11256_v37 }
 0x423   : > { %8766 = vmatmul.mubr.msk.bf16.gmra.mrb[24].mxu1 %vm3690_vm2, %v11258_v55 }
 0x424   : > { %8769 = vmatprep.mubr.msk.bf16.mxu1 %vm3690_vm2, %v11264_v11 }
 0x42b   : > { %8770 = vmatmul.mubr.msk.bf16.gmra.mrb[28].mxu1 %vm3690_vm2, %v11266_v36 }
 0x42c   : > { %8773 = vmatprep.mubr.msk.bf16.mxu1 %vm3690_vm2, %v11272_v41 }
 0x433   : > { %8774 = vmatmul.mubr.msk.bf16.gmra.mrb[32].mxu1 %vm3690_vm2, %v11274_v33 }
 0x434   : > { %8777 = vmatprep.mubr.msk.bf16.mxu1 %vm3690_vm2, %v11280_v62 }
 0x43b   : > { %8778 = vmatmul.mubr.msk.bf16.gmra.mrb[36].mxu1 %vm3690_vm2, %v11282_v13 }
 0x43c   : > { %8781 = vmatprep.mubr.msk.bf16.mxu1 %vm3690_vm2, %v11288_v17 }
 0x443   : > { %8782 = vmatmul.mubr.msk.bf16.gmra.mrb[40].mxu1 %vm3690_vm2, %v11290_v63 }
 0x444   : > { %8785 = vmatprep.mubr.msk.bf16.mxu1 %vm3690_vm2, %v11296_v6 }
 0x44b   : > { %8786 = vmatmul.mubr.msk.bf16.gmra.mrb[44].mxu1 %vm3690_vm2, %v11398_v32 }
 0x44c   : > { %8791 = vmatprep.mubr.msk.bf16.mxu1 %vm3690_vm2, %v11101_v52  ;;  %v4955_v52 = vld [vmem:[#allocation3 + $0x210] sm:$0xff] }
 0x453   : > { %8792 = vmatmul.mubr.msk.bf16.vlgmr.msra.gmra.mrb[16].mxu1 %vm3690_vm2, %v11109_v19  ;;  %v4954_v19 = vld [vmem:[#allocation3 + $0x208] sm:$0xff] }
 0x454   : > { %8824 = vmatpush3.bf16.msra.mxu1 %v9752_v28  ;;  %8795 = vmatprep.mubr.msk.bf16.mxu1 %vm3690_vm2, %v11124_v14  ;;  %v11435_v14 = vpack.c.bf16 %v4955_v52, %v4954_v19  ;;  %v5857_v28 = vpack.c.bf16 %v5832_v10, %v5831_v30  ;;  %v5833_v52 = vld [vmem:[#allocation3 + $0x128] sm:$0xff] }
 0x455   : > { %8857 = vmatprep.subr.bf16.mxu1 %v9753_v16  ;;  %v5858_v19 = vpack.c.bf16 %v5834_v35, %v5833_v52 }
 0x45b   : > { %8796 = vmatmul.mubr.msk.bf16.gmra.mrb[20].mxu1 %vm3690_vm2, %v11127_v42  ;;  %v9754_v42 = vld [vmem:[%s11852_s6 + $0x38] sm:$0xff]  }
 0x45c   : > { %8799 = vmatprep.mubr.msk.bf16.mxu1 %vm3690_vm2, %v11140_v24  ;;  %v5252_v24 = vld [vmem:[#allocation3 + $0x209] sm:$0xff] }
 0x463   : > { %8800 = vmatmul.mubr.msk.bf16.gmra.mrb[24].mxu1 %vm3690_vm2, %v11143_v7  ;;  %v5253_v7 = vld [vmem:[#allocation3 + $0x211] sm:$0xff] }
 0x464   : > { %8803 = vmatprep.mubr.msk.bf16.mxu1 %vm3690_vm2, %v11158_v38  ;;  %v11472_v38 = vpack.c.bf16 %v5253_v7, %v5252_v24  ;;  %v9767_v7 = vld [vmem:[%s10168_s17 + $0x48] sm:$0xff]  }
 0x46b   : > { %8804 = vmatmul.mubr.msk.bf16.gmra.mrb[28].mxu1 %vm3690_vm2, %v11162_v61  ;;  %v9755_v61 = vld [vmem:[%s11852_s6 + $0x40] sm:$0xff]  }
 0x46c   : > { %8807 = vmatprep.mubr.msk.bf16.mxu1 %vm3690_vm2, %v11182_v5  ;;  %v5551_v5 = vld [vmem:[#allocation3 + $0x227] sm:$0xff] }
 0x473   : > { %8808 = vmatmul.mubr.msk.bf16.gmra.mrb[32].mxu1 %vm3690_vm2, %v11186_v26  ;;  %v5552_v26 = vld [vmem:[#allocation3 + $0x22f] sm:$0xff] }
 0x474   : > { %8811 = vmatprep.mubr.msk.bf16.mxu1 %vm3690_vm2, %v11202_v31 }
 0x47b   : > { %8812 = vmatmul.mubr.msk.bf16.gmra.mrb[36].mxu1 %vm3690_vm2, %v11206_v50 }
 0x47c   : > { %8815 = vmatprep.mubr.msk.bf16.mxu1 %vm3690_vm2, %v11220_v47 }
 0x483   : > { %8816 = vmatmul.mubr.msk.bf16.gmra.mrb[40].mxu1 %vm3690_vm2, %v11222_v29 }
 0x484   : > { %8819 = vmatprep.mubr.msk.bf16.mxu1 %vm3690_vm2, %v11228_v45 }
 0x48b   : > { %8820 = vmatmul.mubr.msk.bf16.gmra.mrb[44].mxu1 %vm3690_vm2, %v11435_v14 }
 0x48c   : > { %8825 = vmatprep.mubr.msk.bf16.mxu1 %vm3690_vm2, %v11301_v18 }
 0x493   : > { %8826 = vmatmul.mubr.msk.bf16.vlgmr.msra.gmra.mrb[16].mxu1 %vm3690_vm2, %v11306_v0 }
 0x494   : > { %8858 = vmatpush3.bf16.msra.mxu1 %v9753_v16  ;;  %8829 = vmatprep.mubr.msk.bf16.mxu1 %vm3690_vm2, %v11313_v22  ;;  %v5836_v16 = vld [vmem:[#allocation3 + $0x150] sm:$0xff] }
 0x495   : > { %8891 = vmatprep.subr.bf16.mxu1 %v9754_v42 }
 0x49b   : > { %8830 = vmatmul.mubr.msk.bf16.gmra.mrb[20].mxu1 %vm3690_vm2, %v11315_v58 }
 0x49c   : > { %8833 = vmatprep.mubr.msk.bf16.mxu1 %vm3690_vm2, %v11321_v20 }
 0x4a3   : > { %8834 = vmatmul.mubr.msk.bf16.gmra.mrb[24].mxu1 %vm3690_vm2, %v11323_v21 }
 0x4a4   : > { %8837 = vmatprep.mubr.msk.bf16.mxu1 %vm3690_vm2, %v11329_v48 }
 0x4ab   : > { %8838 = vmatmul.mubr.msk.bf16.gmra.mrb[28].mxu1 %vm3690_vm2, %v11331_v44 }
 0x4ac   : > { %8841 = vmatprep.mubr.msk.bf16.mxu1 %vm3690_vm2, %v11337_v15 }
 0x4b3   : > { %8842 = vmatmul.mubr.msk.bf16.gmra.mrb[32].mxu1 %vm3690_vm2, %v11339_v2 }
 0x4b4   : > { %8845 = vmatprep.mubr.msk.bf16.mxu1 %vm3690_vm2, %v11345_v51 }
 0x4bb   : > { %8846 = vmatmul.mubr.msk.bf16.gmra.mrb[36].mxu1 %vm3690_vm2, %v11347_v53 }
 0x4bc   : > { %8849 = vmatprep.mubr.msk.bf16.mxu1 %vm3690_vm2, %v11353_v54 }
 0x4c3   : > { %8850 = vmatmul.mubr.msk.bf16.gmra.mrb[40].mxu1 %vm3690_vm2, %v11355_v34 }
 0x4c4   : > { %8853 = vmatprep.mubr.msk.bf16.mxu1 %vm3690_vm2, %v11361_v12 }
 0x4cb   : > { %8854 = vmatmul.mubr.msk.bf16.gmra.mrb[44].mxu1 %vm3690_vm2, %v11472_v38 }
 0x4cc   : > { %8859 = vmatprep.mubr.msk.bf16.mxu1 %vm3690_vm2, %v11240_v4  ;;  %v5568_v4 = vpack.c.bf16 %v5552_v26, %v5551_v5  ;;  %v9769_v5 = vld [vmem:[%s10168_s17 + $0x58] sm:$0xff]   ;;  %v9770_v26 = vld [vmem:[%s10168_s17 + $0x60] sm:$0xff]  }
 0x4d3   : > { %8860 = vmatmul.mubr.msk.bf16.vlgmr.msra.gmra.mrb[16].mxu1 %vm3690_vm2, %v11248_v23  ;;  %v5820_v23 = vld [vmem:[#allocation3 + $0x50] sm:$0xff] }
 0x4d4   : > { %8892 = vmatpush3.bf16.msra.mxu1 %v9754_v42  ;;  %8863 = vmatprep.mubr.msk.bf16.mxu1 %vm3690_vm2, %v11250_v57  ;;  %v5819_v57 = vld [vmem:[#allocation3 + $0x48] sm:$0xff] }
 0x4d5   : > { %8925 = vmatprep.subr.bf16.mxu1 %v9755_v61  ;;  %v5835_v42 = vld [vmem:[#allocation3 + $0x148] sm:$0xff] }
 0x4d6   : > { %v5859_v24 = vpack.c.bf16 %v5836_v16, %v5835_v42 }
 0x4db   : > { %8864 = vmatmul.mubr.msk.bf16.gmra.mrb[20].mxu1 %vm3690_vm2, %v11256_v37  ;;  %v5851_v37 = vpack.c.bf16 %v5820_v23, %v5819_v57 }
 0x4dc   : > { %8867 = vmatprep.mubr.msk.bf16.mxu1 %vm3690_vm2, %v11258_v55  ;;  %v9756_v55 = vld [vmem:[%s11855_s9] sm:$0xff]  }
 0x4dd   : > { %8959 = vmatprep.subr.bf16.mxu0 %v9756_v55 }
 0x4de   : > { %8960 = vmatpush3.bf16.msra.mxu0 %v9756_v55 }
 0x4e3   : > { %8868 = vmatmul.mubr.msk.bf16.gmra.mrb[24].mxu1 %vm3690_vm2, %v11264_v11  ;;  %v9757_v11 = vld [vmem:[%s10168_s17] sm:$0xff]  }
 0x4e4   : > { %8871 = vmatprep.mubr.msk.bf16.mxu1 %vm3690_vm2, %v11266_v36  ;;  %v9758_v36 = vld [vmem:[%s11854_s8] sm:$0xff]   ;;  %8961 = vmatprep.mubr.msk.bf16.mxu0 %vm3690_vm2, %v9757_v11 }
 0x4e5   : > { %8993 = vmatprep.subr.bf16.mxu0 %v9758_v36 }
 0x4eb   : > { %8872 = vmatmul.mubr.msk.bf16.gmra.mrb[28].mxu1 %vm3690_vm2, %v11272_v41  ;;  %v9759_v41 = vld [vmem:[%s10168_s17 + $0x8] sm:$0xff]  }
 0x4ec   : > { %8875 = vmatprep.mubr.msk.bf16.mxu1 %vm3690_vm2, %v11274_v33  ;;  %v5822_v33 = vld [vmem:[#allocation3 + $0x70] sm:$0xff]  ;;  %8962 = vmatmul.mubr.msk.bf16.vlgmr.msra.gmra.mrb[32].mxu0 %vm3690_vm2, %v9759_v41 }
 0x4ed   : > { %8994 = vmatpush3.bf16.msra.mxu0 %v9758_v36 }
 0x4f3   : > { %8876 = vmatmul.mubr.msk.bf16.gmra.mrb[32].mxu1 %vm3690_vm2, %v11280_v62  ;;  %v9760_v62 = vld [vmem:[%s10168_s17 + $0x10] sm:$0xff]  }
 0x4f4   : > { %8879 = vmatprep.mubr.msk.bf16.mxu1 %vm3690_vm2, %v11282_v13  ;;  %v5824_v13 = vld [vmem:[#allocation3 + $0x90] sm:$0xff]  ;;  %8965 = vmatprep.mubr.msk.bf16.mxu0 %vm3690_vm2, %v9760_v62 }
 0x4f5   : > { %8966 = vmatmul.mubr.msk.bf16.gmra.mrb[36].mxu0 %vm3690_vm2, %v9761_v43 }
 0x4f6   : > { %8969 = vmatprep.mubr.msk.bf16.mxu0 %vm3690_vm2, %v9762_v56 }
 0x4fb   : > { %8880 = vmatmul.mubr.msk.bf16.gmra.mrb[36].mxu1 %vm3690_vm2, %v11288_v17  ;;  %v5821_v17 = vld [vmem:[#allocation3 + $0x68] sm:$0xff] }
 0x4fc   : > { %8883 = vmatprep.mubr.msk.bf16.mxu1 %vm3690_vm2, %v11290_v63  ;;  %v5852_v63 = vpack.c.bf16 %v5822_v33, %v5821_v17 }
 0x4fd   : > { %8970 = vmatmul.mubr.msk.bf16.gmra.mrb[40].mxu0 %vm3690_vm2, %v9763_v46 }
 0x4fe   : > { %8973 = vmatprep.mubr.msk.bf16.mxu0 %vm3690_vm2, %v9764_v49 }
 0x503   : > { %8884 = vmatmul.mubr.msk.bf16.gmra.mrb[40].mxu1 %vm3690_vm2, %v11296_v6  ;;  %v5823_v6 = vld [vmem:[#allocation3 + $0x88] sm:$0xff] }
 0x504   : > { %8887 = vmatprep.mubr.msk.bf16.mxu1 %vm3690_vm2, %v11398_v32  ;;  %v5853_v18 = vpack.c.bf16 %v5824_v13, %v5823_v6  ;;  %v9766_v32 = vld [vmem:[%s10168_s17 + $0x40] sm:$0xff]  }
 0x505   : > { %8974 = vmatmul.mubr.msk.bf16.gmra.mrb[44].mxu0 %vm3690_vm2, %v9765_v27 }
 0x506   : > { %8977 = vmatprep.mubr.msk.bf16.mxu0 %vm3690_vm2, %v9766_v32 }
 0x50b   : > { %8888 = vmatmul.mubr.msk.bf16.gmra.mrb[44].mxu1 %vm3690_vm2, %v5568_v4  ;;  %v9771_v4 = vld [vmem:[%s10168_s17 + $0x68] sm:$0xff]  }
 0x50c   : > { %8893 = vmatprep.mubr.msk.bf16.mxu1 %vm3690_vm2, %v5851_v37 }
 0x50d   : > { %8978 = vmatmul.mubr.msk.bf16.gmra.mrb[48].mxu0 %vm3690_vm2, %v9767_v7 }
 0x513   : > { %8894 = vmatmul.mubr.msk.bf16.vlgmr.msra.gmra.mrb[16].mxu1 %vm3690_vm2, %v5852_v63 }
 0x514   : > { %8926 = vmatpush3.bf16.msra.mxu1 %v9755_v61  ;;  %8897 = vmatprep.mubr.msk.bf16.mxu1 %vm3690_vm2, %v5853_v18  ;;  %v9768_v61 = vld [vmem:[%s10168_s17 + $0x50] sm:$0xff]  }
 0x515   : > { %8981 = vmatprep.mubr.msk.bf16.mxu0 %vm3690_vm2, %v9768_v61 }
 0x516   : > { %8982 = vmatmul.mubr.msk.bf16.gmra.mrb[52].mxu0 %vm3690_vm2, %v9769_v5 }
 0x517   : > { %8985 = vmatprep.mubr.msk.bf16.mxu0 %vm3690_vm2, %v9770_v26 }
 0x51b   : > { %8898 = vmatmul.mubr.msk.bf16.gmra.mrb[20].mxu1 %vm3690_vm2, %v5854_v3 }
 0x51c   : > { %8901 = vmatprep.mubr.msk.bf16.mxu1 %vm3690_vm2, %v5855_v40 }
 0x51e   : > { %8986 = vmatmul.mubr.msk.bf16.gmra.mrb[56].mxu0 %vm3690_vm2, %v9771_v4 }
 0x523   : > { %8902 = vmatmul.mubr.msk.bf16.gmra.mrb[24].mxu1 %vm3690_vm2, %v5856_v60 }
 0x524   : > { %8905 = vmatprep.mubr.msk.bf16.mxu1 %vm3690_vm2, %v5857_v28 }
 0x52b   : > { %8906 = vmatmul.mubr.msk.bf16.gmra.mrb[28].mxu1 %vm3690_vm2, %v5858_v19 }
 0x52c   : > { %8909 = vmatprep.mubr.msk.bf16.mxu1 %vm3690_vm2, %v5859_v24 }
 0x533   : > { %8910 = vmatmul.mubr.msk.bf16.gmra.mrb[32].mxu1 %vm3690_vm2, %v11202_v31  ;;  %v5849_v31 = vld [vmem:[#allocation3 + $0x228] sm:$0xff] }
 0x534   : > { %8913 = vmatprep.mubr.msk.bf16.mxu1 %vm3690_vm2, %v11206_v50  ;;  %v5850_v50 = vld [vmem:[#allocation3 + $0x230] sm:$0xff] }
 0x535   : > { %v5866_v23 = vpack.c.bf16 %v5850_v50, %v5849_v31 }
 0x53b   : > { %8914 = vmatmul.mubr.msk.bf16.gmra.mrb[36].mxu1 %vm3690_vm2, %v11220_v47  ;;  %v6147_v47 = vld [vmem:[#allocation3 + $0x229] sm:$0xff] }
 0x53c   : > { %8917 = vmatprep.mubr.msk.bf16.mxu1 %vm3690_vm2, %v11222_v29  ;;  %v6148_v29 = vld [vmem:[#allocation3 + $0x231] sm:$0xff] }
 0x543   : > { %8918 = vmatmul.mubr.msk.bf16.gmra.mrb[40].mxu1 %vm3690_vm2, %v11228_v45  ;;  %v6164_v45 = vpack.c.bf16 %v6148_v29, %v6147_v47 }
 0x544   : > { %8921 = vmatprep.mubr.msk.bf16.mxu1 %vm3690_vm2, %v11435_v14 }
 0x54b   : > { %8922 = vmatmul.mubr.msk.bf16.gmra.mrb[44].mxu1 %vm3690_vm2, %v5866_v23 }
 0x54c   : > { %8927 = vmatprep.mubr.msk.bf16.mxu1 %vm3690_vm2, %v11306_v0  ;;  %v9772_v0 = vld [vmem:[%s10168_s17 + $0x70] sm:$0xff]  }
 0x54d   : > { %8989 = vmatprep.mubr.msk.bf16.mxu0 %vm3690_vm2, %v9772_v0 }
 0x553   : > { %8928 = vmatmul.mubr.msk.bf16.vlgmr.msra.gmra.mrb[16].mxu1 %vm3690_vm2, %v11313_v22  ;;  %v9773_v22 = vld [vmem:[%s10168_s17 + $0x78] sm:$0xff]  }
 0x554   : > { %8931 = vmatprep.mubr.msk.bf16.mxu1 %vm3690_vm2, %v11315_v58  ;;  %8990 = vmatmul.mubr.msk.bf16.gmra.mrb[60].mxu0 %vm3690_vm2, %v9773_v22  ;;  %v11604_v58 = vld [vmem:[%s11851_s5] ss:$0 sm:$0xff] }
 0x55b   : > { %8932 = vmatmul.mubr.msk.bf16.gmra.mrb[20].mxu1 %vm3690_vm2, %v11321_v20 }
 0x55c   : > { %8935 = vmatprep.mubr.msk.bf16.mxu1 %vm3690_vm2, %v11323_v21  ;;  %v11609_v21 = vld [vmem:[%s11853_s7] ss:$0 sm:$0xff] }
 0x563   : > { %8936 = vmatmul.mubr.msk.bf16.gmra.mrb[24].mxu1 %vm3690_vm2, %v11329_v48 }
 0x564   : > { %8939 = vmatprep.mubr.msk.bf16.mxu1 %vm3690_vm2, %v11331_v44 }
 0x56b   : > { %8940 = vmatmul.mubr.msk.bf16.gmra.mrb[28].mxu1 %vm3690_vm2, %v11337_v15 }
 0x56c   : > { %8943 = vmatprep.mubr.msk.bf16.mxu1 %vm3690_vm2, %v11339_v2 }
 0x573   : > { %8944 = vmatmul.mubr.msk.bf16.gmra.mrb[32].mxu1 %vm3690_vm2, %v11345_v51 }
 0x574   : > { %8947 = vmatprep.mubr.msk.bf16.mxu1 %vm3690_vm2, %v11347_v53 }
 0x57b   : > { %8948 = vmatmul.mubr.msk.bf16.gmra.mrb[36].mxu1 %vm3690_vm2, %v11353_v54 }
 0x57c   : > { %8951 = vmatprep.mubr.msk.bf16.mxu1 %vm3690_vm2, %v11355_v34 }
 0x583   : > { %8952 = vmatmul.mubr.msk.bf16.gmra.mrb[40].mxu1 %vm3690_vm2, %v11361_v12 }
 0x584   : > { %8955 = vmatprep.mubr.msk.bf16.mxu1 %vm3690_vm2, %v11472_v38 }
 0x58b   : > { %8956 = vmatmul.mubr.msk.bf16.gmra.mrb[44].mxu1 %vm3690_vm2, %v6164_v45 }
 0x626   : > { %v8929_v20 = vpop.f32.mrb[16].mxu1 }
 0x627   : > { %v9047_v48 = vadd.f32 %v8929_v20, %v11604_v58  ;;  %v6256_v44 = vpop.f32.mrb[17].mxu1 }
 0x628   : > { %v9049_v15 = vadd.f32 %v11604_v58, %v6256_v44  ;;  %v8930_v2 = vpop.f32.mrb[18].mxu1 }
 0x629   : > { %v9048_v51 = vadd.f32 %v9047_v48, %v11609_v21  ;;  %v9051_v53 = vadd.f32 %v8930_v2, %v11604_v58  ;;  %v6259_v54 = vpop.f32.mrb[19].mxu1 }
 0x62a   : > { %v9050_v34 = vadd.f32 %v9049_v15, %v11609_v21  ;;  %v9053_v12 = vadd.f32 %v11604_v58, %v6259_v54 }
 0x62b   : > { %v9052_v14 = vadd.f32 %v9051_v53, %v11609_v21  ;;  %v6488_v57 = vmax.f32 %v9048_v51, 0.0 }
 0x62c   : > { %v9054_v38 = vadd.f32 %v9053_v12, %v11609_v21  ;;  %v6486_v55 = vmax.f32 %v9050_v34, 0.0 }
 0x62d   : > { %v6489_v37 = vmax.f32 %v9052_v14, 0.0 }
 0x62e   : > { %v6487_v11 = vmax.f32 %v9054_v38, 0.0  ;;  %v8933_v36 = vpop.f32.mrb[20].mxu1 }
 0x62f   : > { %v6519_v41 = vpack.c.bf16 %v6489_v37, %v6488_v57  ;;  %v9055_v33 = vadd.f32 %v8933_v36, %v11604_v58  ;;  %v6272_v62 = vpop.f32.mrb[21].mxu1 }
 0x630   : > { %v6518_v13 = vpack.c.bf16 %v6487_v11, %v6486_v55  ;;  %v9057_v17 = vadd.f32 %v11604_v58, %v6272_v62  ;;  %v8934_v63 = vpop.f32.mrb[22].mxu1 }
 0x631   : > { %v9056_v6 = vadd.f32 %v9055_v33, %v11609_v21  ;;  %v9059_v18 = vadd.f32 %v8934_v63, %v11604_v58  ;;  %v6275_v43 = vpop.f32.mrb[23].mxu1 }
 0x632   : > { %v9058_v8 = vadd.f32 %v9057_v17, %v11609_v21  ;;  %v9061_v56 = vadd.f32 %v11604_v58, %v6275_v43  ;;  %8995 = vmatprep.mubr.msk.bf16.mxu0 %vm3690_vm2, %v6518_v13 }
 0x633   : > { %v9060_v9 = vadd.f32 %v9059_v18, %v11609_v21  ;;  %8996 = vmatmul.mubr.msk.bf16.vlgmr.msra.gmra.mrb[32].mxu0 %vm3690_vm2, %v6519_v41  ;;  %v6492_v3 = vmax.f32 %v9056_v6, 0.0 }
 0x634   : > { %v9062_v1 = vadd.f32 %v9061_v56, %v11609_v21  ;;  %v6490_v40 = vmax.f32 %v9058_v8, 0.0 }
 0x635   : > { %v6493_v39 = vmax.f32 %v9060_v9, 0.0 }
 0x636   : > { %v6491_v46 = vmax.f32 %v9062_v1, 0.0  ;;  %v8937_v59 = vpop.f32.mrb[24].mxu1 }
 0x637   : > { %v6521_v49 = vpack.c.bf16 %v6493_v39, %v6492_v3  ;;  %v9063_v10 = vadd.f32 %v8937_v59, %v11604_v58  ;;  %v6288_v25 = vpop.f32.mrb[25].mxu1 }
 0x638   : > { %v6520_v60 = vpack.c.bf16 %v6491_v46, %v6490_v40  ;;  %v9065_v30 = vadd.f32 %v11604_v58, %v6288_v25  ;;  %v8938_v28 = vpop.f32.mrb[26].mxu1 }
 0x639   : > { %v9064_v27 = vadd.f32 %v9063_v10, %v11609_v21  ;;  %v9067_v35 = vadd.f32 %v8938_v28, %v11604_v58  ;;  %v6291_v32 = vpop.f32.mrb[27].mxu1 }
 0x63a   : > { %v9066_v16 = vadd.f32 %v9065_v30, %v11609_v21  ;;  %v9069_v52 = vadd.f32 %v11604_v58, %v6291_v32  ;;  %8999 = vmatprep.mubr.msk.bf16.mxu0 %vm3690_vm2, %v6520_v60 }
 0x63b   : > { %v9068_v19 = vadd.f32 %v9067_v35, %v11609_v21  ;;  %9000 = vmatmul.mubr.msk.bf16.gmra.mrb[36].mxu0 %vm3690_vm2, %v6521_v49  ;;  %v6496_v24 = vmax.f32 %v9064_v27, 0.0 }
 0x63c   : > { %v9070_v42 = vadd.f32 %v9069_v52, %v11609_v21  ;;  %v6494_v61 = vmax.f32 %v9066_v16, 0.0 }
 0x63d   : > { %v6497_v7 = vmax.f32 %v9068_v19, 0.0 }
 0x63e   : > { %v6495_v5 = vmax.f32 %v9070_v42, 0.0  ;;  %v8941_v26 = vpop.f32.mrb[28].mxu1 }
 0x63f   : > { %v6523_v4 = vpack.c.bf16 %v6497_v7, %v6496_v24  ;;  %v9071_v31 = vadd.f32 %v8941_v26, %v11604_v58  ;;  %v6304_v50 = vpop.f32.mrb[29].mxu1 }
 0x640   : > { %v6522_v23 = vpack.c.bf16 %v6495_v5, %v6494_v61  ;;  %v9073_v47 = vadd.f32 %v11604_v58, %v6304_v50  ;;  %v8942_v29 = vpop.f32.mrb[30].mxu1 }
 0x641   : > { %v9072_v45 = vadd.f32 %v9071_v31, %v11609_v21  ;;  %v9075_v0 = vadd.f32 %v8942_v29, %v11604_v58  ;;  %v6307_v22 = vpop.f32.mrb[31].mxu1 }
 0x642   : > { %v9074_v20 = vadd.f32 %v9073_v47, %v11609_v21  ;;  %v9077_v48 = vadd.f32 %v11604_v58, %v6307_v22  ;;  %9003 = vmatprep.mubr.msk.bf16.mxu0 %vm3690_vm2, %v6522_v23 }
 0x643   : > { %v9076_v44 = vadd.f32 %v9075_v0, %v11609_v21  ;;  %9004 = vmatmul.mubr.msk.bf16.gmra.mrb[40].mxu0 %vm3690_vm2, %v6523_v4  ;;  %v6500_v2 = vmax.f32 %v9072_v45, 0.0 }
 0x644   : > { %v9078_v15 = vadd.f32 %v9077_v48, %v11609_v21  ;;  %v6498_v53 = vmax.f32 %v9074_v20, 0.0 }
 0x645   : > { %v6501_v51 = vmax.f32 %v9076_v44, 0.0 }
 0x646   : > { %v6499_v54 = vmax.f32 %v9078_v15, 0.0  ;;  %v8945_v34 = vpop.f32.mrb[32].mxu1 }
 0x647   : > { %v6525_v12 = vpack.c.bf16 %v6501_v51, %v6500_v2  ;;  %v9079_v14 = vadd.f32 %v8945_v34, %v11604_v58  ;;  %v6320_v38 = vpop.f32.mrb[33].mxu1 }
 0x648   : > { %v6524_v57 = vpack.c.bf16 %v6499_v54, %v6498_v53  ;;  %v9081_v37 = vadd.f32 %v11604_v58, %v6320_v38  ;;  %v8946_v55 = vpop.f32.mrb[34].mxu1 }
 0x649   : > { %v9080_v11 = vadd.f32 %v9079_v14, %v11609_v21  ;;  %v9083_v36 = vadd.f32 %v8946_v55, %v11604_v58  ;;  %v6323_v41 = vpop.f32.mrb[35].mxu1 }
 0x64a   : > { %v9082_v33 = vadd.f32 %v9081_v37, %v11609_v21  ;;  %v9085_v62 = vadd.f32 %v11604_v58, %v6323_v41  ;;  %9007 = vmatprep.mubr.msk.bf16.mxu0 %vm3690_vm2, %v6524_v57 }
 0x64b   : > { %v9084_v13 = vadd.f32 %v9083_v36, %v11609_v21  ;;  %9008 = vmatmul.mubr.msk.bf16.gmra.mrb[44].mxu0 %vm3690_vm2, %v6525_v12  ;;  %v6504_v63 = vmax.f32 %v9080_v11, 0.0 }
 0x64c   : > { %v9086_v17 = vadd.f32 %v9085_v62, %v11609_v21  ;;  %v6502_v18 = vmax.f32 %v9082_v33, 0.0 }
 0x64d   : > { %v6505_v6 = vmax.f32 %v9084_v13, 0.0 }
 0x64e   : > { %v6503_v43 = vmax.f32 %v9086_v17, 0.0  ;;  %v8949_v8 = vpop.f32.mrb[36].mxu1 }
 0x64f   : > { %v6527_v56 = vpack.c.bf16 %v6505_v6, %v6504_v63  ;;  %v9087_v9 = vadd.f32 %v8949_v8, %v11604_v58  ;;  %v6336_v1 = vpop.f32.mrb[37].mxu1 }
 0x650   : > { %v6526_v3 = vpack.c.bf16 %v6503_v43, %v6502_v18  ;;  %v9089_v39 = vadd.f32 %v11604_v58, %v6336_v1  ;;  %v8950_v40 = vpop.f32.mrb[38].mxu1 }
 0x651   : > { %v9088_v46 = vadd.f32 %v9087_v9, %v11609_v21  ;;  %v9091_v59 = vadd.f32 %v8950_v40, %v11604_v58  ;;  %v6339_v49 = vpop.f32.mrb[39].mxu1 }
 0x652   : > { %v9090_v10 = vadd.f32 %v9089_v39, %v11609_v21  ;;  %v9093_v25 = vadd.f32 %v11604_v58, %v6339_v49  ;;  %9011 = vmatprep.mubr.msk.bf16.mxu0 %vm3690_vm2, %v6526_v3 }
 0x653   : > { %v9092_v60 = vadd.f32 %v9091_v59, %v11609_v21  ;;  %9012 = vmatmul.mubr.msk.bf16.gmra.mrb[48].mxu0 %vm3690_vm2, %v6527_v56  ;;  %v6508_v28 = vmax.f32 %v9088_v46, 0.0 }
 0x654   : > { %v9094_v30 = vadd.f32 %v9093_v25, %v11609_v21  ;;  %v6506_v35 = vmax.f32 %v9090_v10, 0.0 }
 0x655   : > { %v6509_v27 = vmax.f32 %v9092_v60, 0.0 }
 0x656   : > { %v6507_v32 = vmax.f32 %v9094_v30, 0.0  ;;  %v8953_v16 = vpop.f32.mrb[40].mxu1 }
 0x657   : > { %v6529_v52 = vpack.c.bf16 %v6509_v27, %v6508_v28  ;;  %v9095_v19 = vadd.f32 %v8953_v16, %v11604_v58  ;;  %v6352_v42 = vpop.f32.mrb[41].mxu1 }
 0x658   : > { %v6528_v24 = vpack.c.bf16 %v6507_v32, %v6506_v35  ;;  %v9097_v7 = vadd.f32 %v11604_v58, %v6352_v42  ;;  %v8954_v61 = vpop.f32.mrb[42].mxu1 }
 0x659   : > { %v9096_v5 = vadd.f32 %v9095_v19, %v11609_v21  ;;  %v9099_v26 = vadd.f32 %v8954_v61, %v11604_v58  ;;  %v6355_v4 = vpop.f32.mrb[43].mxu1 }
 0x65a   : > { %v9098_v31 = vadd.f32 %v9097_v7, %v11609_v21  ;;  %v9101_v50 = vadd.f32 %v11604_v58, %v6355_v4  ;;  %9015 = vmatprep.mubr.msk.bf16.mxu0 %vm3690_vm2, %v6528_v24 }
 0x65b   : > { %v9100_v23 = vadd.f32 %v9099_v26, %v11609_v21  ;;  %9016 = vmatmul.mubr.msk.bf16.gmra.mrb[52].mxu0 %vm3690_vm2, %v6529_v52  ;;  %v6512_v29 = vmax.f32 %v9096_v5, 0.0 }
 0x65c   : > { %v9102_v47 = vadd.f32 %v9101_v50, %v11609_v21  ;;  %v6510_v0 = vmax.f32 %v9098_v31, 0.0 }
 0x65d   : > { %v6513_v45 = vmax.f32 %v9100_v23, 0.0 }
 0x65e   : > { %v6511_v22 = vmax.f32 %v9102_v47, 0.0  ;;  %v8957_v20 = vpop.f32.mrb[44].mxu1 }
 0x65f   : > { %v6531_v48 = vpack.c.bf16 %v6513_v45, %v6512_v29  ;;  %v9103_v44 = vadd.f32 %v8957_v20, %v11604_v58  ;;  %v6368_v15 = vpop.f32.mrb[45].mxu1 }
 0x660   : > { %v6530_v2 = vpack.c.bf16 %v6511_v22, %v6510_v0  ;;  %v9105_v51 = vadd.f32 %v11604_v58, %v6368_v15  ;;  %v8958_v53 = vpop.f32.mrb[46].mxu1 }
 0x661   : > { %v9104_v54 = vadd.f32 %v9103_v44, %v11609_v21  ;;  %v9107_v34 = vadd.f32 %v8958_v53, %v11604_v58  ;;  %v6371_v12 = vpop.f32.mrb[47].mxu1 }
 0x662   : > { %v9106_v14 = vadd.f32 %v9105_v51, %v11609_v21  ;;  %v9109_v38 = vadd.f32 %v11604_v58, %v6371_v12  ;;  %9019 = vmatprep.mubr.msk.bf16.mxu0 %vm3690_vm2, %v6530_v2  ;;  %v11694_v58 = vld [vmem:[%s11856_s10] ss:$0 sm:$0xff] }
 0x663   : > { %v9108_v57 = vadd.f32 %v9107_v34, %v11609_v21  ;;  %9020 = vmatmul.mubr.msk.bf16.gmra.mrb[56].mxu0 %vm3690_vm2, %v6531_v48  ;;  %v6516_v55 = vmax.f32 %v9104_v54, 0.0 }
 0x664   : > { %v9110_v37 = vadd.f32 %v9109_v38, %v11609_v21  ;;  %v6514_v36 = vmax.f32 %v9106_v14, 0.0 }
 0x665   : > { %v6517_v11 = vmax.f32 %v9108_v57, 0.0 }
 0x666   : > { %v6515_v41 = vmax.f32 %v9110_v37, 0.0 }
 0x667   : > { %v6533_v33 = vpack.c.bf16 %v6517_v11, %v6516_v55 }
 0x668   : > { %v6532_v62 = vpack.c.bf16 %v6515_v41, %v6514_v36 }
 0x66a   : > { %9023 = vmatprep.mubr.msk.bf16.mxu0 %vm3690_vm2, %v6532_v62 }
 0x66b   : > { %9024 = vmatmul.mubr.msk.bf16.gmra.mrb[60].mxu0 %vm3690_vm2, %v6533_v33 }
 0x706   : > { %v8997_v13 = vpop.f32.mrb[32].mxu0 }
 0x707   : > { %v7089_v17 = vadd.f32 %v8997_v13, %v11694_v58  ;;  %v6953_v21 = vpop.f32.mrb[33].mxu0 }
 0x708   : > { %v7087_v63 = vadd.f32 %v11694_v58, %v6953_v21  ;;  %v8998_v6 = vpop.f32.mrb[34].mxu0 }
 0x709   : > { %v7895_v18 = vpack.c.bf16 %v7089_v17, %v7089_v17  ;;  %v7090_v43 = vadd.f32 %v8998_v6, %v11694_v58  ;;  %v6956_v8 = vpop.f32.mrb[35].mxu0 }
 0x70a   : > { %v7893_v56 = vpack.c.bf16 %v7087_v63, %v7087_v63  ;;  %v7088_v9 = vadd.f32 %v11694_v58, %v6956_v8 }
 0x70b   : > { %7250 = vst.msk [vmem:[%s11701_s30 + $0x8] sm:$0xf] %vm7247_vm4, %v7895_v18  ;;  %v7896_v1 = vpack.c.bf16 %v7090_v43, %v7090_v43 }
 0x70c   : > { %7248 = vst.msk [vmem:[%s11701_s30] sm:$0xf] %vm7247_vm4, %v7893_v56  ;;  %v7894_v3 = vpack.c.bf16 %v7088_v9, %v7088_v9 }
 0x70d   : > { %7251 = vst.msk [vmem:[%s11701_s30 + $0xc] sm:$0xf] %vm7247_vm4, %v7896_v1 }
 0x70e   : > { %7249 = vst.msk [vmem:[%s11701_s30 + $0x4] sm:$0xf] %vm7247_vm4, %v7894_v3  ;;  %v9001_v39 = vpop.f32.mrb[36].mxu0 }
 0x70f   : > { %v7093_v40 = vadd.f32 %v9001_v39, %v11694_v58  ;;  %v6969_v46 = vpop.f32.mrb[37].mxu0 }
 0x710   : > { %v7091_v59 = vadd.f32 %v11694_v58, %v6969_v46  ;;  %v9002_v49 = vpop.f32.mrb[38].mxu0 }
 0x711   : > { %v7899_v10 = vpack.c.bf16 %v7093_v40, %v7093_v40  ;;  %v7094_v25 = vadd.f32 %v9002_v49, %v11694_v58  ;;  %v6972_v60 = vpop.f32.mrb[39].mxu0 }
 0x712   : > { %v7897_v30 = vpack.c.bf16 %v7091_v59, %v7091_v59  ;;  %v7092_v28 = vadd.f32 %v11694_v58, %v6972_v60 }
 0x713   : > { %7254 = vst.msk [vmem:[%s11701_s30 + $0x18] sm:$0xf] %vm7247_vm4, %v7899_v10  ;;  %v7900_v27 = vpack.c.bf16 %v7094_v25, %v7094_v25 }
 0x714   : > { %7252 = vst.msk [vmem:[%s11701_s30 + $0x10] sm:$0xf] %vm7247_vm4, %v7897_v30  ;;  %v7898_v35 = vpack.c.bf16 %v7092_v28, %v7092_v28 }
 0x715   : > { %7255 = vst.msk [vmem:[%s11701_s30 + $0x1c] sm:$0xf] %vm7247_vm4, %v7900_v27 }
 0x716   : > { %7253 = vst.msk [vmem:[%s11701_s30 + $0x14] sm:$0xf] %vm7247_vm4, %v7898_v35  ;;  %v9005_v32 = vpop.f32.mrb[40].mxu0 }
 0x717   : > { %v7097_v16 = vadd.f32 %v9005_v32, %v11694_v58  ;;  %v6985_v52 = vpop.f32.mrb[41].mxu0 }
 0x718   : > { %v7095_v19 = vadd.f32 %v11694_v58, %v6985_v52  ;;  %v9006_v42 = vpop.f32.mrb[42].mxu0 }
 0x719   : > { %v7903_v24 = vpack.c.bf16 %v7097_v16, %v7097_v16  ;;  %v7098_v7 = vadd.f32 %v9006_v42, %v11694_v58  ;;  %v6988_v61 = vpop.f32.mrb[43].mxu0 }
 0x71a   : > { %v7901_v5 = vpack.c.bf16 %v7095_v19, %v7095_v19  ;;  %v7096_v26 = vadd.f32 %v11694_v58, %v6988_v61 }
 0x71b   : > { %7258 = vst.msk [vmem:[%s11701_s30 + $0x28] sm:$0xf] %vm7247_vm4, %v7903_v24  ;;  %v7904_v4 = vpack.c.bf16 %v7098_v7, %v7098_v7 }
 0x71c   : > { %7256 = vst.msk [vmem:[%s11701_s30 + $0x20] sm:$0xf] %vm7247_vm4, %v7901_v5  ;;  %v7902_v31 = vpack.c.bf16 %v7096_v26, %v7096_v26 }
 0x71d   : > { %7259 = vst.msk [vmem:[%s11701_s30 + $0x2c] sm:$0xf] %vm7247_vm4, %v7904_v4 }
 0x71e   : > { %7257 = vst.msk [vmem:[%s11701_s30 + $0x24] sm:$0xf] %vm7247_vm4, %v7902_v31  ;;  %v9009_v50 = vpop.f32.mrb[44].mxu0 }
 0x71f   : > { %v7101_v23 = vadd.f32 %v9009_v50, %v11694_v58  ;;  %v7001_v47 = vpop.f32.mrb[45].mxu0 }
 0x720   : > { %v7099_v29 = vadd.f32 %v11694_v58, %v7001_v47  ;;  %v9010_v45 = vpop.f32.mrb[46].mxu0 }
 0x721   : > { %v7907_v0 = vpack.c.bf16 %v7101_v23, %v7101_v23  ;;  %v7102_v22 = vadd.f32 %v9010_v45, %v11694_v58  ;;  %v7004_v20 = vpop.f32.mrb[47].mxu0 }
 0x722   : > { %v7905_v48 = vpack.c.bf16 %v7099_v29, %v7099_v29  ;;  %v7100_v44 = vadd.f32 %v11694_v58, %v7004_v20 }
 0x723   : > { %7262 = vst.msk [vmem:[%s11701_s30 + $0x38] sm:$0xf] %vm7247_vm4, %v7907_v0  ;;  %v7908_v15 = vpack.c.bf16 %v7102_v22, %v7102_v22 }
 0x724   : > { %7260 = vst.msk [vmem:[%s11701_s30 + $0x30] sm:$0xf] %vm7247_vm4, %v7905_v48  ;;  %v7906_v2 = vpack.c.bf16 %v7100_v44, %v7100_v44 }
 0x725   : > { %7263 = vst.msk [vmem:[%s11701_s30 + $0x3c] sm:$0xf] %vm7247_vm4, %v7908_v15 }
 0x726   : > { %7261 = vst.msk [vmem:[%s11701_s30 + $0x34] sm:$0xf] %vm7247_vm4, %v7906_v2  ;;  %v9013_v51 = vpop.f32.mrb[48].mxu0 }
 0x727   : > { %v7105_v53 = vadd.f32 %v9013_v51, %v11694_v58  ;;  %v7017_v54 = vpop.f32.mrb[49].mxu0 }
 0x728   : > { %v7103_v34 = vadd.f32 %v11694_v58, %v7017_v54  ;;  %v9014_v12 = vpop.f32.mrb[50].mxu0 }
 0x729   : > { %v7911_v14 = vpack.c.bf16 %v7105_v53, %v7105_v53  ;;  %v7106_v38 = vadd.f32 %v9014_v12, %v11694_v58  ;;  %v7020_v57 = vpop.f32.mrb[51].mxu0 }
 0x72a   : > { %v7909_v37 = vpack.c.bf16 %v7103_v34, %v7103_v34  ;;  %v7104_v55 = vadd.f32 %v11694_v58, %v7020_v57 }
 0x72b   : > { %7266 = vst.msk [vmem:[%s11701_s30 + $0x48] sm:$0xf] %vm7247_vm4, %v7911_v14  ;;  %v7912_v11 = vpack.c.bf16 %v7106_v38, %v7106_v38 }
 0x72c   : > { %7264 = vst.msk [vmem:[%s11701_s30 + $0x40] sm:$0xf] %vm7247_vm4, %v7909_v37  ;;  %v7910_v36 = vpack.c.bf16 %v7104_v55, %v7104_v55 }
 0x72d   : > { %7267 = vst.msk [vmem:[%s11701_s30 + $0x4c] sm:$0xf] %vm7247_vm4, %v7912_v11 }
 0x72e   : > { %7265 = vst.msk [vmem:[%s11701_s30 + $0x44] sm:$0xf] %vm7247_vm4, %v7910_v36  ;;  %v9017_v41 = vpop.f32.mrb[52].mxu0 }
 0x72f   : > { %v7109_v33 = vadd.f32 %v9017_v41, %v11694_v58  ;;  %v7033_v62 = vpop.f32.mrb[53].mxu0 }
 0x730   : > { %v7107_v13 = vadd.f32 %v11694_v58, %v7033_v62  ;;  %v9018_v17 = vpop.f32.mrb[54].mxu0 }
 0x731   : > { %v7915_v21 = vpack.c.bf16 %v7109_v33, %v7109_v33  ;;  %v7110_v63 = vadd.f32 %v9018_v17, %v11694_v58  ;;  %v7036_v6 = vpop.f32.mrb[55].mxu0 }
 0x732   : > { %v7913_v18 = vpack.c.bf16 %v7107_v13, %v7107_v13  ;;  %v7108_v43 = vadd.f32 %v11694_v58, %v7036_v6 }
 0x733   : > { %7270 = vst.msk [vmem:[%s11701_s30 + $0x58] sm:$0xf] %vm7247_vm4, %v7915_v21  ;;  %v7916_v8 = vpack.c.bf16 %v7110_v63, %v7110_v63 }
 0x734   : > { %7268 = vst.msk [vmem:[%s11701_s30 + $0x50] sm:$0xf] %vm7247_vm4, %v7913_v18  ;;  %v7914_v56 = vpack.c.bf16 %v7108_v43, %v7108_v43 }
 0x735   : > { %7271 = vst.msk [vmem:[%s11701_s30 + $0x5c] sm:$0xf] %vm7247_vm4, %v7916_v8 }
 0x736   : > { %7269 = vst.msk [vmem:[%s11701_s30 + $0x54] sm:$0xf] %vm7247_vm4, %v7914_v56  ;;  %v9021_v9 = vpop.f32.mrb[56].mxu0 }
 0x737   : > { %v7113_v1 = vadd.f32 %v9021_v9, %v11694_v58  ;;  %v7049_v3 = vpop.f32.mrb[57].mxu0 }
 0x738   : > { %v7111_v39 = vadd.f32 %v11694_v58, %v7049_v3  ;;  %v9022_v40 = vpop.f32.mrb[58].mxu0 }
 0x739   : > { %v7919_v46 = vpack.c.bf16 %v7113_v1, %v7113_v1  ;;  %v7114_v59 = vadd.f32 %v9022_v40, %v11694_v58  ;;  %v7052_v49 = vpop.f32.mrb[59].mxu0 }
 0x73a   : > { %v7917_v10 = vpack.c.bf16 %v7111_v39, %v7111_v39  ;;  %v7112_v25 = vadd.f32 %v11694_v58, %v7052_v49 }
 0x73b   : > { %7274 = vst.msk [vmem:[%s11701_s30 + $0x68] sm:$0xf] %vm7247_vm4, %v7919_v46  ;;  %v7920_v60 = vpack.c.bf16 %v7114_v59, %v7114_v59 }
 0x73c   : > { %7272 = vst.msk [vmem:[%s11701_s30 + $0x60] sm:$0xf] %vm7247_vm4, %v7917_v10  ;;  %v7918_v30 = vpack.c.bf16 %v7112_v25, %v7112_v25 }
 0x73d   : > { %7275 = vst.msk [vmem:[%s11701_s30 + $0x6c] sm:$0xf] %vm7247_vm4, %v7920_v60 }
 0x73e   : > { %7273 = vst.msk [vmem:[%s11701_s30 + $0x64] sm:$0xf] %vm7247_vm4, %v7918_v30  ;;  %v9025_v28 = vpop.f32.mrb[60].mxu0 }
 0x73f   : > { %v7117_v27 = vadd.f32 %v9025_v28, %v11694_v58  ;;  %v7065_v35 = vpop.f32.mrb[61].mxu0 }
 0x740   : > { %v7115_v32 = vadd.f32 %v11694_v58, %v7065_v35  ;;  %v9026_v16 = vpop.f32.mrb[62].mxu0 }
 0x741   : > { %v7923_v52 = vpack.c.bf16 %v7117_v27, %v7117_v27  ;;  %v7118_v19 = vadd.f32 %v9026_v16, %v11694_v58  ;;  %v7068_v42 = vpop.f32.mrb[63].mxu0 }
 0x742   : > { %v7921_v24 = vpack.c.bf16 %v7115_v32, %v7115_v32  ;;  %v7116_v7 = vadd.f32 %v11694_v58, %v7068_v42 }
 0x743   : > { %7278 = vst.msk [vmem:[%s11701_s30 + $0x78] sm:$0xf] %vm7247_vm4, %v7923_v52  ;;  %v7924_v61 = vpack.c.bf16 %v7118_v19, %v7118_v19 }
 0x744   : > { %7276 = vst.msk [vmem:[%s11701_s30 + $0x70] sm:$0xf] %vm7247_vm4, %v7921_v24  ;;  %v7922_v5 = vpack.c.bf16 %v7116_v7, %v7116_v7 }
 0x745   : > { %7279 = vst.msk [vmem:[%s11701_s30 + $0x7c] sm:$0xf] %vm7247_vm4, %v7924_v61 }
 0x746   : > { %7277 = vst.msk [vmem:[%s11701_s30 + $0x74] sm:$0xf] %vm7247_vm4, %v7922_v5 }
 0x747   : > { %9866 = shalt.err (!%p9863_p11)
}
 0x748   : > { %s9867_s27 = scalar_lea.hbm %s11794_s26, 2048  ;;  %s9871_s17 = scalar_lea.hbm %s11857_s11, 4096 }
 0x749   : > { %p9868_p3 = scmp.ne.s32.totalorder %s11794_s26, %s9867_s27  ;;  %p9872_p2 = scmp.lt.u32.totalorder %s11794_s26, %s11857_s11 }
 0x74a   : > { %p9873_p4 = scmp.lt.u32.totalorder %s9871_s17, %s9867_s27  ;;  %p9875_p13 = scmp.lt.u32.totalorder %s9867_s27, %s11794_s26 }
 0x74b   : > { %p9869_p8 = pnand %p9868_p3, %p11895_p1 }
 0x74c   : > { %p9874_p6 = por %p9873_p4, %p9872_p2 }
 0x74d   : > { %p9870_p0 = pneg %p9869_p8 }
 0x74e   : > { %p9876_p12 = por %p9875_p13, %p9874_p6 }
 0x750   : > { %p9877_p10 = pnand %p9876_p12, %p9870_p0 }
 0x752   : > { %9880 = shalt.err (!%p9877_p10)
}
 0x753   : > { %s9931_s16 = smov 64   ;;  %s9932_s14 = smov 4  }
 0x754   : > { %9675 = dma.vmem_to_hbm [thread:$0]  (%p11895_p1), %s11796_s19, 2048, %s11794_s26, %s7281_s21, %s9931_s16, %s9931_s16, %s9932_s14  }
 0x755 PF: > { %s11896_s25 = sld [smem:[#allocation13_spill]]  ;;  %s11897_s0 = sld [smem:[#allocation17_spill]] }
 0x756   : > { %p11899_p7 = scmp.ge.s32.totalorder %s9923_s20, 2 }
 0x75b   : > { %s7309_s28 = sand.u32 1, %s11896_s25   ;;  %p11898_p5 = scmp.ne.s32.totalorder %s11897_s0, 0 }
 0x75c   : > { %s7310_s12 = scalar_lea.sflag [#allocation6], %s7309_s28 }
 0x75d   : > { %p9685_p9 = pnand %p11899_p7, %p11898_p5 }
 0x75f   : > { %9906 = dma.done.wait (!%p9685_p9), %s7310_s12, 2048  }
 0x760   : > { %9908 = vsyncadd (!%p9685_p9), %s7310_s12, 4294965248  ;;  %s11900_s20 = sld [smem:[#allocation15_spill]]  ;;  %s11901_s15 = sld [smem:[#allocation14_spill]] }
 0x761   : > { %s11902_s19 = sld [smem:[#allocation16_spill]]  ;;  %s11903_s17 = smov %s9915_s18 }
 0x766   : > { %p27_p11 = scmp.ge.s32.totalorder %s11900_s20, 4   ;;  %s11904_s18 = smov %s11901_s15 }
 0x768   :  { %29 = sbr.rel (!%p27_p11) target bundleno = 9 (0x9), region = 142 }
 0x76f   :  { %7315 = vsyncpa [#allocation5], 1 }
 0x770   :  { %7317 = vsyncpa [#allocation5 + $0x1], 1 }
 0x771   :  { %7318 = vsyncpa [#allocation8], 1 }
 0x772   :  { %7320 = vsyncpa [#allocation8 + $0x1], 1 }
 0x773   :  { %7321 = vsyncpa [#allocation6], 1 }
 0x774   :  { %7323 = vsyncpa [#allocation6 + $0x1], 1 }

</bundles_post_ra>
